<compile_context>
chip_gen: v6e
topology: v6e:2x2x1
jax: 0.10.0
libtpu: 0.0.40
codegen_flags: <defaults>
</compile_context>

<pallas_src>
import functools

import jax
import jax.numpy as jnp
from jax.experimental import pallas as pl
from jax.experimental.pallas import tpu as pltpu


def _round_up(x, m):
    return ((x + m - 1) // m) * m


def _choose_tile_rows(height, batch):
    """Largest row tile dividing `height` that still yields >= 4 grid steps."""
    for tr in (32, 16, 8, 4, 2, 1):
        if height % tr == 0 and batch * (height // tr) >= 4:
            return tr
    for tr in (32, 16, 8, 4, 2, 1):
        if height % tr == 0:
            return tr
    return 1


# ----------------------------------------------------------------------------
# Fused Pallas kernel: conv1(3x3+BN+ReLU) -> conv2(3x3+BN+ReLU) for one
# (batch image, row tile) grid step. conv1's output only ever lives in VMEM.
# ----------------------------------------------------------------------------
def _fused_decoder_kernel(x_ref, w1_ref, b1_ref, w2_ref, b2_ref, o_ref, y1_ref,
                          *, tile_rows, width, np1, np2, c1p):
    # x_ref : (H+4, W+2, C1p) bf16  one padded input image (2 rows / 1 col / chan pad)
    # w1_ref: (9, C1p, Np1)   bf16  conv1 taps, BN scale folded, zero-padded
    # b1_ref: (1, Np1)        f32   conv1 folded BN bias
    # w2_ref: (9, Np1, Np2)   bf16  conv2 taps
    # b2_ref: (1, Np2)        f32
    # o_ref : (TR, W, Np2)    f32   output row tile (lane-dense)
    # y1_ref: (TR+2, W+2, Np1) bf16 VMEM scratch: conv1 tile + conv2's zero halo
    rt = pl.program_id(1)
    tr2 = tile_rows + 2
    m1 = tr2 * width
    m2 = tile_rows * width
    row0 = pl.multiple_of(rt * tile_rows, tile_rows)

    # ---- conv1: 9 shifted sub-GEMMs straight off the haloed input window ----
    # conv1 output rows row0-1 .. row0+tile_rows (the +/-1 halo rows feed conv2).
    acc1 = jnp.zeros((m1, np1), jnp.float32)
    for t in range(9):
        dy, dx = divmod(t, 3)
        xs = x_ref[pl.ds(row0 + dy, tr2), pl.ds(dx, width), :]   # (TR+2, W, C1p)
        acc1 = acc1 + jnp.dot(xs.reshape(m1, c1p), w1_ref[t],
                              preferred_element_type=jnp.float32)
    y1 = jnp.maximum(acc1 + b1_ref[...], 0.0)                    # bias + ReLU
    y1 = y1.reshape(tr2, width, np1).astype(y1_ref.dtype)

    # Stage the conv1 tile in VMEM surrounded by conv2's 1-element zero halo.
    y1_ref[...] = jnp.zeros_like(y1_ref)
    y1_ref[:, 1:width + 1, :] = y1

    # Halo rows that fall outside the image are conv2's zero padding, NOT conv1
    # output (which would be relu(bias) there) -> zero them at the image borders.
    @pl.when(rt == 0)
    def _():
        y1_ref[0, :, :] = jnp.zeros((width + 2, np1), y1_ref.dtype)

    @pl.when(rt == pl.num_programs(1) - 1)
    def _():
        y1_ref[tr2 - 1, :, :] = jnp.zeros((width + 2, np1), y1_ref.dtype)

    # ---- conv2: 9 shifted sub-GEMMs off the VMEM-resident conv1 tile ----
    acc2 = jnp.zeros((m2, np2), jnp.float32)
    for t in range(9):
        dy, dx = divmod(t, 3)
        ys = y1_ref[dy:dy + tile_rows, dx:dx + width, :]          # (TR, W, Np1)
        acc2 = acc2 + jnp.dot(ys.reshape(m2, np1), w2_ref[t],
                              preferred_element_type=jnp.float32)
    out = jnp.maximum(acc2 + b2_ref[...], 0.0)
    o_ref[...] = out.reshape(tile_rows, width, np2).astype(o_ref.dtype)


def fused_decoder_convs(x_cat_nhwc, p1, p2, *, out_dtype=jnp.float32):
    """Fused conv1(3x3,BN,ReLU) -> conv2(3x3,BN,ReLU), one pallas_call.

    x_cat_nhwc: (B, H, W, C1) concatenated [upsampled x, skip].
    p1 = (w1, scale1, bias1), w1 in HWIO (3, 3, C1, Cmid); p2 likewise (Cmid->Cout).
    Returns (B, H, W, Cout) in out_dtype.
    """
    B, H, W, C1 = x_cat_nhwc.shape
    w1, s1, bias1 = p1
    w2, s2, bias2 = p2
    Cm = w1.shape[-1]
    Co = w2.shape[-1]

    c1p = _round_up(C1, 128)     # per-tap contraction depth, lane-dense
    np1 = _round_up(Cm, 128)     # conv1 out / conv2 contraction, lane-dense
    np2 = _round_up(Co, 128)     # output stores, lane-dense

    def prep_w(w, scale, cin, cinp, cout, coutp):
        # Fold eval-mode BN scale into the conv weights; taps become the leading
        # dim so the kernel can index one (Cin, Cout) matrix per tap.
        wt = (w * scale[None, None, None, :]).reshape(9, cin, cout)
        wt = jnp.pad(wt, ((0, 0), (0, cinp - cin), (0, coutp - cout)))
        return wt.astype(jnp.bfloat16)

    w1t = prep_w(w1, s1, C1, c1p, Cm, np1)
    w2t = prep_w(w2, s2, Cm, np1, Co, np2)
    b1t = jnp.pad(bias1.astype(jnp.float32), (0, np1 - Cm)).reshape(1, np1)
    b2t = jnp.pad(bias2.astype(jnp.float32), (0, np2 - Co)).reshape(1, np2)

    # One zero-padded bf16 input slab (+2 rows / +1 col conv halo, channels
    # padded to c1p) written in a single fused XLA pass -- no HBM im2col.
    xpad = jnp.pad(x_cat_nhwc.astype(jnp.bfloat16),
                   ((0, 0), (2, 2), (1, 1), (0, c1p - C1)))

    tr = _choose_tile_rows(H, B)
    nt = H // tr

    kernel = functools.partial(
        _fused_decoder_kernel, tile_rows=tr, width=W, np1=np1, np2=np2, c1p=c1p)

    out = pl.pallas_call(
        kernel,
        out_shape=jax.ShapeDtypeStruct((B, H, W, np2), out_dtype),
        grid_spec=pltpu.PrefetchScalarGridSpec(
            num_scalar_prefetch=0,
            grid=(B, nt),
            in_specs=[
                # Whole padded image per batch step (block index only depends on
                # b, so it is fetched once per image and prefetch of the next
                # image overlaps with the last row tiles of the current one).
                pl.BlockSpec((None, H + 4, W + 2, c1p), lambda b, r: (b, 0, 0, 0)),
                # Weights / biases: constant block index -> resident.
                pl.BlockSpec((9, c1p, np1), lambda b, r: (0, 0, 0)),
                pl.BlockSpec((1, np1), lambda b, r: (0, 0)),
                pl.BlockSpec((9, np1, np2), lambda b, r: (0, 0, 0)),
                pl.BlockSpec((1, np2), lambda b, r: (0, 0)),
            ],
            out_specs=pl.BlockSpec((None, tr, W, np2), lambda b, r: (b, r, 0, 0)),
            scratch_shapes=[pltpu.VMEM((tr + 2, W + 2, np1), jnp.bfloat16)],
        ),
        compiler_params=pltpu.CompilerParams(
            dimension_semantics=("parallel", "parallel"),   # megacore on v7x
            vmem_limit_bytes=32 * 1024 * 1024,              # safe on v5e/v6e/v7x
        ),
    )(xpad, w1t, b1t, w2t, b2t)

    return out[..., :Co]   # drop channel padding (fuses into the final transpose)


# ----------------------------------------------------------------------------
# Parameter construction (deterministic, synthetic, torch-layout weights)
# ----------------------------------------------------------------------------
def make_conv_bn_params(key, in_ch, out_ch, eps=1e-5):
    kw, kg, kb, km, kv = jax.random.split(key, 5)
    fan_in = in_ch * 9
    # torch layout (Cout, Cin, 3, 3) -> (3, 3, Cin, Cout) (HWIO)
    w_torch = jax.random.normal(kw, (out_ch, in_ch, 3, 3), jnp.float32)
    w_torch = w_torch * (1.0 / jnp.sqrt(jnp.float32(fan_in)))
    w = jnp.transpose(w_torch, (2, 3, 1, 0))
    gamma = 0.5 + jax.random.uniform(kg, (out_ch,), jnp.float32)
    beta = 0.1 * jax.random.normal(kb, (out_ch,), jnp.float32)
    run_mean = 0.1 * jax.random.normal(km, (out_ch,), jnp.float32)
    run_var = 0.5 + jax.random.uniform(kv, (out_ch,), jnp.float32)
    scale = gamma / jnp.sqrt(run_var + eps)
    bias = beta - run_mean * scale
    return (w, scale, bias)


# ----------------------------------------------------------------------------
# DecoderBlock forward (thin JAX glue around the fused Pallas kernel)
# ----------------------------------------------------------------------------
def _nearest_upsample_nhwc(x, out_h, out_w):
    B, H, W, C = x.shape
    ridx = (jnp.arange(out_h) * H) // out_h   # matches F.interpolate 'nearest'
    cidx = (jnp.arange(out_w) * W) // out_w
    return x[:, ridx, :, :][:, :, cidx, :]


def decoder_block(x_nchw, skip_nchw, params):
    # NCHW <-> NHWC only at the module boundary (kept for PyTorch interface parity).
    x = jnp.transpose(x_nchw, (0, 2, 3, 1))
    skip = jnp.transpose(skip_nchw, (0, 2, 3, 1))
    # x = F.interpolate(x, size=skip.spatial, mode='nearest')
    x = _nearest_upsample_nhwc(x, skip.shape[1], skip.shape[2])
    # x = torch.cat([x, skip], dim=1) -> channels-last concat (fused by XLA into
    # the padded kernel-input slab; no standalone concatenated tensor pass).
    x = jnp.concatenate([x, skip], axis=-1)
    # attention1 / attention2 are Identity (attention_type=None).
    y = fused_decoder_convs(x, params["conv1"], params["conv2"])
    return jnp.transpose(y, (0, 3, 1, 2))   # NHWC -> NCHW


# ----------------------------------------------------------------------------
# Pure-JAX f32 reference (tolerance check for the bf16 kernel path)
# ----------------------------------------------------------------------------
def _ref_conv_bn_relu(x_nhwc, w, scale, bias):
    y = jax.lax.conv_general_dilated(
        x_nhwc, w, window_strides=(1, 1), padding="SAME",
        dimension_numbers=("NHWC", "HWIO", "NHWC"))
    y = y * scale[None, None, None, :] + bias[None, None, None, :]
    return jnp.maximum(y, 0.0)


def decoder_block_ref(x_nchw, skip_nchw, params):
    x = jnp.transpose(x_nchw, (0, 2, 3, 1))
    skip = jnp.transpose(skip_nchw, (0, 2, 3, 1))
    x = _nearest_upsample_nhwc(x, skip.shape[1], skip.shape[2])
    x = jnp.concatenate([x, skip], axis=-1)
    x = _ref_conv_bn_relu(x, *params["conv1"])
    x = _ref_conv_bn_relu(x, *params["conv2"])
    return jnp.transpose(x, (0, 3, 1, 2))


# ----------------------------------------------------------------------------
# Main
# ----------------------------------------------------------------------------
if __name__ == "__main__":
    key = jax.random.PRNGKey(0)
    kx, ks, k1, k2 = jax.random.split(key, 4)

    B = 2
    in_channels, skip_channels, out_channels = 64, 32, 32
    # x comes from the deeper stage (half resolution), skip from the encoder.
    x = jax.random.normal(kx, (B, in_channels, 8, 8), jnp.float32)
    skip = jax.random.normal(ks, (B, skip_channels, 16, 16), jnp.float32)

    params = {
        "conv1": make_conv_bn_params(k1, in_channels + skip_channels, out_channels),
        "conv2": make_conv_bn_params(k2, out_channels, out_channels),
    }

    fwd = jax.jit(lambda a, b: decoder_block(a, b, params))
    out = jax.block_until_ready(fwd(x, skip))

    assert out.shape == (B, out_channels, 16, 16), out.shape
    assert bool(jnp.all(jnp.isfinite(out)))
    assert bool(jnp.all(out >= 0.0))  # final ReLU

    # bf16 weights/activations + f32 accumulation vs. f32 reference -> loose tol.
    ref = decoder_block_ref(x, skip, params)
    max_err = float(jnp.max(jnp.abs(out - ref)))
    assert bool(jnp.allclose(out, ref, atol=0.2, rtol=0.1)), max_err

    print("KERNEL_OK")
</pallas_src>

<mosaic_0001>
module attributes {stable_mosaic.version = 11 : i64} {
  func.func @_fused_decoder_kernel(%arg0: i32, %arg1: i32, %arg2: memref<1x20x18x128xbf16, #tpu.memory_space<vmem>>, %arg3: memref<9x128x128xbf16, #tpu.memory_space<vmem>>, %arg4: memref<1x128xf32, #tpu.memory_space<vmem>>, %arg5: memref<9x128x128xbf16, #tpu.memory_space<vmem>>, %arg6: memref<1x128xf32, #tpu.memory_space<vmem>>, %arg7: memref<1x8x16x128xf32, #tpu.memory_space<vmem>>, %arg8: memref<10x18x128xbf16, #tpu.memory_space<vmem>>) attributes {dimension_semantics = [#tpu.dimension_semantics<parallel>, #tpu.dimension_semantics<parallel>], iteration_bounds = array<i64: 2, 2>, scalar_prefetch = 0 : i64, scratch_operands = 1 : i64, tpu.core_type = #tpu.core_type<tc>, window_params = [{transform_indices = @transform_0, window_bounds = array<i64: 1, 20, 18, 128>}, {pipeline_mode = #tpu.pipeline_mode<synchronous>, transform_indices = @transform_1, window_bounds = array<i64: 9, 128, 128>}, {pipeline_mode = #tpu.pipeline_mode<synchronous>, transform_indices = @transform_2, window_bounds = array<i64: 1, 128>}, {pipeline_mode = #tpu.pipeline_mode<synchronous>, transform_indices = @transform_3, window_bounds = array<i64: 9, 128, 128>}, {pipeline_mode = #tpu.pipeline_mode<synchronous>, transform_indices = @transform_4, window_bounds = array<i64: 1, 128>}, {transform_indices = @transform_5, window_bounds = array<i64: 1, 8, 16, 128>}]} {
    %c8_i32 = arith.constant 8 : i32
    %0 = arith.muli %arg1, %c8_i32 : i32
    %1 = tpu.assume_multiple %0, 8 : i32
    %cst = arith.constant 0.000000e+00 : f32
    %2 = vector.broadcast %cst : f32 to vector<160x128xf32>
    %c0_i32 = arith.constant 0 : i32
    %3 = arith.addi %1, %c0_i32 : i32
    %c0 = arith.constant 0 : index
    %4 = arith.index_cast %3 : i32 to index
    %c0_0 = arith.constant 0 : index
    %c0_1 = arith.constant 0 : index
    %5 = vector.load %arg2[%c0, %4, %c0_0, %c0_1] : memref<1x20x18x128xbf16, #tpu.memory_space<vmem>>, vector<1x10x16x128xbf16>
    %6 = vector.shape_cast %5 : vector<1x10x16x128xbf16> to vector<10x16x128xbf16>
    %7 = vector.shape_cast %6 : vector<10x16x128xbf16> to vector<160x128xbf16>
    %c0_2 = arith.constant 0 : index
    %c0_3 = arith.constant 0 : index
    %c0_4 = arith.constant 0 : index
    %8 = vector.load %arg3[%c0_2, %c0_3, %c0_4] : memref<9x128x128xbf16, #tpu.memory_space<vmem>>, vector<1x128x128xbf16>
    %9 = vector.shape_cast %8 : vector<1x128x128xbf16> to vector<128x128xbf16>
    %cst_5 = arith.constant dense<0.000000e+00> : vector<160x128xf32>
    %10 = tpu.matmul %7, %9, %cst_5 {dimension_numbers = #tpu.dot_dimension_numbers<[1], [0], [0], [1], [0, 0, 1, 1], [], []>} : vector<160x128xbf16>, vector<128x128xbf16>, vector<160x128xf32> -> vector<160x128xf32>
    %11 = arith.addf %2, %10 : vector<160x128xf32>
    %c0_i32_6 = arith.constant 0 : i32
    %12 = arith.addi %1, %c0_i32_6 : i32
    %c0_7 = arith.constant 0 : index
    %13 = arith.index_cast %12 : i32 to index
    %c1 = arith.constant 1 : index
    %c0_8 = arith.constant 0 : index
    %14 = vector.load %arg2[%c0_7, %13, %c1, %c0_8] : memref<1x20x18x128xbf16, #tpu.memory_space<vmem>>, vector<1x10x16x128xbf16>
    %15 = vector.shape_cast %14 : vector<1x10x16x128xbf16> to vector<10x16x128xbf16>
    %16 = vector.shape_cast %15 : vector<10x16x128xbf16> to vector<160x128xbf16>
    %c1_9 = arith.constant 1 : index
    %c0_10 = arith.constant 0 : index
    %c0_11 = arith.constant 0 : index
    %17 = vector.load %arg3[%c1_9, %c0_10, %c0_11] : memref<9x128x128xbf16, #tpu.memory_space<vmem>>, vector<1x128x128xbf16>
    %18 = vector.shape_cast %17 : vector<1x128x128xbf16> to vector<128x128xbf16>
    %cst_12 = arith.constant dense<0.000000e+00> : vector<160x128xf32>
    %19 = tpu.matmul %16, %18, %cst_12 {dimension_numbers = #tpu.dot_dimension_numbers<[1], [0], [0], [1], [0, 0, 1, 1], [], []>} : vector<160x128xbf16>, vector<128x128xbf16>, vector<160x128xf32> -> vector<160x128xf32>
    %20 = arith.addf %11, %19 : vector<160x128xf32>
    %c0_i32_13 = arith.constant 0 : i32
    %21 = arith.addi %1, %c0_i32_13 : i32
    %c0_14 = arith.constant 0 : index
    %22 = arith.index_cast %21 : i32 to index
    %c2 = arith.constant 2 : index
    %c0_15 = arith.constant 0 : index
    %23 = vector.load %arg2[%c0_14, %22, %c2, %c0_15] : memref<1x20x18x128xbf16, #tpu.memory_space<vmem>>, vector<1x10x16x128xbf16>
    %24 = vector.shape_cast %23 : vector<1x10x16x128xbf16> to vector<10x16x128xbf16>
    %25 = vector.shape_cast %24 : vector<10x16x128xbf16> to vector<160x128xbf16>
    %c2_16 = arith.constant 2 : index
    %c0_17 = arith.constant 0 : index
    %c0_18 = arith.constant 0 : index
    %26 = vector.load %arg3[%c2_16, %c0_17, %c0_18] : memref<9x128x128xbf16, #tpu.memory_space<vmem>>, vector<1x128x128xbf16>
    %27 = vector.shape_cast %26 : vector<1x128x128xbf16> to vector<128x128xbf16>
    %cst_19 = arith.constant dense<0.000000e+00> : vector<160x128xf32>
    %28 = tpu.matmul %25, %27, %cst_19 {dimension_numbers = #tpu.dot_dimension_numbers<[1], [0], [0], [1], [0, 0, 1, 1], [], []>} : vector<160x128xbf16>, vector<128x128xbf16>, vector<160x128xf32> -> vector<160x128xf32>
    %29 = arith.addf %20, %28 : vector<160x128xf32>
    %c1_i32 = arith.constant 1 : i32
    %30 = arith.addi %1, %c1_i32 : i32
    %c0_20 = arith.constant 0 : index
    %31 = arith.index_cast %30 : i32 to index
    %c0_21 = arith.constant 0 : index
    %c0_22 = arith.constant 0 : index
    %32 = vector.load %arg2[%c0_20, %31, %c0_21, %c0_22] : memref<1x20x18x128xbf16, #tpu.memory_space<vmem>>, vector<1x10x16x128xbf16>
    %33 = vector.shape_cast %32 : vector<1x10x16x128xbf16> to vector<10x16x128xbf16>
    %34 = vector.shape_cast %33 : vector<10x16x128xbf16> to vector<160x128xbf16>
    %c3 = arith.constant 3 : index
    %c0_23 = arith.constant 0 : index
    %c0_24 = arith.constant 0 : index
    %35 = vector.load %arg3[%c3, %c0_23, %c0_24] : memref<9x128x128xbf16, #tpu.memory_space<vmem>>, vector<1x128x128xbf16>
    %36 = vector.shape_cast %35 : vector<1x128x128xbf16> to vector<128x128xbf16>
    %cst_25 = arith.constant dense<0.000000e+00> : vector<160x128xf32>
    %37 = tpu.matmul %34, %36, %cst_25 {dimension_numbers = #tpu.dot_dimension_numbers<[1], [0], [0], [1], [0, 0, 1, 1], [], []>} : vector<160x128xbf16>, vector<128x128xbf16>, vector<160x128xf32> -> vector<160x128xf32>
    %38 = arith.addf %29, %37 : vector<160x128xf32>
    %c1_i32_26 = arith.constant 1 : i32
    %39 = arith.addi %1, %c1_i32_26 : i32
    %c0_27 = arith.constant 0 : index
    %40 = arith.index_cast %39 : i32 to index
    %c1_28 = arith.constant 1 : index
    %c0_29 = arith.constant 0 : index
    %41 = vector.load %arg2[%c0_27, %40, %c1_28, %c0_29] : memref<1x20x18x128xbf16, #tpu.memory_space<vmem>>, vector<1x10x16x128xbf16>
    %42 = vector.shape_cast %41 : vector<1x10x16x128xbf16> to vector<10x16x128xbf16>
    %43 = vector.shape_cast %42 : vector<10x16x128xbf16> to vector<160x128xbf16>
    %c4 = arith.constant 4 : index
    %c0_30 = arith.constant 0 : index
    %c0_31 = arith.constant 0 : index
    %44 = vector.load %arg3[%c4, %c0_30, %c0_31] : memref<9x128x128xbf16, #tpu.memory_space<vmem>>, vector<1x128x128xbf16>
    %45 = vector.shape_cast %44 : vector<1x128x128xbf16> to vector<128x128xbf16>
    %cst_32 = arith.constant dense<0.000000e+00> : vector<160x128xf32>
    %46 = tpu.matmul %43, %45, %cst_32 {dimension_numbers = #tpu.dot_dimension_numbers<[1], [0], [0], [1], [0, 0, 1, 1], [], []>} : vector<160x128xbf16>, vector<128x128xbf16>, vector<160x128xf32> -> vector<160x128xf32>
    %47 = arith.addf %38, %46 : vector<160x128xf32>
    %c1_i32_33 = arith.constant 1 : i32
    %48 = arith.addi %1, %c1_i32_33 : i32
    %c0_34 = arith.constant 0 : index
    %49 = arith.index_cast %48 : i32 to index
    %c2_35 = arith.constant 2 : index
    %c0_36 = arith.constant 0 : index
    %50 = vector.load %arg2[%c0_34, %49, %c2_35, %c0_36] : memref<1x20x18x128xbf16, #tpu.memory_space<vmem>>, vector<1x10x16x128xbf16>
    %51 = vector.shape_cast %50 : vector<1x10x16x128xbf16> to vector<10x16x128xbf16>
    %52 = vector.shape_cast %51 : vector<10x16x128xbf16> to vector<160x128xbf16>
    %c5 = arith.constant 5 : index
    %c0_37 = arith.constant 0 : index
    %c0_38 = arith.constant 0 : index
    %53 = vector.load %arg3[%c5, %c0_37, %c0_38] : memref<9x128x128xbf16, #tpu.memory_space<vmem>>, vector<1x128x128xbf16>
    %54 = vector.shape_cast %53 : vector<1x128x128xbf16> to vector<128x128xbf16>
    %cst_39 = arith.constant dense<0.000000e+00> : vector<160x128xf32>
    %55 = tpu.matmul %52, %54, %cst_39 {dimension_numbers = #tpu.dot_dimension_numbers<[1], [0], [0], [1], [0, 0, 1, 1], [], []>} : vector<160x128xbf16>, vector<128x128xbf16>, vector<160x128xf32> -> vector<160x128xf32>
    %56 = arith.addf %47, %55 : vector<160x128xf32>
    %c2_i32 = arith.constant 2 : i32
    %57 = arith.addi %1, %c2_i32 : i32
    %c0_40 = arith.constant 0 : index
    %58 = arith.index_cast %57 : i32 to index
    %c0_41 = arith.constant 0 : index
    %c0_42 = arith.constant 0 : index
    %59 = vector.load %arg2[%c0_40, %58, %c0_41, %c0_42] : memref<1x20x18x128xbf16, #tpu.memory_space<vmem>>, vector<1x10x16x128xbf16>
    %60 = vector.shape_cast %59 : vector<1x10x16x128xbf16> to vector<10x16x128xbf16>
    %61 = vector.shape_cast %60 : vector<10x16x128xbf16> to vector<160x128xbf16>
    %c6 = arith.constant 6 : index
    %c0_43 = arith.constant 0 : index
    %c0_44 = arith.constant 0 : index
    %62 = vector.load %arg3[%c6, %c0_43, %c0_44] : memref<9x128x128xbf16, #tpu.memory_space<vmem>>, vector<1x128x128xbf16>
    %63 = vector.shape_cast %62 : vector<1x128x128xbf16> to vector<128x128xbf16>
    %cst_45 = arith.constant dense<0.000000e+00> : vector<160x128xf32>
    %64 = tpu.matmul %61, %63, %cst_45 {dimension_numbers = #tpu.dot_dimension_numbers<[1], [0], [0], [1], [0, 0, 1, 1], [], []>} : vector<160x128xbf16>, vector<128x128xbf16>, vector<160x128xf32> -> vector<160x128xf32>
    %65 = arith.addf %56, %64 : vector<160x128xf32>
    %c2_i32_46 = arith.constant 2 : i32
    %66 = arith.addi %1, %c2_i32_46 : i32
    %c0_47 = arith.constant 0 : index
    %67 = arith.index_cast %66 : i32 to index
    %c1_48 = arith.constant 1 : index
    %c0_49 = arith.constant 0 : index
    %68 = vector.load %arg2[%c0_47, %67, %c1_48, %c0_49] : memref<1x20x18x128xbf16, #tpu.memory_space<vmem>>, vector<1x10x16x128xbf16>
    %69 = vector.shape_cast %68 : vector<1x10x16x128xbf16> to vector<10x16x128xbf16>
    %70 = vector.shape_cast %69 : vector<10x16x128xbf16> to vector<160x128xbf16>
    %c7 = arith.constant 7 : index
    %c0_50 = arith.constant 0 : index
    %c0_51 = arith.constant 0 : index
    %71 = vector.load %arg3[%c7, %c0_50, %c0_51] : memref<9x128x128xbf16, #tpu.memory_space<vmem>>, vector<1x128x128xbf16>
    %72 = vector.shape_cast %71 : vector<1x128x128xbf16> to vector<128x128xbf16>
    %cst_52 = arith.constant dense<0.000000e+00> : vector<160x128xf32>
    %73 = tpu.matmul %70, %72, %cst_52 {dimension_numbers = #tpu.dot_dimension_numbers<[1], [0], [0], [1], [0, 0, 1, 1], [], []>} : vector<160x128xbf16>, vector<128x128xbf16>, vector<160x128xf32> -> vector<160x128xf32>
    %74 = arith.addf %65, %73 : vector<160x128xf32>
    %c2_i32_53 = arith.constant 2 : i32
    %75 = arith.addi %1, %c2_i32_53 : i32
    %c0_54 = arith.constant 0 : index
    %76 = arith.index_cast %75 : i32 to index
    %c2_55 = arith.constant 2 : index
    %c0_56 = arith.constant 0 : index
    %77 = vector.load %arg2[%c0_54, %76, %c2_55, %c0_56] : memref<1x20x18x128xbf16, #tpu.memory_space<vmem>>, vector<1x10x16x128xbf16>
    %78 = vector.shape_cast %77 : vector<1x10x16x128xbf16> to vector<10x16x128xbf16>
    %79 = vector.shape_cast %78 : vector<10x16x128xbf16> to vector<160x128xbf16>
    %c8 = arith.constant 8 : index
    %c0_57 = arith.constant 0 : index
    %c0_58 = arith.constant 0 : index
    %80 = vector.load %arg3[%c8, %c0_57, %c0_58] : memref<9x128x128xbf16, #tpu.memory_space<vmem>>, vector<1x128x128xbf16>
    %81 = vector.shape_cast %80 : vector<1x128x128xbf16> to vector<128x128xbf16>
    %cst_59 = arith.constant dense<0.000000e+00> : vector<160x128xf32>
    %82 = tpu.matmul %79, %81, %cst_59 {dimension_numbers = #tpu.dot_dimension_numbers<[1], [0], [0], [1], [0, 0, 1, 1], [], []>} : vector<160x128xbf16>, vector<128x128xbf16>, vector<160x128xf32> -> vector<160x128xf32>
    %83 = arith.addf %74, %82 : vector<160x128xf32>
    %c0_60 = arith.constant 0 : index
    %c0_61 = arith.constant 0 : index
    %84 = vector.load %arg4[%c0_60, %c0_61] : memref<1x128xf32, #tpu.memory_space<vmem>>, vector<1x128xf32>
    %85 = vector.broadcast %84 : vector<1x128xf32> to vector<160x128xf32>
    %86 = arith.addf %83, %85 : vector<160x128xf32>
    %cst_62 = arith.constant 0.000000e+00 : f32
    %87 = vector.broadcast %cst_62 : f32 to vector<160x128xf32>
    %88 = arith.maximumf %86, %87 : vector<160x128xf32>
    %89 = vector.shape_cast %88 : vector<160x128xf32> to vector<10x16x128xf32>
    %90 = arith.truncf %89 : vector<10x16x128xf32> to vector<10x16x128xbf16>
    %cst_63 = arith.constant 0.000000e+00 : bf16
    %91 = vector.broadcast %cst_63 : bf16 to vector<10x18x128xbf16>
    %c0_64 = arith.constant 0 : index
    %c0_65 = arith.constant 0 : index
    %c0_66 = arith.constant 0 : index
    %92 = vector.load %arg8[%c0_64, %c0_65, %c0_66] : memref<10x18x128xbf16, #tpu.memory_space<vmem>>, vector<10x18x128xbf16>
    tpu.vector_store %arg8[%c0_64, %c0_65, %c0_66], %91 {strides = array<i32>} : memref<10x18x128xbf16, #tpu.memory_space<vmem>>, vector<10x18x128xbf16>,
    %c0_67 = arith.constant 0 : index
    %c1_68 = arith.constant 1 : index
    %c0_69 = arith.constant 0 : index
    %93 = vector.load %arg8[%c0_67, %c1_68, %c0_69] : memref<10x18x128xbf16, #tpu.memory_space<vmem>>, vector<10x16x128xbf16>
    tpu.vector_store %arg8[%c0_67, %c1_68, %c0_69], %90 {strides = array<i32>} : memref<10x18x128xbf16, #tpu.memory_space<vmem>>, vector<10x16x128xbf16>,
    %c0_i32_70 = arith.constant 0 : i32
    %94 = arith.cmpi eq, %arg1, %c0_i32_70 : i32
    %95 = arith.extui %94 : i1 to i32
    %c0_i32_71 = arith.constant 0 : i32
    %96 = arith.cmpi ne, %95, %c0_i32_71 : i32
    scf.if %96 {
      %cst_145 = arith.constant 0.000000e+00 : bf16
      %164 = vector.broadcast %cst_145 : bf16 to vector<18x128xbf16>
      %c0_146 = arith.constant 0 : index
      %c0_147 = arith.constant 0 : index
      %c0_148 = arith.constant 0 : index
      %165 = vector.load %arg8[%c0_146, %c0_147, %c0_148] : memref<10x18x128xbf16, #tpu.memory_space<vmem>>, vector<1x18x128xbf16>
      %166 = vector.shape_cast %165 : vector<1x18x128xbf16> to vector<18x128xbf16>
      %167 = vector.shape_cast %164 : vector<18x128xbf16> to vector<1x18x128xbf16>
      tpu.vector_store %arg8[%c0_146, %c0_147, %c0_148], %167 {strides = array<i32>} : memref<10x18x128xbf16, #tpu.memory_space<vmem>>, vector<1x18x128xbf16>,
    } else {
    }
    %c1_i32_72 = arith.constant 1 : i32
    %97 = arith.cmpi eq, %arg1, %c1_i32_72 : i32
    %98 = arith.extui %97 : i1 to i32
    %c0_i32_73 = arith.constant 0 : i32
    %99 = arith.cmpi ne, %98, %c0_i32_73 : i32
    scf.if %99 {
      %cst_145 = arith.constant 0.000000e+00 : bf16
      %164 = vector.broadcast %cst_145 : bf16 to vector<18x128xbf16>
      %c9 = arith.constant 9 : index
      %c0_146 = arith.constant 0 : index
      %c0_147 = arith.constant 0 : index
      %165 = vector.load %arg8[%c9, %c0_146, %c0_147] : memref<10x18x128xbf16, #tpu.memory_space<vmem>>, vector<1x18x128xbf16>
      %166 = vector.shape_cast %165 : vector<1x18x128xbf16> to vector<18x128xbf16>
      %167 = vector.shape_cast %164 : vector<18x128xbf16> to vector<1x18x128xbf16>
      tpu.vector_store %arg8[%c9, %c0_146, %c0_147], %167 {strides = array<i32>} : memref<10x18x128xbf16, #tpu.memory_space<vmem>>, vector<1x18x128xbf16>,
    } else {
    }
    %cst_74 = arith.constant 0.000000e+00 : f32
    %100 = vector.broadcast %cst_74 : f32 to vector<128x128xf32>
    %c0_75 = arith.constant 0 : index
    %c0_76 = arith.constant 0 : index
    %c0_77 = arith.constant 0 : index
    %101 = vector.load %arg8[%c0_75, %c0_76, %c0_77] : memref<10x18x128xbf16, #tpu.memory_space<vmem>>, vector<8x16x128xbf16>
    %102 = vector.shape_cast %101 : vector<8x16x128xbf16> to vector<128x128xbf16>
    %c0_78 = arith.constant 0 : index
    %c0_79 = arith.constant 0 : index
    %c0_80 = arith.constant 0 : index
    %103 = vector.load %arg5[%c0_78, %c0_79, %c0_80] : memref<9x128x128xbf16, #tpu.memory_space<vmem>>, vector<1x128x128xbf16>
    %104 = vector.shape_cast %103 : vector<1x128x128xbf16> to vector<128x128xbf16>
    %cst_81 = arith.constant dense<0.000000e+00> : vector<128x128xf32>
    %105 = tpu.matmul %102, %104, %cst_81 {dimension_numbers = #tpu.dot_dimension_numbers<[1], [0], [0], [1], [0, 0, 1, 1], [], []>} : vector<128x128xbf16>, vector<128x128xbf16>, vector<128x128xf32> -> vector<128x128xf32>
    %106 = arith.addf %100, %105 : vector<128x128xf32>
    %c0_82 = arith.constant 0 : index
    %c1_83 = arith.constant 1 : index
    %c0_84 = arith.constant 0 : index
    %107 = vector.load %arg8[%c0_82, %c1_83, %c0_84] : memref<10x18x128xbf16, #tpu.memory_space<vmem>>, vector<8x16x128xbf16>
    %108 = vector.shape_cast %107 : vector<8x16x128xbf16> to vector<128x128xbf16>
    %c1_85 = arith.constant 1 : index
    %c0_86 = arith.constant 0 : index
    %c0_87 = arith.constant 0 : index
    %109 = vector.load %arg5[%c1_85, %c0_86, %c0_87] : memref<9x128x128xbf16, #tpu.memory_space<vmem>>, vector<1x128x128xbf16>
    %110 = vector.shape_cast %109 : vector<1x128x128xbf16> to vector<128x128xbf16>
    %cst_88 = arith.constant dense<0.000000e+00> : vector<128x128xf32>
    %111 = tpu.matmul %108, %110, %cst_88 {dimension_numbers = #tpu.dot_dimension_numbers<[1], [0], [0], [1], [0, 0, 1, 1], [], []>} : vector<128x128xbf16>, vector<128x128xbf16>, vector<128x128xf32> -> vector<128x128xf32>
    %112 = arith.addf %106, %111 : vector<128x128xf32>
    %c0_89 = arith.constant 0 : index
    %c2_90 = arith.constant 2 : index
    %c0_91 = arith.constant 0 : index
    %113 = vector.load %arg8[%c0_89, %c2_90, %c0_91] : memref<10x18x128xbf16, #tpu.memory_space<vmem>>, vector<8x16x128xbf16>
    %114 = vector.shape_cast %113 : vector<8x16x128xbf16> to vector<128x128xbf16>
    %c2_92 = arith.constant 2 : index
    %c0_93 = arith.constant 0 : index
    %c0_94 = arith.constant 0 : index
    %115 = vector.load %arg5[%c2_92, %c0_93, %c0_94] : memref<9x128x128xbf16, #tpu.memory_space<vmem>>, vector<1x128x128xbf16>
    %116 = vector.shape_cast %115 : vector<1x128x128xbf16> to vector<128x128xbf16>
    %cst_95 = arith.constant dense<0.000000e+00> : vector<128x128xf32>
    %117 = tpu.matmul %114, %116, %cst_95 {dimension_numbers = #tpu.dot_dimension_numbers<[1], [0], [0], [1], [0, 0, 1, 1], [], []>} : vector<128x128xbf16>, vector<128x128xbf16>, vector<128x128xf32> -> vector<128x128xf32>
    %118 = arith.addf %112, %117 : vector<128x128xf32>
    %c1_96 = arith.constant 1 : index
    %c0_97 = arith.constant 0 : index
    %c0_98 = arith.constant 0 : index
    %119 = vector.load %arg8[%c1_96, %c0_97, %c0_98] : memref<10x18x128xbf16, #tpu.memory_space<vmem>>, vector<8x16x128xbf16>
    %120 = vector.shape_cast %119 : vector<8x16x128xbf16> to vector<128x128xbf16>
    %c3_99 = arith.constant 3 : index
    %c0_100 = arith.constant 0 : index
    %c0_101 = arith.constant 0 : index
    %121 = vector.load %arg5[%c3_99, %c0_100, %c0_101] : memref<9x128x128xbf16, #tpu.memory_space<vmem>>, vector<1x128x128xbf16>
    %122 = vector.shape_cast %121 : vector<1x128x128xbf16> to vector<128x128xbf16>
    %cst_102 = arith.constant dense<0.000000e+00> : vector<128x128xf32>
    %123 = tpu.matmul %120, %122, %cst_102 {dimension_numbers = #tpu.dot_dimension_numbers<[1], [0], [0], [1], [0, 0, 1, 1], [], []>} : vector<128x128xbf16>, vector<128x128xbf16>, vector<128x128xf32> -> vector<128x128xf32>
    %124 = arith.addf %118, %123 : vector<128x128xf32>
    %c1_103 = arith.constant 1 : index
    %c1_104 = arith.constant 1 : index
    %c0_105 = arith.constant 0 : index
    %125 = vector.load %arg8[%c1_103, %c1_104, %c0_105] : memref<10x18x128xbf16, #tpu.memory_space<vmem>>, vector<8x16x128xbf16>
    %126 = vector.shape_cast %125 : vector<8x16x128xbf16> to vector<128x128xbf16>
    %c4_106 = arith.constant 4 : index
    %c0_107 = arith.constant 0 : index
    %c0_108 = arith.constant 0 : index
    %127 = vector.load %arg5[%c4_106, %c0_107, %c0_108] : memref<9x128x128xbf16, #tpu.memory_space<vmem>>, vector<1x128x128xbf16>
    %128 = vector.shape_cast %127 : vector<1x128x128xbf16> to vector<128x128xbf16>
    %cst_109 = arith.constant dense<0.000000e+00> : vector<128x128xf32>
    %129 = tpu.matmul %126, %128, %cst_109 {dimension_numbers = #tpu.dot_dimension_numbers<[1], [0], [0], [1], [0, 0, 1, 1], [], []>} : vector<128x128xbf16>, vector<128x128xbf16>, vector<128x128xf32> -> vector<128x128xf32>
    %130 = arith.addf %124, %129 : vector<128x128xf32>
    %c1_110 = arith.constant 1 : index
    %c2_111 = arith.constant 2 : index
    %c0_112 = arith.constant 0 : index
    %131 = vector.load %arg8[%c1_110, %c2_111, %c0_112] : memref<10x18x128xbf16, #tpu.memory_space<vmem>>, vector<8x16x128xbf16>
    %132 = vector.shape_cast %131 : vector<8x16x128xbf16> to vector<128x128xbf16>
    %c5_113 = arith.constant 5 : index
    %c0_114 = arith.constant 0 : index
    %c0_115 = arith.constant 0 : index
    %133 = vector.load %arg5[%c5_113, %c0_114, %c0_115] : memref<9x128x128xbf16, #tpu.memory_space<vmem>>, vector<1x128x128xbf16>
    %134 = vector.shape_cast %133 : vector<1x128x128xbf16> to vector<128x128xbf16>
    %cst_116 = arith.constant dense<0.000000e+00> : vector<128x128xf32>
    %135 = tpu.matmul %132, %134, %cst_116 {dimension_numbers = #tpu.dot_dimension_numbers<[1], [0], [0], [1], [0, 0, 1, 1], [], []>} : vector<128x128xbf16>, vector<128x128xbf16>, vector<128x128xf32> -> vector<128x128xf32>
    %136 = arith.addf %130, %135 : vector<128x128xf32>
    %c2_117 = arith.constant 2 : index
    %c0_118 = arith.constant 0 : index
    %c0_119 = arith.constant 0 : index
    %137 = vector.load %arg8[%c2_117, %c0_118, %c0_119] : memref<10x18x128xbf16, #tpu.memory_space<vmem>>, vector<8x16x128xbf16>
    %138 = vector.shape_cast %137 : vector<8x16x128xbf16> to vector<128x128xbf16>
    %c6_120 = arith.constant 6 : index
    %c0_121 = arith.constant 0 : index
    %c0_122 = arith.constant 0 : index
    %139 = vector.load %arg5[%c6_120, %c0_121, %c0_122] : memref<9x128x128xbf16, #tpu.memory_space<vmem>>, vector<1x128x128xbf16>
    %140 = vector.shape_cast %139 : vector<1x128x128xbf16> to vector<128x128xbf16>
    %cst_123 = arith.constant dense<0.000000e+00> : vector<128x128xf32>
    %141 = tpu.matmul %138, %140, %cst_123 {dimension_numbers = #tpu.dot_dimension_numbers<[1], [0], [0], [1], [0, 0, 1, 1], [], []>} : vector<128x128xbf16>, vector<128x128xbf16>, vector<128x128xf32> -> vector<128x128xf32>
    %142 = arith.addf %136, %141 : vector<128x128xf32>
    %c2_124 = arith.constant 2 : index
    %c1_125 = arith.constant 1 : index
    %c0_126 = arith.constant 0 : index
    %143 = vector.load %arg8[%c2_124, %c1_125, %c0_126] : memref<10x18x128xbf16, #tpu.memory_space<vmem>>, vector<8x16x128xbf16>
    %144 = vector.shape_cast %143 : vector<8x16x128xbf16> to vector<128x128xbf16>
    %c7_127 = arith.constant 7 : index
    %c0_128 = arith.constant 0 : index
    %c0_129 = arith.constant 0 : index
    %145 = vector.load %arg5[%c7_127, %c0_128, %c0_129] : memref<9x128x128xbf16, #tpu.memory_space<vmem>>, vector<1x128x128xbf16>
    %146 = vector.shape_cast %145 : vector<1x128x128xbf16> to vector<128x128xbf16>
    %cst_130 = arith.constant dense<0.000000e+00> : vector<128x128xf32>
    %147 = tpu.matmul %144, %146, %cst_130 {dimension_numbers = #tpu.dot_dimension_numbers<[1], [0], [0], [1], [0, 0, 1, 1], [], []>} : vector<128x128xbf16>, vector<128x128xbf16>, vector<128x128xf32> -> vector<128x128xf32>
    %148 = arith.addf %142, %147 : vector<128x128xf32>
    %c2_131 = arith.constant 2 : index
    %c2_132 = arith.constant 2 : index
    %c0_133 = arith.constant 0 : index
    %149 = vector.load %arg8[%c2_131, %c2_132, %c0_133] : memref<10x18x128xbf16, #tpu.memory_space<vmem>>, vector<8x16x128xbf16>
    %150 = vector.shape_cast %149 : vector<8x16x128xbf16> to vector<128x128xbf16>
    %c8_134 = arith.constant 8 : index
    %c0_135 = arith.constant 0 : index
    %c0_136 = arith.constant 0 : index
    %151 = vector.load %arg5[%c8_134, %c0_135, %c0_136] : memref<9x128x128xbf16, #tpu.memory_space<vmem>>, vector<1x128x128xbf16>
    %152 = vector.shape_cast %151 : vector<1x128x128xbf16> to vector<128x128xbf16>
    %cst_137 = arith.constant dense<0.000000e+00> : vector<128x128xf32>
    %153 = tpu.matmul %150, %152, %cst_137 {dimension_numbers = #tpu.dot_dimension_numbers<[1], [0], [0], [1], [0, 0, 1, 1], [], []>} : vector<128x128xbf16>, vector<128x128xbf16>, vector<128x128xf32> -> vector<128x128xf32>
    %154 = arith.addf %148, %153 : vector<128x128xf32>
    %c0_138 = arith.constant 0 : index
    %c0_139 = arith.constant 0 : index
    %155 = vector.load %arg6[%c0_138, %c0_139] : memref<1x128xf32, #tpu.memory_space<vmem>>, vector<1x128xf32>
    %156 = vector.broadcast %155 : vector<1x128xf32> to vector<128x128xf32>
    %157 = arith.addf %154, %156 : vector<128x128xf32>
    %cst_140 = arith.constant 0.000000e+00 : f32
    %158 = vector.broadcast %cst_140 : f32 to vector<128x128xf32>
    %159 = arith.maximumf %157, %158 : vector<128x128xf32>
    %160 = vector.shape_cast %159 : vector<128x128xf32> to vector<8x16x128xf32>
    %c0_141 = arith.constant 0 : index
    %c0_142 = arith.constant 0 : index
    %c0_143 = arith.constant 0 : index
    %c0_144 = arith.constant 0 : index
    %161 = vector.load %arg7[%c0_141, %c0_142, %c0_143, %c0_144] : memref<1x8x16x128xf32, #tpu.memory_space<vmem>>, vector<1x8x16x128xf32>
    %162 = vector.shape_cast %161 : vector<1x8x16x128xf32> to vector<8x16x128xf32>
    %163 = vector.shape_cast %160 : vector<8x16x128xf32> to vector<1x8x16x128xf32>
    tpu.vector_store %arg7[%c0_141, %c0_142, %c0_143, %c0_144], %163 {strides = array<i32>} : memref<1x8x16x128xf32, #tpu.memory_space<vmem>>, vector<1x8x16x128xf32>,
    return
  }
  func.func @transform_0(%arg0: i32, %arg1: i32) -> (i32, i32, i32, i32) {
    %c0_i32 = arith.constant 0 : i32
    %c0_i32_0 = arith.constant 0 : i32
    %c0_i32_1 = arith.constant 0 : i32
    %c0_i32_2 = arith.constant 0 : i32
    return %arg0, %c0_i32, %c0_i32_0, %c0_i32_1 : i32, i32, i32, i32
  }
  func.func @transform_1(%arg0: i32, %arg1: i32) -> (i32, i32, i32) {
    %c0_i32 = arith.constant 0 : i32
    %c0_i32_0 = arith.constant 0 : i32
    %c0_i32_1 = arith.constant 0 : i32
    %c0_i32_2 = arith.constant 0 : i32
    return %c0_i32, %c0_i32_0, %c0_i32_1 : i32, i32, i32
  }
  func.func @transform_2(%arg0: i32, %arg1: i32) -> (i32, i32) {
    %c0_i32 = arith.constant 0 : i32
    %c0_i32_0 = arith.constant 0 : i32
    %c0_i32_1 = arith.constant 0 : i32
    return %c0_i32, %c0_i32_0 : i32, i32
  }
  func.func @transform_3(%arg0: i32, %arg1: i32) -> (i32, i32, i32) {
    %c0_i32 = arith.constant 0 : i32
    %c0_i32_0 = arith.constant 0 : i32
    %c0_i32_1 = arith.constant 0 : i32
    %c0_i32_2 = arith.constant 0 : i32
    return %c0_i32, %c0_i32_0, %c0_i32_1 : i32, i32, i32
  }
  func.func @transform_4(%arg0: i32, %arg1: i32) -> (i32, i32) {
    %c0_i32 = arith.constant 0 : i32
    %c0_i32_0 = arith.constant 0 : i32
    %c0_i32_1 = arith.constant 0 : i32
    return %c0_i32, %c0_i32_0 : i32, i32
  }
  func.func @transform_5(%arg0: i32, %arg1: i32) -> (i32, i32, i32, i32) {
    %c0_i32 = arith.constant 0 : i32
    %c0_i32_0 = arith.constant 0 : i32
    %c0_i32_1 = arith.constant 0 : i32
    return %arg0, %arg1, %c0_i32, %c0_i32_0 : i32, i32, i32, i32
  }
}

</mosaic_0001>

<bundles_post_ra>
// kernel: _lambda_.1
= control target key start
LH: loop header
LB: loop body
LE: loop exit
PB: predicated region body
PF: predicated region fallthrough
CT: control target
= control target key end

     0   :  { %s9061_s18 = smov 0   ;;  %s9063_s19 = smov 0   ;;  %s11396_s0 = inlined_call_operand.vmem [shape: bf16[2,20,18,128], index: 0, kind: input, shape index: {}]   ;;  %s11397_s1 = inlined_call_operand.vmem [shape: bf16[9,128,128], index: 1, kind: input, shape index: {}]   ;;  %s11398_s2 = inlined_call_operand.vmem [shape: f32[1,128], index: 2, kind: input, shape index: {}]   ;;  %s11399_s3 = inlined_call_operand.vmem [shape: bf16[9,128,128], index: 3, kind: input, shape index: {}]   ;;  %s11400_s4 = inlined_call_operand.vmem [shape: f32[1,128], index: 4, kind: input, shape index: {}]   ;;  %s11401_s5 = inlined_call_operand.vmem [shape: f32[2,16,16,128], index: 5, kind: output, shape index: {}]  }
   0x1   :  { %s9065_s20 = smov 0   ;;  %s9067_s21 = smov 0  }
   0x2   :  { %s9069_s22 = smov 0  }
   0x3 LB: > { %s24_s23 = sadd.s32 1, %s9018_s20  ;;  %s27_s24 = sadd.s32 1, %s9022_s21  ;;  %s9026_s22 = sphi %s9069_s22, %s15_s22   ;;  %s9022_s21 = sphi %s9067_s21, %s11479_s21   ;;  %s9018_s20 = sphi %s9065_s20, %s11478_s20   ;;  %s9014_s19 = sphi %s9063_s19, %s11477_s19   ;;  %s9010_s18 = sphi %s9061_s18, %s11476_s18  }
   0x4   : > { %p25_p0 = scmp.ge.s32.totalorder %s24_s23, 2  ;;  %p7032_p1 = scmp.ge.s32.totalorder %s9026_s22, 1 }
   0x5   : > { %p201_p2 = scmp.lt.s32.totalorder %s9026_s22, 5 }
   0x6   : > { %s11481_s23 = smov (%p25_p0, %s24_s23), 0  ;;  %s11483_s24 = smov (!%p25_p0, %s27_s24), %s9022_s21 }
   0x7   : > { %p202_p3 = pnand %p7032_p1, %p201_p2  ;;  %p29_p4 = scmp.ge.s32.totalorder %s11483_s24, 2 }
   0x9   : > { %s11485_s24 = smov (%p29_p4, %s11483_s24), 0  ;;  %205 = sbr.rel (%p202_p3) target bundleno = 876 (0x36c), region = 40 }
   0xe   : > { %v8790_v0 = vld [vmem:[%s11397_s1 + $0x78] sm:$0xff]   ;;  %p234_p5 = scmp.lt.s32.totalorder %s9014_s19, 1  ;;  %s7034_s29 = sshll.u32 %s9010_s18, 3  ;;  %v8792_v2 = vld [vmem:[%s11397_s1 + $0x70] sm:$0xff]   ;;  %v8794_v4 = vld [vmem:[%s11397_s1 + $0x68] sm:$0xff]   ;;  %v11406_v37 = vmov 0 }
   0xf   : > { %v8791_v1 = vld [vmem:[%s11397_s1 + $0x38] sm:$0xff]   ;;  %8134 = vmatprep.subr.bf16.mxu0 %v8790_v0  ;;  %v8793_v3 = vld [vmem:[%s11397_s1 + $0x30] sm:$0xff]   ;;  %p242_p6 = scmp.lt.s32.totalorder %s7034_s29, 15  ;;  %v8795_v5 = vld [vmem:[%s11397_s1 + $0x28] sm:$0xff]   ;;  %s7807_s30 = smul.u32 96, %s9010_s18  ;;  %vm1013_vm3 = vcmask 1042432  }
  0x10   : > { %s11487_s19 = smov (!%p234_p5, %s9014_s19), 1  ;;  %8170 = vmatprep.subr.bf16.mxu1 %v8791_v1  ;;  %8135 = vmatpush3.bf16.msra.mxu0 %v8790_v0  ;;  %v8796_v6 = vld [vmem:[%s11397_s1 + $0x60] sm:$0xff]   ;;  %v8798_v8 = vld [vmem:[%s11397_s1 + $0x58] sm:$0xff]   ;;  %v8800_v10 = vld [vmem:[%s11397_s1 + $0x50] sm:$0xff]   ;;  %vm301_vm0 = vsmask.f32 3328 }
  0x11   : > { %8171 = vmatpush3.bf16.msra.mxu1 %v8791_v1  ;;  %8136 = vmatprep.subr.bf16.mxu0 %v8792_v2  ;;  %s11489_s29 = smov (!%p242_p6, %s7034_s29), 15  ;;  %s8746_s13 = smul.u32 240, %s11487_s19  ;;  %v8797_v7 = vld [vmem:[%s11397_s1 + $0x20] sm:$0xff]   ;;  %v8799_v9 = vld [vmem:[%s11397_s1 + $0x18] sm:$0xff]   ;;  %v8801_v11 = vld [vmem:[%s11397_s1 + $0x10] sm:$0xff]   ;;  %vm1014_vm4 = vcmask 1046532  }
  0x12   : > { %8172 = vmatprep.subr.bf16.mxu1 %v8793_v3  ;;  %s7036_s14 = sshll.u32 %s11487_s19, 5  ;;  %s7035_s17 = sshll.u32 %s11489_s29, 1  ;;  %vm302_vm1 = vsmask.f32 7440  ;;  %v8802_v17 = vld [vmem:[%s11397_s1 + $0x48] sm:$0xff]   ;;  %v8804_v36 = vld [vmem:[%s11397_s1 + $0x40] sm:$0xff]   ;;  %vm9404_vm5 = vmor %vm1013_vm3, %vm1014_vm4 }
  0x13   : > { %s246_s27 = sadd.s32 %s7036_s14, %s7035_s17  ;;  %s238_s19 = scalar_lea.vmem %s11396_s0, %s8746_s13  ;;  %v8803_v31 = vld [vmem:[%s11397_s1 + $0x8] sm:$0xff]   ;;  %vm9177_vm2 = vmor %vm301_vm0, %vm302_vm1  ;;  %v8805_v51 = vld [vmem:[%s11397_s1] sm:$0xff]   ;;  %vm3940_vm6 = vcmask 1043456   ;;  %vm3941_vm7 = vsmask.f32 7938  ;;  %vm3947_vm10 = vcmask 1040384  }
  0x14   : > { %8137 = vmatpush3.bf16.msra.mxu0 %v8792_v2  ;;  %s7037_s28 = sshll.u32 %s246_s27, 3  ;;  %s9133_s15 = scalar_lea.vmem %s238_s19, %s7807_s30  ;;  %v11407_v37 = vsel %vm9177_vm2, 4294967295, %v11406_v37  ;;  %v8808_v2 = vld [vmem:[%s11397_s1 + $0xb8] sm:$0xff]   ;;  %vm3737_vm8 = vsmask.f32 256  ;;  %vm10395_vm11 = vmand %vm3940_vm6, %vm3941_vm7 }
  0x15   : > { %8173 = vmatpush3.bf16.msra.mxu1 %v8793_v3  ;;  %8138 = vmatprep.subr.bf16.mxu0 %v8794_v4  ;;  %s9125_s10 = scalar_lea.vmem %s11401_s5, %s7037_s28  ;;  %v255_v12 = vld [vmem:[%s9133_s15] sm:$0xf]  ;;  %v9143_v13 = vld [vmem:[%s9133_s15 + $0x4] sm:$0xf]  ;;  %v9146_v14 = vld [vmem:[%s9133_s15 + $0x8] sm:$0x1] }
  0x16   : > { %8174 = vmatprep.subr.bf16.mxu1 %v8795_v5  ;;  %v305_v15 = vshrl.u32 %v255_v12, 16  ;;  %v308_v16 = vshll.u32 %v255_v12, 16  ;;  %v314_v18 = vshll.u32 %v9143_v13, 16  ;;  %v318_v19 = vshrl.u32 %v9143_v13, 16  ;;  %v9155_v21 = vld [vmem:[%s9133_s15 + $0xc] sm:$0xf]  ;;  %vm10411_vm13 = vmand %vm3947_vm10, %vm3737_vm8 }
  0x17   : > { %v324_v20 = vshll.u32 %v9146_v14, 16  ;;  %v7075_v24 = vcombine.low %v255_v12, %v9143_v13  ;;  %v9159_v25 = vld [vmem:[%s9133_s15 + $0x10] sm:$0xf]  ;;  %v9162_v26 = vld [vmem:[%s9133_s15 + $0x14] sm:$0x1]  ;;  %v1021_v29 = vrot.slane %v9146_v14, 5 }
  0x18   : > { %8139 = vmatpush3.bf16.msra.mxu0 %v8794_v4  ;;  %v307_v22 = vrot.slane %v305_v15, 4  ;;  %v310_v23 = vrot.slane %v308_v16, 5  ;;  %v316_v27 = vrot.slane %v314_v18, 5  ;;  %v320_v28 = vrot.slane %v318_v19, 4  ;;  %11408 = vst [vmem:[#allocation3_spill] sm:$0xff] %v11407_v37  ;;  %v8813_v15 = vld [vmem:[%s11397_s1 + $0xf8] sm:$0xff]  }
  0x19   : > { %8175 = vmatpush3.bf16.msra.mxu1 %v8795_v5  ;;  %8140 = vmatprep.subr.bf16.mxu0 %v8796_v6  ;;  %v329_v30 = vshrl.u32 %v9155_v21, 16  ;;  %v332_v33 = vshll.u32 %v9155_v21, 16  ;;  %v338_v34 = vshll.u32 %v9159_v25, 16  ;;  %v342_v35 = vshrl.u32 %v9159_v25, 16  ;;  %v9185_v49 = vld [vmem:[%s9133_s15 + $0x18] sm:$0xf] }
  0x1a   : > { %8176 = vmatprep.subr.bf16.mxu1 %v8797_v7  ;;  %v311_v32 = vor.u32 %v310_v23, %v307_v22  ;;  %8186 = vmatprep.mubr.bf16.mxu1 %v7075_v24  ;;  %v321_v38 = vor.u32 %v320_v28, %v316_v27  ;;  %v326_v39 = vrot.slane %v324_v20, 5  ;;  %v348_v41 = vshll.u32 %v9162_v26, 16  ;;  %v9188_v50 = vld [vmem:[%s9133_s15 + $0x1c] sm:$0xf]  ;;  %v9196_v55 = vld [vmem:[%s9133_s15 + $0x20] sm:$0x1] }
  0x1b   : > { %v331_v40 = vrot.slane %v329_v30, 4  ;;  %v334_v43 = vrot.slane %v332_v33, 5  ;;  %v340_v44 = vrot.slane %v338_v34, 5  ;;  %v344_v45 = vrot.slane %v342_v35, 4  ;;  %v9200_v57 = vld [vmem:[%s9133_s15 + $0x24] sm:$0xf] }
  0x1c   : > { %8141 = vmatpush3.bf16.msra.mxu0 %v8796_v6  ;;  %v312_v42 = vrot.slane %v311_v32, 4  ;;  %v322_v46 = vrot.slane %v321_v38, 4  ;;  %v350_v47 = vrot.slane %v348_v41, 5  ;;  %v7076_v48 = vcombine.low %v9155_v21, %v9159_v25  ;;  %v9208_v62 = vld [vmem:[%s9133_s15 + $0x28] sm:$0xf]  ;;  %v8814_v33 = vld [vmem:[%s11397_s1 + $0xf0] sm:$0xff]  }
  0x1d   : > { %8177 = vmatpush3.bf16.msra.mxu1 %v8797_v7  ;;  %8142 = vmatprep.subr.bf16.mxu0 %v8798_v8  ;;  %v335_v53 = vor.u32 %v334_v43, %v331_v40  ;;  %v345_v54 = vor.u32 %v344_v45, %v340_v44  ;;  %v353_v56 = vshrl.u32 %v9185_v49, 16  ;;  %v356_v59 = vshll.u32 %v9185_v49, 16  ;;  %v9214_v4 = vld [vmem:[%s9133_s15 + $0x2c] sm:$0x1]  ;;  %v9240_v34 = vld [vmem:[%s9133_s15 + $0x30] sm:$0xf] }
  0x1e   : > { %8178 = vmatprep.subr.bf16.mxu1 %v8799_v9  ;;  %v317_v52 = vsel %vm9177_vm2, %v312_v42, %v316_v27  ;;  %v327_v58 = vsel %vm9177_vm2, %v322_v46, %v326_v39  ;;  %v362_v60 = vshll.u32 %v9188_v50, 16  ;;  %v366_v61 = vshrl.u32 %v9188_v50, 16  ;;  %v9243_v39 = vld [vmem:[%s9133_s15 + $0x34] sm:$0xf]  ;;  %p7506_p7 = scmp.ne.s32.totalorder %s9010_s18, 0 }
  0x1f   : > { %v7057_v63 = vcombine.low %v317_v52, %v327_v58  ;;  %v336_v0 = vrot.slane %v335_v53, 4  ;;  %v346_v1 = vrot.slane %v345_v54, 4  ;;  %v355_v3 = vrot.slane %v353_v56, 4  ;;  %v9261_v53 = vld [vmem:[%s9133_s15 + $0x3c] sm:$0xf] }
  0x20   : > { %8143 = vmatpush3.bf16.msra.mxu0 %v8798_v8  ;;  %v358_v5 = vrot.slane %v356_v59, 5  ;;  %v364_v6 = vrot.slane %v362_v60, 5  ;;  %v368_v7 = vrot.slane %v366_v61, 4  ;;  %v372_v8 = vshll.u32 %v9196_v55, 16  ;;  %v9267_v58 = vld [vmem:[%s9133_s15 + $0x40] sm:$0xf] }
  0x21   : > { %8179 = vmatpush3.bf16.msra.mxu1 %v8799_v9  ;;  %8144 = vmatprep.subr.bf16.mxu0 %v8800_v10  ;;  %v341_v9 = vsel %vm9177_vm2, %v336_v0, %v340_v44  ;;  %v377_v12 = vshrl.u32 %v9200_v57, 16  ;;  %v380_v23 = vshll.u32 %v9200_v57, 16  ;;  %v386_v24 = vshll.u32 %v9208_v62, 16  ;;  %v9251_v44 = vld [vmem:[%s9133_s15 + $0x38] sm:$0x1] }
  0x22   : > { %8180 = vmatprep.subr.bf16.mxu1 %v8801_v11  ;;  %8150 = vmatprep.mubr.bf16.mxu0 %v7057_v63  ;;  %v359_v18 = vor.u32 %v358_v5, %v355_v3  ;;  %v369_v19 = vor.u32 %v368_v7, %v364_v6  ;;  %v374_v20 = vrot.slane %v372_v8, 5  ;;  %v390_v27 = vshrl.u32 %v9208_v62, 16  ;;  %v9272_v63 = vld [vmem:[%s9133_s15 + $0x44] sm:$0x1]  ;;  %v8818_v7 = vld [vmem:[%s11397_s1 + $0xe8] sm:$0xff]  }
  0x23   : > { %v379_v22 = vrot.slane %v377_v12, 4  ;;  %v7078_v32 = vcombine.low %v9200_v57, %v9208_v62  ;;  %v382_v35 = vrot.slane %v380_v23, 5  ;;  %v401_v40 = vshrl.u32 %v9240_v34, 16 }
  0x24   : > { %8145 = vmatpush3.bf16.msra.mxu0 %v8800_v10  ;;  %v351_v10 = vsel %vm9177_vm2, %v346_v1, %v350_v47  ;;  %v360_v28 = vrot.slane %v359_v18, 4  ;;  %v370_v30 = vrot.slane %v369_v19, 4  ;;  %v392_v38 = vrot.slane %v390_v27, 4 }
  0x25   : > { %8181 = vmatpush3.bf16.msra.mxu1 %v8801_v11  ;;  %8146 = vmatprep.subr.bf16.mxu0 %v8802_v17  ;;  %v7077_v11 = vcombine.low %v9185_v49, %v9188_v50  ;;  %v7058_v16 = vcombine.low %v341_v9, %v351_v10  ;;  %v404_v45 = vshll.u32 %v9240_v34, 16  ;;  %v383_v47 = vor.u32 %v382_v35, %v379_v22  ;;  %v8820_v22 = vld [vmem:[%s11397_s1 + $0xe0] sm:$0xff]  }
  0x26   : > { %8182 = vmatprep.subr.bf16.mxu1 %v8803_v31  ;;  %v365_v41 = vsel %vm9177_vm2, %v360_v28, %v364_v6  ;;  %v375_v42 = vsel %vm9177_vm2, %v370_v30, %v374_v20  ;;  %v403_v52 = vrot.slane %v401_v40, 4  ;;  %v410_v56 = vshll.u32 %v9243_v39, 16  ;;  %v8816_v6 = vld [vmem:[%s11397_s1 + $0xa0] sm:$0xff]   ;;  %v9297_v30 = vld [vmem:[%s9133_s15 + $0x48] sm:$0xf] }
  0x27   : > { %v7059_v46 = vcombine.low %v365_v41, %v375_v42  ;;  %v406_v54 = vrot.slane %v404_v45, 5  ;;  %v414_v21 = vshrl.u32 %v9243_v39, 16  ;;  %v384_v59 = vrot.slane %v383_v47, 4  ;;  %v8819_v41 = vld [vmem:[%s11397_s1 + $0x98] sm:$0xff]  }
  0x28   : > { %8147 = vmatpush3.bf16.msra.mxu0 %v8802_v17  ;;  %v8809_v17 = vld [vmem:[%s11397_s1 + $0xb0] sm:$0xff]   ;;  %v7079_v61 = vcombine.low %v9240_v34, %v9243_v39  ;;  %v425_v0 = vshrl.u32 %v9261_v53, 16  ;;  %v434_v18 = vshll.u32 %v9267_v58, 16  ;;  %v444_v20 = vshll.u32 %v9272_v63, 16 }
  0x29   : > { %8183 = vmatpush3.bf16.msra.mxu1 %v8803_v31  ;;  %8148 = vmatprep.subr.bf16.mxu0 %v8804_v36  ;;  %v396_v31 = vshll.u32 %v9214_v4, 16  ;;  %v407_v1 = vor.u32 %v406_v54, %v403_v52  ;;  %v416_v3 = vrot.slane %v414_v21, 4  ;;  %v7080_v28 = vcombine.low %v9261_v53, %v9267_v58  ;;  %v8824_v52 = vld [vmem:[%s11397_s1 + $0xd8] sm:$0xff]  }
  0x2a   : > { %8184 = vmatprep.subr.bf16.mxu1 %v8805_v51  ;;  %v427_v10 = vrot.slane %v425_v0, 4  ;;  %v436_v27 = vrot.slane %v434_v18, 5  ;;  %v446_v35 = vrot.slane %v444_v20, 5  ;;  %v452_v57 = vshll.u32 %v9297_v30, 16  ;;  %v8826_v18 = vld [vmem:[%s11397_s1 + $0xd0] sm:$0xff]  }
  0x2b   : > { %v398_v43 = vrot.slane %v396_v31, 5  ;;  %v9300_v31 = vld [vmem:[%s9133_s15 + $0x4c] sm:$0xf]  ;;  %vm3738_vm9 = vsmask.f32 4368 }
  0x2c   : > { %8149 = vmatpush3.bf16.msra.mxu0 %v8804_v36  ;;  %v388_v36 = vrot.slane %v386_v24, 5  ;;  %v462_v42 = vshrl.u32 %v9300_v31, 16  ;;  %vm10405_vm12 = vmor %vm3737_vm8, %vm3738_vm9 }
  0x2d   : > { %8185 = vmatpush3.bf16.msra.mxu1 %v8805_v51  ;;  %8206 = vmatprep.subr.bf16.mxu0 %v8808_v2  ;;  %v8812_v51 = vld [vmem:[%s11397_s1 + $0xa8] sm:$0xff]  }
  0x2e   : > { %8242 = vmatprep.subr.bf16.mxu1 %v8813_v15  ;;  %v393_v49 = vor.u32 %v392_v38, %v388_v36  ;;  %v389_v8 = vsel %vm9177_vm2, %v384_v59, %v388_v36  ;;  %v9306_v36 = vld [vmem:[%s9133_s15 + $0x50] sm:$0x1]  ;;  %v449_v38 = vshrl.u32 %v9297_v30, 16 }
  0x2f   : > { %8151 = vmatmul.mubr.bf16.vlgmr.msra.gmra.mxu0 %v7058_v16  ;;  %v468_v21 = vshll.u32 %v9306_v36, 16 }
  0x30   : > { %8187 = vmatmul.mubr.bf16.vlgmr.msra.gmra.mxu1 %v7076_v48  ;;  %8207 = vmatpush3.bf16.msra.mxu0 %v8808_v2  ;;  %v420_v48 = vshll.u32 %v9251_v44, 16  ;;  %v394_v60 = vrot.slane %v393_v49, 4  ;;  %v412_v2 = vrot.slane %v410_v56, 5  ;;  %v451_v49 = vrot.slane %v449_v38, 4 }
  0x31   : > { %8208 = vmatprep.subr.bf16.mxu0 %v8809_v17  ;;  %8190 = vmatprep.mubr.bf16.mxu1 %v7077_v11  ;;  %v428_v11 = vshll.u32 %v9261_v53, 16  ;;  %v454_v53 = vrot.slane %v452_v57, 5  ;;  %v464_v56 = vrot.slane %v462_v42, 4  ;;  %v9370_v42 = vld [vmem:[%s9133_s15 + $0x70] sm:$0xf] }
  0x32   : > { %8154 = vmatprep.mubr.bf16.mxu0 %v7059_v46  ;;  %8243 = vmatpush3.bf16.msra.mxu1 %v8813_v15  ;;  %v422_v5 = vrot.slane %v420_v48, 5  ;;  %v399_v9 = vsel %vm9177_vm2, %v394_v60, %v398_v43  ;;  %v408_v15 = vrot.slane %v407_v1, 4  ;;  %v417_v16 = vor.u32 %v416_v3, %v412_v2  ;;  %v9318_v43 = vld [vmem:[%s9133_s15 + $0x54] sm:$0xf]  ;;  %v9328_v48 = vld [vmem:[%s9133_s15 + $0x5c] sm:$0x1] }
  0x33   : > { %8244 = vmatprep.subr.bf16.mxu1 %v8814_v33  ;;  %v7060_v12 = vcombine.low %v389_v8, %v399_v9  ;;  %v430_v19 = vrot.slane %v428_v11, 5  ;;  %v473_v0 = vshrl.u32 %v9318_v43, 16  ;;  %v455_v1 = vor.u32 %v454_v53, %v451_v49  ;;  %v9375_v49 = vld [vmem:[%s9133_s15 + $0x74] sm:$0x1] }
  0x34   : > { %8209 = vmatpush3.bf16.msra.mxu0 %v8809_v17  ;;  %v438_v17 = vshrl.u32 %v9267_v58, 16  ;;  %v413_v23 = vsel %vm9177_vm2, %v408_v15, %v412_v2  ;;  %v418_v24 = vrot.slane %v417_v16, 4  ;;  %v470_v3 = vrot.slane %v468_v21, 5 }
  0x35   : > { %8210 = vmatprep.subr.bf16.mxu0 %v8812_v51  ;;  %v475_v8 = vrot.slane %v473_v0, 4  ;;  %v492_v20 = vshll.u32 %v9328_v48, 16 }
  0x36   : > { %8245 = vmatpush3.bf16.msra.mxu1 %v8814_v33  ;;  %v431_v33 = vor.u32 %v430_v19, %v427_v10  ;;  %v440_v34 = vrot.slane %v438_v17, 4  ;;  %v423_v40 = vsel %vm9177_vm2, %v418_v24, %v422_v5  ;;  %v476_v5 = vshll.u32 %v9318_v43, 16  ;;  %v8823_v10 = vld [vmem:[%s11397_s1 + $0x90] sm:$0xff]  }
  0x37   : > { %8155 = vmatmul.mubr.bf16.gmra.mxu0 %v7060_v12  ;;  %8246 = vmatprep.subr.bf16.mxu1 %v8818_v7  ;;  %v7061_v45 = vcombine.low %v413_v23, %v423_v40  ;;  %v456_v12 = vrot.slane %v455_v1, 4  ;;  %v8825_v23 = vld [vmem:[%s11397_s1 + $0x88] sm:$0xff]  }
  0x38   : > { %8191 = vmatmul.mubr.bf16.gmra.mxu1 %v7078_v32  ;;  %8211 = vmatpush3.bf16.msra.mxu0 %v8812_v51  ;;  %v458_v32 = vshll.u32 %v9300_v31, 16  ;;  %v432_v46 = vrot.slane %v431_v33, 4  ;;  %v441_v47 = vor.u32 %v440_v34, %v436_v27  ;;  %v9321_v51 = vld [vmem:[%s9133_s15 + $0x58] sm:$0xf]  ;;  %v478_v16 = vrot.slane %v476_v5, 5  ;;  %v8830_v5 = vld [vmem:[%s11397_s1 + $0x80] sm:$0xff]  }
  0x39   : > { %8194 = vmatprep.mubr.bf16.mxu1 %v7079_v61  ;;  %8212 = vmatprep.subr.bf16.mxu0 %v8816_v6  ;;  %v7081_v61 = vcombine.low %v9297_v30, %v9300_v31  ;;  %v482_v9 = vshll.u32 %v9321_v51, 16  ;;  %v271_v30 = vld [vmem:[%s9133_s15 + $0x60] sm:$0xf]  ;;  %v9358_v33 = vld [vmem:[%s9133_s15 + $0x64] sm:$0xf] }
  0x3a   : > { %8247 = vmatpush3.bf16.msra.mxu1 %v8818_v7  ;;  %v460_v54 = vrot.slane %v458_v32, 5  ;;  %8158 = vmatprep.mubr.bf16.mxu0 %v7061_v45  ;;  %v437_v59 = vsel %vm9177_vm2, %v432_v46, %v436_v27  ;;  %v442_v60 = vrot.slane %v441_v47, 4  ;;  %v9361_v34 = vld [vmem:[%s9133_s15 + $0x68] sm:$0x1]  ;;  %v497_v57 = vshrl.u32 %v271_v30, 16 }
  0x3b   : > { %8248 = vmatprep.subr.bf16.mxu1 %v8820_v22  ;;  %v484_v19 = vrot.slane %v482_v9, 5  ;;  %v9367_v32 = vld [vmem:[%s9133_s15 + $0x6c] sm:$0xf]  ;;  %v500_v45 = vshll.u32 %v271_v30, 16  ;;  %v506_v46 = vshll.u32 %v9358_v33, 16  ;;  %v510_v47 = vshrl.u32 %v9358_v33, 16 }
  0x3c   : > { %8213 = vmatpush3.bf16.msra.mxu0 %v8816_v6  ;;  %v465_v2 = vor.u32 %v464_v56, %v460_v54  ;;  %v447_v7 = vsel %vm9177_vm2, %v442_v60, %v446_v35  ;;  %v486_v6 = vshrl.u32 %v9321_v51, 16  ;;  %v461_v24 = vsel %vm9177_vm2, %v456_v12, %v460_v54  ;;  %v8829_v35 = vld [vmem:[%s11397_s1 + $0xc8] sm:$0xff]  }
  0x3d   : > { %8214 = vmatprep.subr.bf16.mxu0 %v8819_v41  ;;  %v7062_v11 = vcombine.low %v437_v59, %v447_v7  ;;  %v499_v54 = vrot.slane %v497_v57, 4  ;;  %v7083_v56 = vcombine.low %v271_v30, %v9358_v33  ;;  %v502_v59 = vrot.slane %v500_v45, 5 }
  0x3e   : > { %8249 = vmatpush3.bf16.msra.mxu1 %v8820_v22  ;;  %v466_v15 = vrot.slane %v465_v2, 4  ;;  %v488_v17 = vrot.slane %v486_v6, 4  ;;  %v7082_v22 = vcombine.low %v9318_v43, %v9321_v51  ;;  %v508_v60 = vrot.slane %v506_v46, 5 }
  0x3f   : > { %8250 = vmatprep.subr.bf16.mxu1 %v8824_v52  ;;  %8159 = vmatmul.mubr.bf16.gmra.mxu0 %v7062_v11  ;;  %v521_v2 = vshrl.u32 %v9367_v32, 16  ;;  %v530_v6 = vshll.u32 %v9370_v42, 16 }
  0x40   : > { %8195 = vmatmul.mubr.bf16.gmra.mxu1 %v7080_v28  ;;  %8215 = vmatpush3.bf16.msra.mxu0 %v8819_v41  ;;  %v471_v27 = vsel %vm9177_vm2, %v466_v15, %v470_v3  ;;  %v479_v28 = vor.u32 %v478_v16, %v475_v8  ;;  %v489_v40 = vor.u32 %v488_v17, %v484_v19  ;;  %v494_v41 = vrot.slane %v492_v20, 5  ;;  %v983_v20 = vld [vmem:[%s9133_s15] sm:$0xe] }
  0x41   : > { %8198 = vmatprep.mubr.bf16.mxu1 %v7081_v61  ;;  %v7063_v38 = vcombine.low %v461_v24, %v471_v27  ;;  %8216 = vmatprep.subr.bf16.mxu0 %v8823_v10  ;;  %v512_v61 = vrot.slane %v510_v47, 4  ;;  %v524_v3 = vshll.u32 %v9367_v32, 16  ;;  %v503_v8 = vor.u32 %v502_v59, %v499_v54  ;;  %v9398_v24 = vld [vmem:[%s11397_s1 + $0x138] sm:$0xff]  }
  0x42   : > { %8251 = vmatpush3.bf16.msra.mxu1 %v8824_v52  ;;  %v480_v43 = vrot.slane %v479_v28, 4  ;;  %v490_v53 = vrot.slane %v489_v40, 4  ;;  %v516_v52 = vshll.u32 %v9361_v34, 16  ;;  %v523_v11 = vrot.slane %v521_v2, 4 }
  0x43   : > { %8252 = vmatprep.subr.bf16.mxu1 %v8826_v18  ;;  %8162 = vmatprep.mubr.bf16.mxu0 %v7063_v38  ;;  %v513_v9 = vor.u32 %v512_v61, %v508_v60  ;;  %v526_v12 = vrot.slane %v524_v3, 5  ;;  %v534_v15 = vshrl.u32 %v9370_v42, 16  ;;  %v540_v16 = vshll.u32 %v9375_v49, 16  ;;  %v984_v38 = vld [vmem:[%s9133_s15 + $0xc] sm:$0xe] }
  0x44   : > { %8217 = vmatpush3.bf16.msra.mxu0 %v8823_v10  ;;  %v485_v21 = vsel %vm9177_vm2, %v480_v43, %v484_v19  ;;  %v495_v0 = vsel %vm9177_vm2, %v490_v53, %v494_v41  ;;  %v518_v1 = vrot.slane %v516_v52, 5  ;;  %v8831_v10 = vld [vmem:[%s11397_s1 + $0xc0] sm:$0xff]   ;;  %v532_v17 = vrot.slane %v530_v6, 5  ;;  %v8833_v43 = vld [vmem:[%s9133_s15 + $0xc] sm:$0xff]   ;;  %v985_v61 = vld [vmem:[%s9133_s15 + $0x18] sm:$0xe] }
  0x45   : > { %8218 = vmatprep.subr.bf16.mxu0 %v8825_v23  ;;  %v7064_v7 = vcombine.low %v485_v21, %v495_v0  ;;  %v514_v19 = vrot.slane %v513_v9, 4  ;;  %v7084_v27 = vcombine.low %v9367_v32, %v9370_v42  ;;  %v11409_v28 = vmov 0  ;;  %v986_v3 = vld [vmem:[%s9133_s15 + $0x24] sm:$0xe]  ;;  %v8834_v9 = vld [vmem:[%s9133_s15 + $0x18] sm:$0xff]  }
  0x46   : > { %8253 = vmatpush3.bf16.msra.mxu1 %v8826_v18  ;;  %v504_v18 = vrot.slane %v503_v8, 4  ;;  %v11410_v28 = vsel %vm9404_vm5, 4294967295, %v11409_v28  ;;  %v7093_v30 = vrot.slane %v983_v20, 9  ;;  %v542_v57 = vrot.slane %v540_v16, 5  ;;  %v987_v6 = vld [vmem:[%s9133_s15 + $0x30] sm:$0xe] }
  0x47   : > { %8254 = vmatprep.subr.bf16.mxu1 %v8829_v35  ;;  %8163 = vmatmul.mubr.bf16.gmra.mxu0 %v7064_v7  ;;  %11411 = vst [vmem:[#allocation4_spill] sm:$0xff] %v11410_v28  ;;  %v519_v41 = vsel %vm9177_vm2, %v514_v19, %v518_v1  ;;  %v1018_v32 = vrot.slane %v9143_v13, 5  ;;  %v1025_v47 = vrot.slane %v9159_v25, 5  ;;  %v1032_v52 = vrot.slane %v9188_v50, 5  ;;  %v8835_v20 = vld [vmem:[%s11397_s1 + $0x130] sm:$0xff]  }
  0x48   : > { %8199 = vmatmul.mubr.bf16.gmra.mxu1 %v7082_v22  ;;  %8219 = vmatpush3.bf16.msra.mxu0 %v8825_v23  ;;  %v527_v22 = vor.u32 %v526_v12, %v523_v11  ;;  %v536_v23 = vrot.slane %v534_v15, 4  ;;  %v509_v40 = vsel %vm9177_vm2, %v504_v18, %v508_v60  ;;  %v1028_v21 = vrot.slane %v9162_v26, 5  ;;  %v8839_v26 = vld [vmem:[%s11397_s1 + $0x178] sm:$0xff]   ;;  %v8836_v11 = vld [vmem:[%s9133_s15 + $0x24] sm:$0xff]   ;;  %v8840_v18 = vld [vmem:[%s11397_s1 + $0x170] sm:$0xff]  }
  0x49   : > { %8202 = vmatprep.mubr.bf16.mxu1 %v7083_v56  ;;  %8220 = vmatprep.subr.bf16.mxu0 %v8830_v5  ;;  %v1019_v53 = vsel %vm9404_vm5, %v7093_v30, %v1018_v32  ;;  %v1020_v54 = vrot.slane %v1018_v32, 4  ;;  %v7094_v59 = vrot.slane %v984_v38, 9  ;;  %v1027_v60 = vrot.slane %v1025_v47, 4  ;;  %v8837_v38 = vld [vmem:[%s9133_s15 + $0x30] sm:$0xff]  }
  0x4a   : > { %8255 = vmatpush3.bf16.msra.mxu1 %v8829_v35  ;;  %v7065_v35 = vcombine.low %v509_v40, %v519_v41  ;;  %v528_v45 = vrot.slane %v527_v22, 4  ;;  %v537_v46 = vor.u32 %v536_v23, %v532_v17  ;;  %v1034_v1 = vrot.slane %v1032_v52, 4  ;;  %v988_v22 = vld [vmem:[%s9133_s15 + $0x3c] sm:$0xe]  ;;  %v8844_v40 = vld [vmem:[%s11397_s1 + $0x168] sm:$0xff]  }
  0x4b   : > { %8256 = vmatprep.subr.bf16.mxu1 %v8831_v10  ;;  %v1022_v25 = vsel %vm9404_vm5, %v1020_v54, %v1021_v29  ;;  %v7095_v2 = vrot.slane %v985_v61, 9  ;;  %v1035_v29 = vrot.slane %v9196_v55, 5  ;;  %v1026_v7 = vsel %vm9404_vm5, %v7094_v59, %v1025_v47  ;;  %v990_v54 = vld [vmem:[%s9133_s15 + $0x54] sm:$0xe] }
  0x4c   : > { %8221 = vmatpush3.bf16.msra.mxu0 %v8830_v5  ;;  %8166 = vmatprep.mubr.bf16.mxu0 %v7065_v35  ;;  %v533_v13 = vsel %vm9177_vm2, %v528_v45, %v532_v17  ;;  %v538_v56 = vrot.slane %v537_v46, 4  ;;  %v7119_v0 = vcombine.low %v1019_v53, %v1022_v25  ;;  %v1039_v5 = vrot.slane %v9208_v62, 5  ;;  %v989_v35 = vld [vmem:[%s9133_s15 + $0x48] sm:$0xe] }
  0x4d   : > { %8278 = vmatprep.subr.bf16.mxu0 %v9398_v24  ;;  %v1029_v8 = vsel %vm9404_vm5, %v1027_v60, %v1028_v21  ;;  %v1036_v55 = vsel %vm9404_vm5, %v1034_v1, %v1035_v29  ;;  %v1046_v62 = vrot.slane %v9243_v39, 5  ;;  %v7096_v12 = vrot.slane %v986_v3, 9  ;;  %v8841_v21 = vld [vmem:[%s11397_s1 + $0x120] sm:$0xff]   ;;  %v992_v29 = vld [vmem:[%s9133_s15 + $0x6c] sm:$0xe] }
  0x4e   : > { %8257 = vmatpush3.bf16.msra.mxu1 %v8831_v10  ;;  %v543_v50 = vsel %vm9177_vm2, %v538_v56, %v542_v57  ;;  %v1033_v10 = vsel %vm9404_vm5, %v7095_v2, %v1032_v52  ;;  %v1041_v15 = vrot.slane %v1039_v5, 4  ;;  %v1042_v16 = vrot.slane %v9214_v4, 5 }
  0x4f   : > { %v7066_v14 = vcombine.low %v533_v13, %v543_v50  ;;  %8314 = vmatprep.subr.bf16.mxu1 %v8839_v26  ;;  %v7097_v19 = vrot.slane %v987_v6, 9  ;;  %v7120_v17 = vcombine.low %v1026_v7, %v1029_v8  ;;  %v7121_v23 = vcombine.low %v1033_v10, %v1036_v55 }
  0x50   : > { %8203 = vmatmul.mubr.bf16.gmra.mxu1 %v7084_v27  ;;  %v1049_v39 = vrot.slane %v9251_v44, 5  ;;  %v1053_v27 = vrot.slane %v9267_v58, 5  ;;  %v1048_v4 = vrot.slane %v1046_v62, 4  ;;  %v1060_v30 = vrot.slane %v9300_v31, 5  ;;  %v8838_v44 = vld [vmem:[%s11397_s1 + $0x128] sm:$0xff]  }
  0x51   : > { %8258 = vmatprep.mubr.bf16.mxu1 %v8833_v43  ;;  %8167 = vmatmul.mubr.bf16.gmra.mxu0 %v7066_v14  ;;  %v1040_v41 = vsel %vm9404_vm5, %v7096_v12, %v1039_v5  ;;  %v1056_v58 = vrot.slane %v9272_v63, 5  ;;  %v1043_v31 = vsel %vm9404_vm5, %v1041_v15, %v1042_v16  ;;  %v7098_v57 = vrot.slane %v988_v22, 9  ;;  %v8842_v43 = vld [vmem:[%s9133_s15 + $0x3c] sm:$0xff]   ;;  %v8847_v14 = vld [vmem:[%s9133_s15 + $0x54] sm:$0xff]  }
  0x52   : > { %8222 = vmatprep.mubr.bf16.mxu0 %v7119_v0  ;;  %v1055_v32 = vrot.slane %v1053_v27, 4  ;;  %v1063_v45 = vrot.slane %v9306_v36, 5  ;;  %v1047_v46 = vsel %vm9404_vm5, %v7097_v19, %v1046_v62  ;;  %v1050_v63 = vsel %vm9404_vm5, %v1048_v4, %v1049_v39  ;;  %v8845_v0 = vld [vmem:[%s11397_s1 + $0x118] sm:$0xff]   ;;  %v8848_v16 = vld [vmem:[%s11397_s1 + $0x110] sm:$0xff]  }
  0x53   : > { %v1062_v47 = vrot.slane %v1060_v30, 4  ;;  %v1067_v53 = vrot.slane %v9321_v51, 5  ;;  %v7122_v52 = vcombine.low %v1040_v41, %v1043_v31  ;;  %v7099_v36 = vrot.slane %v989_v35, 9  ;;  %v9542_v19 = vld [vmem:[%s9133_s15 + $0x10] sm:$0xf] }
  0x54   : > { %v1074_v13 = vrot.slane %v9358_v33, 5  ;;  %v7123_v56 = vcombine.low %v1047_v46, %v1050_v63  ;;  %v1070_v25 = vrot.slane %v9328_v48, 5  ;;  %v7100_v51 = vrot.slane %v990_v54, 9  ;;  %v8843_v33 = vld [vmem:[%s9133_s15 + $0x48] sm:$0xff]   ;;  %v7196_v31 = vld [vmem:[%s9133_s15 + $0x18] sm:$0xf] }
  0x55   : > { %v1069_v59 = vrot.slane %v1067_v53, 4  ;;  %v1054_v60 = vsel %vm9404_vm5, %v7098_v57, %v1053_v27  ;;  %v1077_v61 = vrot.slane %v9361_v34, 5  ;;  %v1081_v50 = vrot.slane %v9370_v42, 5  ;;  %v8850_v34 = vld [vmem:[%s11397_s1 + $0x158] sm:$0xff]   ;;  %v991_v42 = vld [vmem:[%s9133_s15 + $0x60] sm:$0xe] }
  0x56   : > { %v1057_v48 = vsel %vm9404_vm5, %v1055_v32, %v1056_v58  ;;  %v1061_v1 = vsel %vm9404_vm5, %v7099_v36, %v1060_v30  ;;  %v1076_v2 = vrot.slane %v1074_v13, 4  ;;  %v7101_v3 = vrot.slane %v991_v42, 9  ;;  %v8851_v30 = vld [vmem:[%s11397_s1 + $0x108] sm:$0xff]   ;;  %v7197_v57 = vld [vmem:[%s9133_s15 + $0x1c] sm:$0xf]  ;;  %v8857_v63 = vld [vmem:[%s11397_s1 + $0x140] sm:$0xff]  }
  0x57   : > { %v7102_v5 = vrot.slane %v992_v29, 9  ;;  %v1083_v7 = vrot.slane %v1081_v50, 4  ;;  %v1084_v8 = vrot.slane %v9375_v49, 5  ;;  %v9512_v10 = vsel %vm9404_vm5, %v7100_v51, %v1067_v53  ;;  %v8852_v49 = vld [vmem:[%s11397_s1 + $0x150] sm:$0xff]   ;;  %v9567_v46 = vld [vmem:[%s9133_s15 + $0x20] sm:$0x1] }
  0x58   : > { %8259 = vmatmul.mubr.bf16.vlgmr.msra.gmra.mxu1 %v8834_v9  ;;  %v7124_v9 = vcombine.low %v1054_v60, %v1057_v48  ;;  %v9516_v55 = vsel %vm9404_vm5, %v1069_v59, %v1070_v25  ;;  %v9527_v62 = vsel %vm9404_vm5, %v7101_v3, %v1074_v13  ;;  %v1646_v39 = vshll.u32 %v9542_v19, 16  ;;  %v8853_v41 = vld [vmem:[%s9133_s15 + $0x6c] sm:$0xff]  }
  0x59   : > { %8262 = vmatprep.mubr.bf16.mxu1 %v8836_v11  ;;  %8315 = vmatpush3.bf16.msra.mxu1 %v8839_v26  ;;  %v1064_v26 = vsel %vm9404_vm5, %v1062_v47, %v1063_v45  ;;  %v9523_v11 = vsel %vm9404_vm5, %v1076_v2, %v1077_v61  ;;  %v9531_v12 = vsel %vm9404_vm5, %v7102_v5, %v1081_v50  ;;  %v1650_v27 = vshrl.u32 %v9542_v19, 16 }
  0x5a   : > { %8316 = vmatprep.subr.bf16.mxu1 %v8840_v18  ;;  %8223 = vmatmul.mubr.bf16.vlgmr.msra.gmra.mxu0 %v7120_v17  ;;  %v7125_v6 = vcombine.low %v1061_v1, %v1064_v26  ;;  %v9535_v15 = vsel %vm9404_vm5, %v1083_v7, %v1084_v8  ;;  %v8849_v17 = vld [vmem:[%s9133_s15 + $0x60] sm:$0xff]   ;;  %v7126_v4 = vcombine.low %v9512_v10, %v9516_v55  ;;  %v1648_v35 = vrot.slane %v1646_v39, 5  ;;  %v8854_v8 = vld [vmem:[%s9133_s15 + $0x78] sm:$0xff]  }
  0x5b   : > { %8279 = vmatpush3.bf16.msra.mxu0 %v9398_v24  ;;  %8226 = vmatprep.mubr.bf16.mxu0 %v7121_v23  ;;  %v8846_v24 = vld [vmem:[%s11397_s1 + $0x160] sm:$0xff]   ;;  %v1652_v45 = vrot.slane %v1650_v27, 4  ;;  %v1661_v47 = vshrl.u32 %v7196_v31, 16  ;;  %v1664_v53 = vshll.u32 %v7196_v31, 16  ;;  %v1670_v54 = vshll.u32 %v7197_v57, 16  ;;  %v9589_v10 = vld [vmem:[%s11397_s1 + $0x1b8] sm:$0xff]  }
  0x5c   : > { %8280 = vmatprep.subr.bf16.mxu0 %v8835_v20  ;;  %v1674_v13 = vshrl.u32 %v7197_v57, 16  ;;  %v8856_v1 = vld [vmem:[%s11397_s1 + $0x100] sm:$0xff]   ;;  %v2163_v5 = vrot.slane %v7197_v57, 5  ;;  %v9623_v31 = vld [vmem:[%s9133_s15 + $0x38] sm:$0x1] }
  0x5d   : > { %8317 = vmatpush3.bf16.msra.mxu1 %v8840_v18  ;;  %v7193_v18 = vld [vmem:[%s9133_s15 + $0xc] sm:$0xf]  ;;  %v1653_v36 = vor.u32 %v1652_v45, %v1648_v35  ;;  %v1663_v25 = vrot.slane %v1661_v47, 4  ;;  %v1666_v51 = vrot.slane %v1664_v53, 5  ;;  %v1672_v59 = vrot.slane %v1670_v54, 5 }
  0x5e   : > { %8318 = vmatprep.subr.bf16.mxu1 %v8844_v40  ;;  %v1637_v22 = vshrl.u32 %v7193_v18, 16  ;;  %v1640_v23 = vshll.u32 %v7193_v18, 16  ;;  %v1676_v48 = vrot.slane %v1674_v13, 4  ;;  %v7199_v7 = vld [vmem:[%s9133_s15 + $0x24] sm:$0xf]  ;;  %v2165_v18 = vrot.slane %v2163_v5, 4 }
  0x5f   : > { %8281 = vmatpush3.bf16.msra.mxu0 %v8835_v20  ;;  %v9546_v20 = vld [vmem:[%s9133_s15 + $0x14] sm:$0x1]  ;;  %v1654_v50 = vrot.slane %v1653_v36, 4  ;;  %v1667_v26 = vor.u32 %v1666_v51, %v1663_v25  ;;  %v1685_v39 = vshrl.u32 %v7199_v7, 16  ;;  %v1688_v27 = vshll.u32 %v7199_v7, 16 }
  0x60   : > { %8263 = vmatmul.mubr.bf16.gmra.mxu1 %v8837_v38  ;;  %8282 = vmatprep.subr.bf16.mxu0 %v8838_v44  ;;  %v7127_v38 = vcombine.low %v9527_v62, %v9523_v11  ;;  %v1656_v58 = vshll.u32 %v9546_v20, 16  ;;  %v1639_v32 = vrot.slane %v1637_v22, 4  ;;  %v1677_v3 = vor.u32 %v1676_v48, %v1672_v59  ;;  %v9594_v11 = vld [vmem:[%s9133_s15 + $0x28] sm:$0xf]  ;;  %v7259_v45 = vld [vmem:[%s9133_s15 + $0x24] sm:$0xe] }
  0x61   : > { %8266 = vmatprep.mubr.bf16.mxu1 %v8842_v43  ;;  %8319 = vmatpush3.bf16.msra.mxu1 %v8844_v40  ;;  %v7128_v40 = vcombine.low %v9531_v12, %v9535_v15  ;;  %v1642_v43 = vrot.slane %v1640_v23, 5  ;;  %v1728_v25 = vshll.u32 %v9623_v31, 16  ;;  %v7205_v15 = vld [vmem:[%s9133_s15 + $0x3c] sm:$0xf] }
  0x62   : > { %8227 = vmatmul.mubr.bf16.gmra.mxu0 %v7122_v52  ;;  %8320 = vmatprep.subr.bf16.mxu1 %v8846_v24  ;;  %v1678_v62 = vrot.slane %v1677_v3, 4  ;;  %v8862_v3 = vld [vmem:[%s11397_s1 + $0x1f0] sm:$0xff]  }
  0x63   : > { %8283 = vmatpush3.bf16.msra.mxu0 %v8838_v44  ;;  %8230 = vmatprep.mubr.bf16.mxu0 %v7123_v56  ;;  %v8855_v44 = vld [vmem:[%s11397_s1 + $0x148] sm:$0xff]   ;;  %v1643_v52 = vor.u32 %v1642_v43, %v1639_v32  ;;  %v1680_v56 = vshll.u32 %v9567_v46, 16  ;;  %v1687_v43 = vrot.slane %v1685_v39, 4  ;;  %v1730_v48 = vrot.slane %v1728_v25, 5 }
  0x64   : > { %8284 = vmatprep.subr.bf16.mxu0 %v8841_v21 }
  0x65   : > { %8321 = vmatpush3.bf16.msra.mxu1 %v8846_v24  ;;  %v1658_v24 = vrot.slane %v1656_v58, 5  ;;  %v1644_v61 = vrot.slane %v1643_v52, 4  ;;  %v1694_v58 = vshll.u32 %v9594_v11, 16 }
  0x66   : > { %8322 = vmatprep.subr.bf16.mxu1 %v8850_v34 }
  0x67   : > { %8285 = vmatpush3.bf16.msra.mxu0 %v8841_v21  ;;  %v7257_v21 = vld [vmem:[%s9133_s15 + $0xc] sm:$0xe]  ;;  %v1649_v2 = vsel %vm9177_vm2, %v1644_v61, %v1648_v35  ;;  %v1659_v29 = vsel %vm9177_vm2, %v1654_v50, %v1658_v24  ;;  %v1690_v35 = vrot.slane %v1688_v27, 5  ;;  %v7260_v61 = vld [vmem:[%s9133_s15 + $0x30] sm:$0xe] }
  0x68   : > { %8267 = vmatmul.mubr.bf16.gmra.mxu1 %v8843_v33  ;;  %8286 = vmatprep.subr.bf16.mxu0 %v8845_v0  ;;  %v7267_v60 = vrot.slane %v7257_v21, 9  ;;  %v7258_v33 = vld [vmem:[%s9133_s15 + $0x18] sm:$0xe]  ;;  %v7208_v27 = vld [vmem:[%s9133_s15 + $0x48] sm:$0xf] }
  0x69   : > { %8270 = vmatprep.mubr.bf16.mxu1 %v8847_v14  ;;  %8323 = vmatpush3.bf16.msra.mxu1 %v8850_v34  ;;  %v2156_v14 = vrot.slane %v9542_v19, 5  ;;  %v2159_v34 = vrot.slane %v9546_v20, 5  ;;  %v7268_v42 = vrot.slane %v7258_v33, 9  ;;  %v2166_v19 = vrot.slane %v9567_v46, 5  ;;  %v9607_v20 = vld [vmem:[%s11397_s1 + $0x1f8] sm:$0xff]  }
  0x6a   : > { %8231 = vmatmul.mubr.bf16.gmra.mxu0 %v7124_v9  ;;  %8324 = vmatprep.subr.bf16.mxu1 %v8852_v49  ;;  %v7239_v9 = vcombine.low %v1649_v2, %v1659_v29  ;;  %v1696_v46 = vrot.slane %v1694_v58, 5  ;;  %v1691_v53 = vor.u32 %v1690_v35, %v1687_v43  ;;  %v7270_v29 = vrot.slane %v7260_v61, 9  ;;  %v9680_v58 = vld [vmem:[%s9133_s15 + $0x50] sm:$0x1] }
  0x6b   : > { %8287 = vmatpush3.bf16.msra.mxu0 %v8845_v0  ;;  %8234 = vmatprep.mubr.bf16.mxu0 %v7125_v6  ;;  %v1682_v0 = vrot.slane %v1680_v56, 5  ;;  %v1668_v6 = vrot.slane %v1667_v26, 4  ;;  %v2157_v55 = vsel %vm9404_vm5, %v7267_v60, %v2156_v14 }
  0x6c   : > { %8288 = vmatprep.subr.bf16.mxu0 %v8848_v16  ;;  %v1692_v51 = vrot.slane %v1691_v53, 4 }
  0x6d   : > { %8325 = vmatpush3.bf16.msra.mxu1 %v8852_v49  ;;  %v2158_v49 = vrot.slane %v2156_v14, 4  ;;  %v1673_v22 = vsel %vm9177_vm2, %v1668_v6, %v1672_v59  ;;  %v9653_v6 = vld [vmem:[%s9133_s15 + $0x40] sm:$0xf] }
  0x6e   : > { %8326 = vmatprep.subr.bf16.mxu1 %v8855_v44  ;;  %v1697_v26 = vsel %vm9177_vm2, %v1692_v51, %v1696_v46 }
  0x6f   : > { %8289 = vmatpush3.bf16.msra.mxu0 %v8848_v16  ;;  %v9598_v16 = vsel %vm9404_vm5, %v7268_v42, %v2163_v5  ;;  %v2160_v23 = vsel %vm9404_vm5, %v2158_v49, %v2159_v34 }
  0x70   : > { %8271 = vmatmul.mubr.bf16.gmra.mxu1 %v8849_v17  ;;  %8290 = vmatprep.subr.bf16.mxu0 %v8851_v30  ;;  %v9602_v17 = vld [vmem:[%s9133_s15 + $0x2c] sm:$0x1] }
  0x71   : > { %8274 = vmatprep.mubr.bf16.mxu1 %v8853_v41  ;;  %8327 = vmatpush3.bf16.msra.mxu1 %v8855_v44  ;;  %v7293_v41 = vcombine.low %v2157_v55, %v2160_v23  ;;  %v2167_v44 = vsel %vm9404_vm5, %v2165_v18, %v2166_v19  ;;  %v1704_v24 = vshll.u32 %v9602_v17, 16  ;;  %v2173_v12 = vrot.slane %v9602_v17, 5  ;;  %v8859_v55 = vld [vmem:[%s11397_s1 + $0x1b0] sm:$0xff]   ;;  %v8864_v19 = vld [vmem:[%s11397_s1 + $0x1e8] sm:$0xff]  }
  0x72   : > { %8235 = vmatmul.mubr.bf16.gmra.mxu0 %v7126_v4  ;;  %8328 = vmatprep.subr.bf16.mxu1 %v8857_v63  ;;  %v7202_v4 = vld [vmem:[%s9133_s15 + $0x30] sm:$0xf]  ;;  %v7294_v32 = vcombine.low %v9598_v16, %v2167_v44  ;;  %v1733_v16 = vshrl.u32 %v7205_v15, 16  ;;  %v1736_v18 = vshll.u32 %v7205_v15, 16  ;;  %v7211_v15 = vld [vmem:[%s9133_s15 + $0x54] sm:$0xf] }
  0x73   : > { %8238 = vmatprep.mubr.bf16.mxu0 %v7127_v38  ;;  %8291 = vmatpush3.bf16.msra.mxu0 %v8851_v30  ;;  %v9615_v30 = vld [vmem:[%s9133_s15 + $0x34] sm:$0xf]  ;;  %v1683_v38 = vsel %vm9177_vm2, %v1678_v62, %v1682_v0  ;;  %v1709_v47 = vshrl.u32 %v7202_v4, 16  ;;  %v1712_v54 = vshll.u32 %v7202_v4, 16  ;;  %v1706_v56 = vrot.slane %v1704_v24, 5 }
  0x74   : > { %8292 = vmatprep.subr.bf16.mxu0 %v8856_v1  ;;  %v9625_v57 = vcombine.low %v1673_v22, %v1683_v38  ;;  %v1718_v52 = vshll.u32 %v9615_v30, 16  ;;  %v1722_v36 = vshrl.u32 %v9615_v30, 16  ;;  %v7269_v0 = vrot.slane %v7259_v45, 9  ;;  %v9663_v62 = vld [vmem:[%s9133_s15 + $0x44] sm:$0x1]  ;;  %v8860_v45 = vld [vmem:[%s11397_s1 + $0x1a8] sm:$0xff]  }
  0x75   : > { %8329 = vmatpush3.bf16.msra.mxu1 %v8857_v63  ;;  %v1698_v63 = vshrl.u32 %v9594_v11, 16  ;;  %v1711_v21 = vrot.slane %v1709_v47, 4  ;;  %v1714_v59 = vrot.slane %v1712_v54, 5  ;;  %v9675_v4 = vld [vmem:[%s9133_s15 + $0x4c] sm:$0xf]  ;;  %v1735_v44 = vrot.slane %v1733_v16, 4 }
  0x76   : > { %8386 = vmatprep.subr.bf16.mxu1 %v9607_v20  ;;  %v1720_v60 = vrot.slane %v1718_v52, 5  ;;  %v1724_v33 = vrot.slane %v1722_v36, 4  ;;  %v1752_v43 = vshll.u32 %v9663_v62, 16 }
  0x77   : > { %8293 = vmatpush3.bf16.msra.mxu0 %v8856_v1  ;;  %v1700_v13 = vrot.slane %v1698_v63, 4  ;;  %v2170_v1 = vrot.slane %v9594_v11, 5  ;;  %v1715_v14 = vor.u32 %v1714_v59, %v1711_v21  ;;  %v1766_v63 = vshll.u32 %v9675_v4, 16  ;;  %v8866_v21 = vld [vmem:[%s11397_s1 + $0x1e0] sm:$0xff]  }
  0x78   : > { %8275 = vmatmul.mubr.bf16.gmra.mxu1 %v8854_v8  ;;  %8350 = vmatprep.subr.bf16.mxu0 %v9589_v10  ;;  %v1725_v34 = vor.u32 %v1724_v33, %v1720_v60  ;;  %v2177_v8 = vrot.slane %v9615_v30, 5  ;;  %v1754_v52 = vrot.slane %v1752_v43, 5  ;;  %v1770_v59 = vshrl.u32 %v9675_v4, 16  ;;  %v7262_v33 = vld [vmem:[%s9133_s15 + $0x48] sm:$0xe] }
  0x79   : > { %8330 = vmatprep.mubr.bf16.mxu1 %v7293_v41  ;;  %v1701_v50 = vor.u32 %v1700_v13, %v1696_v46  ;;  %v2171_v42 = vsel %vm9404_vm5, %v7269_v0, %v2170_v1  ;;  %v2172_v2 = vrot.slane %v2170_v1, 4  ;;  %v1716_v5 = vrot.slane %v1715_v14, 4  ;;  %v8863_v14 = vld [vmem:[%s11397_s1 + $0x1a0] sm:$0xff]  }
  0x7a   : > { %8239 = vmatmul.mubr.bf16.gmra.mxu0 %v7128_v40  ;;  %v1726_v7 = vrot.slane %v1725_v34, 4  ;;  %v2178_v38 = vsel %vm9404_vm5, %v7270_v29, %v2177_v8  ;;  %v2179_v41 = vrot.slane %v2177_v8, 4  ;;  %v1760_v46 = vshll.u32 %v7208_v27, 16 }
  0x7b   : > { %8294 = vmatprep.mubr.bf16.mxu0 %v7239_v9  ;;  %v1702_v40 = vrot.slane %v1701_v50, 4  ;;  %v2180_v9 = vrot.slane %v9623_v31, 5  ;;  %v2174_v11 = vsel %vm9404_vm5, %v2172_v2, %v2173_v12  ;;  %v1721_v22 = vsel %vm9177_vm2, %v1716_v5, %v1720_v60  ;;  %v8868_v5 = vld [vmem:[%s11397_s1 + $0x1d8] sm:$0xff]  }
  0x7c   : > { %v1731_v23 = vsel %vm9177_vm2, %v1726_v7, %v1730_v48  ;;  %v7295_v39 = vcombine.low %v2171_v42, %v2174_v11  ;;  %v1738_v31 = vrot.slane %v1736_v18, 5  ;;  %v1762_v13 = vrot.slane %v1760_v46, 5 }
  0x7d   : > { %v1707_v49 = vsel %vm9177_vm2, %v1702_v40, %v1706_v56  ;;  %v7242_v30 = vcombine.low %v1721_v22, %v1731_v23  ;;  %v2181_v35 = vsel %vm9404_vm5, %v2179_v41, %v2180_v9  ;;  %v9694_v56 = vrot.slane %v1766_v63, 5  ;;  %v7263_v63 = vld [vmem:[%s9133_s15 + $0x54] sm:$0xe] }
  0x7e   : > { %v7241_v17 = vcombine.low %v1697_v26, %v1707_v49  ;;  %v7296_v24 = vcombine.low %v2178_v38, %v2181_v35  ;;  %v1739_v47 = vor.u32 %v1738_v31, %v1735_v44  ;;  %v1776_v60 = vshll.u32 %v9680_v58, 16  ;;  %v9727_v49 = vld [vmem:[%s9133_s15 + $0x5c] sm:$0x1] }
  0x7f   : > { %v2184_v48 = vrot.slane %v9653_v6, 5  ;;  %v2187_v0 = vrot.slane %v9663_v62, 5  ;;  %v1772_v34 = vrot.slane %v1770_v59, 4  ;;  %v7272_v29 = vrot.slane %v7262_v33, 9  ;;  %v7264_v33 = vld [vmem:[%s9133_s15 + $0x60] sm:$0xe] }
  0x80   : > { %8331 = vmatmul.mubr.bf16.vlgmr.msra.gmra.mxu1 %v7294_v32  ;;  %v1742_v32 = vshll.u32 %v9653_v6, 16  ;;  %v1740_v25 = vrot.slane %v1739_v47, 4  ;;  %v1778_v12 = vrot.slane %v1776_v60, 5  ;;  %v2191_v9 = vrot.slane %v9675_v4, 5  ;;  %v9741_v4 = vld [vmem:[%s9133_s15 + $0x64] sm:$0xf] }
  0x81   : > { %8387 = vmatpush3.bf16.msra.mxu1 %v9607_v20  ;;  %8334 = vmatprep.mubr.bf16.mxu1 %v7295_v39  ;;  %v1746_v20 = vshrl.u32 %v9653_v6, 16  ;;  %v2186_v2 = vrot.slane %v2184_v48, 4  ;;  %v1773_v8 = vor.u32 %v1772_v34, %v9694_v56  ;;  %v2194_v6 = vrot.slane %v9680_v58, 5 }
  0x82   : > { %8388 = vmatprep.subr.bf16.mxu1 %v8862_v3  ;;  %8295 = vmatmul.mubr.bf16.vlgmr.msra.gmra.mxu0 %v9625_v57  ;;  %v1757_v57 = vshrl.u32 %v7208_v27, 16  ;;  %v1744_v53 = vrot.slane %v1742_v32, 5  ;;  %v1781_v18 = vshrl.u32 %v7211_v15, 16  ;;  %v2192_v39 = vsel %vm9404_vm5, %v7272_v29, %v2191_v9 }
  0x83   : > { %8351 = vmatpush3.bf16.msra.mxu0 %v9589_v10  ;;  %8298 = vmatprep.mubr.bf16.mxu0 %v7241_v17  ;;  %v1748_v54 = vrot.slane %v1746_v20, 4  ;;  %v7261_v10 = vld [vmem:[%s9133_s15 + $0x3c] sm:$0xe]  ;;  %v2188_v16 = vsel %vm9404_vm5, %v2186_v2, %v2187_v0  ;;  %v8870_v17 = vld [vmem:[%s11397_s1 + $0x1d0] sm:$0xff]   ;;  %v1774_v22 = vrot.slane %v1773_v8, 4  ;;  %v2193_v27 = vrot.slane %v2191_v9, 4 }
  0x84   : > { %8352 = vmatprep.subr.bf16.mxu0 %v8859_v55  ;;  %v1759_v36 = vrot.slane %v1757_v57, 4  ;;  %v7271_v50 = vrot.slane %v7261_v10, 9  ;;  %v1745_v1 = vsel %vm9177_vm2, %v1740_v25, %v1744_v53  ;;  %v1783_v38 = vrot.slane %v1781_v18, 4  ;;  %v8867_v10 = vld [vmem:[%s11397_s1 + $0x190] sm:$0xff]  }
  0x85   : > { %8389 = vmatpush3.bf16.msra.mxu1 %v8862_v3  ;;  %v1749_v51 = vor.u32 %v1748_v54, %v1744_v53  ;;  %v9713_v3 = vld [vmem:[%s9133_s15 + $0x58] sm:$0xf]  ;;  %v1784_v41 = vshll.u32 %v7211_v15, 16  ;;  %v1779_v31 = vsel %vm9177_vm2, %v1774_v22, %v1778_v12  ;;  %v2195_v32 = vsel %vm9404_vm5, %v2193_v27, %v2194_v6  ;;  %v7217_v15 = vld [vmem:[%s9133_s15 + $0x6c] sm:$0xf] }
  0x86   : > { %8390 = vmatprep.subr.bf16.mxu1 %v8864_v19  ;;  %v1763_v61 = vor.u32 %v1762_v13, %v1759_v36  ;;  %v2185_v42 = vsel %vm9404_vm5, %v7271_v50, %v2184_v48  ;;  %v1790_v44 = vshll.u32 %v9713_v3, 16  ;;  %v1794_v58 = vshrl.u32 %v9713_v3, 16  ;;  %v9798_v27 = vld [vmem:[%s9133_s15 + $0x80] sm:$0x1] }
  0x87   : > { %8353 = vmatpush3.bf16.msra.mxu0 %v8859_v55  ;;  %v1750_v26 = vrot.slane %v1749_v51, 4  ;;  %v8865_v55 = vld [vmem:[%s11397_s1 + $0x198] sm:$0xff]   ;;  %v7297_v23 = vcombine.low %v2185_v42, %v2188_v16  ;;  %v1800_v20 = vshll.u32 %v9727_v49, 16  ;;  %v1786_v57 = vrot.slane %v1784_v41, 5 }
  0x88   : > { %8335 = vmatmul.mubr.bf16.gmra.mxu1 %v7296_v24  ;;  %8354 = vmatprep.subr.bf16.mxu0 %v8860_v45  ;;  %v1764_v40 = vrot.slane %v1763_v61, 4  ;;  %v1792_v46 = vrot.slane %v1790_v44, 5  ;;  %v1796_v24 = vrot.slane %v1794_v58, 4  ;;  %v1814_v36 = vshll.u32 %v9741_v4, 16  ;;  %v7265_v58 = vld [vmem:[%s9133_s15 + $0x6c] sm:$0xe] }
  0x89   : > { %8391 = vmatpush3.bf16.msra.mxu1 %v8864_v19  ;;  %v1755_v7 = vsel %vm9177_vm2, %v1750_v26, %v1754_v52  ;;  %v7214_v19 = vld [vmem:[%s9133_s15 + $0x60] sm:$0xf]  ;;  %8338 = vmatprep.mubr.bf16.mxu1 %v7297_v23  ;;  %v1802_v47 = vrot.slane %v1800_v20, 5  ;;  %v1787_v52 = vor.u32 %v1786_v57, %v1783_v38  ;;  %v1818_v13 = vshrl.u32 %v9741_v4, 16 }
  0x8a   : > { %8392 = vmatprep.subr.bf16.mxu1 %v8866_v21  ;;  %8299 = vmatmul.mubr.bf16.gmra.mxu0 %v7242_v30  ;;  %v7243_v11 = vcombine.low %v1745_v1, %v1755_v7  ;;  %v1769_v62 = vsel %vm9177_vm2, %v1764_v40, %v9694_v56  ;;  %v9744_v30 = vld [vmem:[%s9133_s15 + $0x68] sm:$0x1]  ;;  %v1805_v43 = vshrl.u32 %v7214_v19, 16  ;;  %v1808_v54 = vshll.u32 %v7214_v19, 16  ;;  %v9772_v40 = vld [vmem:[%s9133_s15 + $0x70] sm:$0xf] }
  0x8b   : > { %8355 = vmatpush3.bf16.msra.mxu0 %v8860_v45  ;;  %v7244_v35 = vcombine.low %v1769_v62, %v1779_v31  ;;  %v7298_v45 = vcombine.low %v2192_v39, %v2195_v32  ;;  %v1824_v56 = vshll.u32 %v9744_v30, 16  ;;  %v1797_v25 = vor.u32 %v1796_v24, %v1792_v46  ;;  %v8869_v1 = vld [vmem:[%s11397_s1 + $0x188] sm:$0xff]   ;;  %v8873_v7 = vld [vmem:[%s11397_s1 + $0x1c0] sm:$0xff]   ;;  %v9791_v19 = vld [vmem:[%s9133_s15 + $0x7c] sm:$0xf] }
  0x8c   : > { %8356 = vmatprep.subr.bf16.mxu0 %v8863_v14  ;;  %8302 = vmatprep.mubr.bf16.mxu0 %v7243_v11  ;;  %v1807_v53 = vrot.slane %v1805_v43, 4  ;;  %v1810_v51 = vrot.slane %v1808_v54, 5  ;;  %v7273_v59 = vrot.slane %v7263_v63, 9  ;;  %v2198_v60 = vrot.slane %v9713_v3, 5  ;;  %v7220_v11 = vld [vmem:[%s9133_s15 + $0x78] sm:$0xf] }
  0x8d   : > { %8393 = vmatpush3.bf16.msra.mxu1 %v8866_v21  ;;  %v8871_v21 = vld [vmem:[%s11397_s1 + $0x1c8] sm:$0xff]   ;;  %v1788_v61 = vrot.slane %v1787_v52, 4  ;;  %v1816_v50 = vrot.slane %v1814_v36, 5  ;;  %v1820_v48 = vrot.slane %v1818_v13, 4  ;;  %v1826_v0 = vrot.slane %v1824_v56, 5  ;;  %v9815_v24 = vld [vmem:[%s11397_s1 + $0x238] sm:$0xff]  }
  0x8e   : > { %8394 = vmatprep.subr.bf16.mxu1 %v8868_v5  ;;  %v1798_v26 = vrot.slane %v1797_v25, 4  ;;  %v2199_v34 = vsel %vm9404_vm5, %v7273_v59, %v2198_v60  ;;  %v2200_v12 = vrot.slane %v2198_v60, 4  ;;  %v2201_v29 = vrot.slane %v9727_v49, 5  ;;  %v7266_v63 = vld [vmem:[%s9133_s15 + $0x78] sm:$0xe] }
  0x8f   : > { %8357 = vmatpush3.bf16.msra.mxu0 %v8863_v14  ;;  %v1811_v14 = vor.u32 %v1810_v51, %v1807_v53  ;;  %v1793_v42 = vsel %vm9177_vm2, %v1788_v61, %v1792_v46  ;;  %v1821_v2 = vor.u32 %v1820_v48, %v1816_v50  ;;  %v7274_v3 = vrot.slane %v7264_v33, 9 }
  0x90   : > { %8358 = vmatprep.subr.bf16.mxu0 %v8865_v55  ;;  %8339 = vmatmul.mubr.bf16.gmra.mxu1 %v7298_v45  ;;  %v1803_v8 = vsel %vm9177_vm2, %v1798_v26, %v1802_v47  ;;  %v2205_v6 = vrot.slane %v9741_v4, 5  ;;  %v2202_v16 = vsel %vm9404_vm5, %v2200_v12, %v2201_v29  ;;  %v1829_v18 = vshrl.u32 %v7217_v15, 16  ;;  %v8872_v4 = vld [vmem:[%s11397_s1 + $0x180] sm:$0xff]  }
  0x91   : > { %8395 = vmatpush3.bf16.msra.mxu1 %v8868_v5  ;;  %v9778_v5 = vld [vmem:[%s9133_s15 + $0x74] sm:$0x1]  ;;  %v1812_v9 = vrot.slane %v1811_v14, 4  ;;  %v7245_v62 = vcombine.low %v1793_v42, %v1803_v8  ;;  %v1822_v49 = vrot.slane %v1821_v2, 4  ;;  %v7299_v22 = vcombine.low %v2199_v34, %v2202_v16  ;;  %v7367_v14 = vld [vmem:[%s9133_s15 + $0x18] sm:$0xf] }
  0x92   : > { %8396 = vmatprep.subr.bf16.mxu1 %v8870_v17  ;;  %8303 = vmatmul.mubr.bf16.gmra.mxu0 %v7244_v35  ;;  %v2206_v23 = vsel %vm9404_vm5, %v7274_v3, %v2205_v6  ;;  %v2207_v39 = vrot.slane %v2205_v6, 4  ;;  %v1831_v38 = vrot.slane %v1829_v18, 4  ;;  %v1832_v41 = vshll.u32 %v7217_v15, 16  ;;  %v9832_v2 = vld [vmem:[%s9133_s15 + $0x20] sm:$0x1] }
  0x93   : > { %8359 = vmatpush3.bf16.msra.mxu0 %v8865_v55  ;;  %v2208_v55 = vrot.slane %v9744_v30, 5  ;;  %8306 = vmatprep.mubr.bf16.mxu0 %v7245_v62  ;;  %v1827_v30 = vsel %vm9177_vm2, %v1822_v49, %v1826_v0  ;;  %v1838_v44 = vshll.u32 %v9772_v40, 16  ;;  %v1842_v20 = vshrl.u32 %v9772_v40, 16  ;;  %v7370_v8 = vld [vmem:[%s9133_s15 + $0x24] sm:$0xf] }
  0x94   : > { %8360 = vmatprep.subr.bf16.mxu0 %v8867_v10  ;;  %8342 = vmatprep.mubr.bf16.mxu1 %v7299_v22  ;;  %v1848_v43 = vshll.u32 %v9778_v5, 16  ;;  %v1834_v45 = vrot.slane %v1832_v41, 5  ;;  %v1853_v46 = vshrl.u32 %v7220_v11, 16  ;;  %v1856_v54 = vshll.u32 %v7220_v11, 16  ;;  %v9842_v62 = vld [vmem:[%s9133_s15 + $0x28] sm:$0xf] }
  0x95   : > { %8397 = vmatpush3.bf16.msra.mxu1 %v8870_v17  ;;  %v1817_v17 = vsel %vm9177_vm2, %v1812_v9, %v1816_v50  ;;  %v2209_v32 = vsel %vm9404_vm5, %v2207_v39, %v2208_v55  ;;  %v1840_v57 = vrot.slane %v1838_v44, 5  ;;  %v1844_v47 = vrot.slane %v1842_v20, 4  ;;  %v8874_v22 = vld [vmem:[%s9133_s15 + $0x18] sm:$0xff]   ;;  %v9857_v44 = vld [vmem:[%s9133_s15 + $0x2c] sm:$0x1] }
  0x96   : > { %8398 = vmatprep.subr.bf16.mxu1 %v8871_v21  ;;  %v7246_v31 = vcombine.low %v1817_v17, %v1827_v30  ;;  %v7300_v35 = vcombine.low %v2206_v23, %v2209_v32  ;;  %v1850_v53 = vrot.slane %v1848_v43, 5  ;;  %v1835_v52 = vor.u32 %v1834_v45, %v1831_v38  ;;  %v7373_v43 = vld [vmem:[%s9133_s15 + $0x30] sm:$0xf] }
  0x97   : > { %8361 = vmatpush3.bf16.msra.mxu0 %v8867_v10  ;;  %v1862_v10 = vshll.u32 %v9791_v19, 16  ;;  %v1855_v36 = vrot.slane %v1853_v46, 4  ;;  %v1866_v13 = vshrl.u32 %v9791_v19, 16  ;;  %v1872_v56 = vshll.u32 %v9798_v27, 16 }
  0x98   : > { %8362 = vmatprep.subr.bf16.mxu0 %v8869_v1  ;;  %8343 = vmatmul.mubr.bf16.gmra.mxu1 %v7300_v35  ;;  %v1858_v25 = vrot.slane %v1856_v54, 5  ;;  %v7275_v59 = vrot.slane %v7265_v58, 9  ;;  %v1836_v60 = vrot.slane %v1835_v52, 4  ;;  %v2212_v50 = vrot.slane %v9772_v40, 5  ;;  %v9829_v40 = vld [vmem:[%s9133_s15 + $0x1c] sm:$0xf] }
  0x99   : > { %8399 = vmatpush3.bf16.msra.mxu1 %v8871_v21  ;;  %v1845_v21 = vor.u32 %v1844_v47, %v1840_v57  ;;  %v1864_v51 = vrot.slane %v1862_v10, 5  ;;  %v1868_v33 = vrot.slane %v1866_v13, 4  ;;  %v1874_v61 = vrot.slane %v1872_v56, 5  ;;  %v9864_v10 = vld [vmem:[%s9133_s15 + $0x34] sm:$0xf]  ;;  %v8875_v52 = vld [vmem:[%s9133_s15 + $0x24] sm:$0xff]  }
  0x9a   : > { %8400 = vmatprep.subr.bf16.mxu1 %v8873_v7  ;;  %8307 = vmatmul.mubr.bf16.gmra.mxu0 %v7246_v31  ;;  %v1859_v0 = vor.u32 %v1858_v25, %v1855_v36  ;;  %v7276_v26 = vrot.slane %v7266_v63, 9  ;;  %v1841_v34 = vsel %vm9177_vm2, %v1836_v60, %v1840_v57  ;;  %v2213_v15 = vsel %vm9404_vm5, %v7275_v59, %v2212_v50 }
  0x9b   : > { %8363 = vmatpush3.bf16.msra.mxu0 %v8869_v1  ;;  %v1846_v48 = vrot.slane %v1845_v21, 4  ;;  %v2215_v1 = vrot.slane %v9778_v5, 5  ;;  %v1869_v12 = vor.u32 %v1868_v33, %v1864_v51  ;;  %v2214_v42 = vrot.slane %v2212_v50, 4  ;;  %v9868_v21 = vld [vmem:[%s9133_s15 + $0x38] sm:$0x1] }
  0x9c   : > { %8364 = vmatprep.subr.bf16.mxu0 %v8872_v4  ;;  %v1860_v3 = vrot.slane %v1859_v0, 4  ;;  %v2219_v5 = vrot.slane %v9791_v19, 5  ;;  %v2775_v11 = vshrl.u32 %v7367_v14, 16  ;;  %v2778_v39 = vshll.u32 %v7367_v14, 16  ;;  %v8877_v0 = vld [vmem:[%s11397_s1 + $0x230] sm:$0xff]  }
  0x9d   : > { %8401 = vmatpush3.bf16.msra.mxu1 %v8873_v7  ;;  %v1851_v29 = vsel %vm9177_vm2, %v1846_v48, %v1850_v53  ;;  %v2222_v7 = vrot.slane %v9798_v27, 5  ;;  %v1870_v6 = vrot.slane %v1869_v12, 4  ;;  %v2216_v55 = vsel %vm9404_vm5, %v2214_v42, %v2215_v1  ;;  %v9876_v14 = vld [vmem:[%s9133_s15 + $0x40] sm:$0xf] }
  0x9e   : > { %v7247_v9 = vcombine.low %v1841_v34, %v1851_v29  ;;  %v1865_v49 = vsel %vm9177_vm2, %v1860_v3, %v1864_v51  ;;  %v7301_v16 = vcombine.low %v2213_v15, %v2216_v55  ;;  %v2220_v18 = vsel %vm9404_vm5, %v7276_v26, %v2219_v5 }
  0x9f   : > { %8365 = vmatpush3.bf16.msra.mxu0 %v8872_v4  ;;  %v2221_v19 = vrot.slane %v2219_v5, 4  ;;  %v1875_v17 = vsel %vm9177_vm2, %v1870_v6, %v1874_v61  ;;  %v2777_v23 = vrot.slane %v2775_v11, 4  ;;  %v2784_v27 = vshll.u32 %v9829_v40, 16  ;;  %v7376_v61 = vld [vmem:[%s9133_s15 + $0x3c] sm:$0xf]  ;;  %v8878_v5 = vld [vmem:[%s9133_s15 + $0x30] sm:$0xff]  }
  0xa0   : > { %8422 = vmatprep.subr.bf16.mxu0 %v9815_v24  ;;  %8310 = vmatprep.mubr.bf16.mxu0 %v7247_v9  ;;  %v7248_v4 = vcombine.low %v1865_v49, %v1875_v17  ;;  %v2788_v38 = vshrl.u32 %v9829_v40, 16  ;;  %v2794_v41 = vshll.u32 %v9832_v2, 16  ;;  %v2780_v31 = vrot.slane %v2778_v39, 5  ;;  %v9886_v9 = vld [vmem:[%s9133_s15 + $0x44] sm:$0x1] }
  0xa1   : > { %8346 = vmatprep.mubr.bf16.mxu1 %v7301_v16  ;;  %v2223_v30 = vsel %vm9404_vm5, %v2221_v19, %v2222_v7  ;;  %v2786_v32 = vrot.slane %v2784_v27, 5  ;;  %v2799_v20 = vshrl.u32 %v7370_v8, 16  ;;  %v2802_v57 = vshll.u32 %v7370_v8, 16 }
  0xa2   : > { %v7302_v58 = vcombine.low %v2220_v18, %v2223_v30  ;;  %8311 = vmatmul.mubr.bf16.gmra.mxu0 %v7248_v4  ;;  %v2790_v35 = vrot.slane %v2788_v38, 4  ;;  %v2796_v45 = vrot.slane %v2794_v41, 5  ;;  %v2808_v46 = vshll.u32 %v9842_v62, 16  ;;  %v7379_v4 = vld [vmem:[%s9133_s15 + $0x48] sm:$0xf] }
  0xa3   : > { %8366 = vmatprep.mubr.bf16.mxu0 %v8874_v22  ;;  %v2781_v63 = vor.u32 %v2780_v31, %v2777_v23  ;;  %v2801_v47 = vrot.slane %v2799_v20, 4  ;;  %v2812_v53 = vshrl.u32 %v9842_v62, 16  ;;  %v2818_v54 = vshll.u32 %v9857_v44, 16  ;;  %v9900_v31 = vld [vmem:[%s9133_s15 + $0x4c] sm:$0xf] }
  0xa4   : > { %8347 = vmatmul.mubr.bf16.gmra.mxu1 %v7302_v58  ;;  %v2791_v36 = vor.u32 %v2790_v35, %v2786_v32  ;;  %v2804_v13 = vrot.slane %v2802_v57, 5  ;;  %v2810_v56 = vrot.slane %v2808_v46, 5  ;;  %v2823_v25 = vshrl.u32 %v7373_v43, 16 }
  0xa5   : > { %v2782_v51 = vrot.slane %v2781_v63, 4  ;;  %v2814_v59 = vrot.slane %v2812_v53, 4  ;;  %v2820_v60 = vrot.slane %v2818_v54, 5  ;;  %v2826_v33 = vshll.u32 %v7373_v43, 16  ;;  %v8881_v63 = vld [vmem:[%s9133_s15 + $0x48] sm:$0xff]  }
  0xa6   : > { %v2792_v50 = vrot.slane %v2791_v36, 4  ;;  %v2805_v48 = vor.u32 %v2804_v13, %v2801_v47  ;;  %v2825_v1 = vrot.slane %v2823_v25, 4  ;;  %v2832_v26 = vshll.u32 %v9864_v10, 16  ;;  %v9908_v47 = vld [vmem:[%s9133_s15 + $0x50] sm:$0x1]  ;;  %v8882_v13 = vld [vmem:[%s11397_s1 + $0x220] sm:$0xff]  }
  0xa7   : > { %v2787_v34 = vsel %vm9177_vm2, %v2782_v51, %v2786_v32  ;;  %v2815_v12 = vor.u32 %v2814_v59, %v2810_v56  ;;  %v2828_v15 = vrot.slane %v2826_v33, 5  ;;  %v2836_v42 = vshrl.u32 %v9864_v10, 16  ;;  %v8879_v32 = vld [vmem:[%s9133_s15 + $0x3c] sm:$0xff]   ;;  %v7382_v51 = vld [vmem:[%s9133_s15 + $0x54] sm:$0xf] }
  0xa8   : > { %v2797_v29 = vsel %vm9177_vm2, %v2792_v50, %v2796_v45  ;;  %v2806_v3 = vrot.slane %v2805_v48, 4  ;;  %v2834_v7 = vrot.slane %v2832_v26, 5  ;;  %v2842_v8 = vshll.u32 %v9868_v21, 16  ;;  %v9919_v50 = vld [vmem:[%s9133_s15 + $0x58] sm:$0xf] }
  0xa9   : > { %v7413_v6 = vcombine.low %v2787_v34, %v2797_v29  ;;  %v2816_v55 = vrot.slane %v2815_v12, 4  ;;  %v2829_v11 = vor.u32 %v2828_v15, %v2825_v1  ;;  %v2838_v49 = vrot.slane %v2836_v42, 4  ;;  %v9923_v34 = vld [vmem:[%s9133_s15 + $0x5c] sm:$0x1] }
  0xaa   : > { %8367 = vmatmul.mubr.bf16.vlgmr.msra.gmra.mxu0 %v8875_v52  ;;  %v2811_v16 = vsel %vm9177_vm2, %v2806_v3, %v2810_v56  ;;  %v2844_v18 = vrot.slane %v2842_v8, 5  ;;  %v2847_v19 = vshrl.u32 %v7376_v61, 16  ;;  %v2850_v17 = vshll.u32 %v7376_v61, 16 }
  0xab   : > { %8402 = vmatprep.mubr.bf16.mxu1 %v7413_v6  ;;  %8423 = vmatpush3.bf16.msra.mxu0 %v9815_v24  ;;  %v2821_v22 = vsel %vm9177_vm2, %v2816_v55, %v2820_v60  ;;  %v2830_v23 = vrot.slane %v2829_v11, 4  ;;  %v2839_v39 = vor.u32 %v2838_v49, %v2834_v7  ;;  %v2856_v27 = vshll.u32 %v9876_v14, 16  ;;  %v8880_v24 = vld [vmem:[%s11397_s1 + $0x228] sm:$0xff]   ;;  %v8883_v55 = vld [vmem:[%s9133_s15 + $0x54] sm:$0xff]  }
  0xac   : > { %v7414_v30 = vcombine.low %v2811_v16, %v2821_v22  ;;  %8424 = vmatprep.subr.bf16.mxu0 %v8877_v0  ;;  %8370 = vmatprep.mubr.bf16.mxu0 %v8878_v5  ;;  %v2849_v38 = vrot.slane %v2847_v19, 4  ;;  %v2852_v41 = vrot.slane %v2850_v17, 5  ;;  %v2860_v58 = vshrl.u32 %v9876_v14, 16 }
  0xad   : > { %v2835_v20 = vsel %vm9177_vm2, %v2830_v23, %v2834_v7  ;;  %v2840_v43 = vrot.slane %v2839_v39, 4  ;;  %v2858_v35 = vrot.slane %v2856_v27, 5  ;;  %v2866_v45 = vshll.u32 %v9886_v9, 16  ;;  %v8885_v39 = vld [vmem:[%s9133_s15 + $0x60] sm:$0xff]  }
  0xae   : > { %8403 = vmatmul.mubr.bf16.vlgmr.msra.gmra.mxu1 %v7414_v30  ;;  %v2853_v57 = vor.u32 %v2852_v41, %v2849_v38  ;;  %v2862_v46 = vrot.slane %v2860_v58, 4  ;;  %v2871_v53 = vshrl.u32 %v7379_v4, 16  ;;  %v2874_v54 = vshll.u32 %v7379_v4, 16  ;;  %v7385_v27 = vld [vmem:[%s9133_s15 + $0x60] sm:$0xf] }
  0xaf   : > { %8425 = vmatpush3.bf16.msra.mxu0 %v8877_v0  ;;  %v2845_v52 = vsel %vm9177_vm2, %v2840_v43, %v2844_v18  ;;  %v2868_v36 = vrot.slane %v2866_v45, 5  ;;  %v2880_v56 = vshll.u32 %v9900_v31, 16  ;;  %v2884_v25 = vshrl.u32 %v9900_v31, 16  ;;  %v8884_v18 = vld [vmem:[%s11397_s1 + $0x218] sm:$0xff]   ;;  %v9939_v41 = vld [vmem:[%s9133_s15 + $0x64] sm:$0xf] }
  0xb0   : > { %v7415_v59 = vcombine.low %v2835_v20, %v2845_v52  ;;  %v2854_v60 = vrot.slane %v2853_v57, 4  ;;  %v2863_v33 = vor.u32 %v2862_v46, %v2858_v35  ;;  %8426 = vmatprep.subr.bf16.mxu0 %v8880_v24  ;;  %v2873_v61 = vrot.slane %v2871_v53, 4  ;;  %v9942_v58 = vld [vmem:[%s9133_s15 + $0x68] sm:$0x1]  ;;  %v7388_v53 = vld [vmem:[%s9133_s15 + $0x6c] sm:$0xf] }
  0xb1   : > { %v2876_v48 = vrot.slane %v2874_v54, 5  ;;  %v2882_v0 = vrot.slane %v2880_v56, 5  ;;  %v2886_v1 = vrot.slane %v2884_v25, 4  ;;  %v2890_v26 = vshll.u32 %v9908_v47, 16  ;;  %v9953_v54 = vld [vmem:[%s9133_s15 + $0x70] sm:$0xf] }
  0xb2   : > { %8371 = vmatmul.mubr.bf16.gmra.mxu0 %v8879_v32  ;;  %8406 = vmatprep.mubr.bf16.mxu1 %v7415_v59  ;;  %v2859_v12 = vsel %vm9177_vm2, %v2854_v60, %v2858_v35  ;;  %v2864_v15 = vrot.slane %v2863_v33, 4  ;;  %v2895_v42 = vshrl.u32 %v7382_v51, 16  ;;  %v2898_v29 = vshll.u32 %v7382_v51, 16  ;;  %v9958_v25 = vld [vmem:[%s9133_s15 + $0x74] sm:$0x1] }
  0xb3   : > { %8427 = vmatpush3.bf16.msra.mxu0 %v8880_v24  ;;  %8374 = vmatprep.mubr.bf16.mxu0 %v8881_v63  ;;  %v2877_v3 = vor.u32 %v2876_v48, %v2873_v61  ;;  %v2887_v5 = vor.u32 %v2886_v1, %v2882_v0  ;;  %v2892_v7 = vrot.slane %v2890_v26, 5  ;;  %v2904_v8 = vshll.u32 %v9919_v50, 16  ;;  %v8887_v24 = vld [vmem:[%s11397_s1 + $0x210] sm:$0xff]  }
  0xb4   : > { %v2869_v6 = vsel %vm9177_vm2, %v2864_v15, %v2868_v36  ;;  %8428 = vmatprep.subr.bf16.mxu0 %v8882_v13  ;;  %v2897_v11 = vrot.slane %v2895_v42, 4  ;;  %v2900_v49 = vrot.slane %v2898_v29, 5  ;;  %v2908_v16 = vshrl.u32 %v9919_v50, 16 }
  0xb5   : > { %v7416_v19 = vcombine.low %v2859_v12, %v2869_v6  ;;  %v2878_v17 = vrot.slane %v2877_v3, 4  ;;  %v2888_v22 = vrot.slane %v2887_v5, 4  ;;  %v2906_v23 = vrot.slane %v2904_v8, 5  ;;  %v8886_v12 = vld [vmem:[%s9133_s15 + $0x6c] sm:$0xff]  }
  0xb6   : > { %v2901_v4 = vor.u32 %v2900_v49, %v2897_v11  ;;  %v2910_v30 = vrot.slane %v2908_v16, 4  ;;  %v2914_v38 = vshll.u32 %v9923_v34, 16  ;;  %v2919_v43 = vshrl.u32 %v7385_v27, 16  ;;  %v8888_v3 = vld [vmem:[%s11397_s1 + $0x208] sm:$0xff]  }
  0xb7   : > { %8407 = vmatmul.mubr.bf16.gmra.mxu1 %v7416_v19  ;;  %8429 = vmatpush3.bf16.msra.mxu0 %v8882_v13  ;;  %v2883_v32 = vsel %vm9177_vm2, %v2878_v17, %v2882_v0  ;;  %v2893_v20 = vsel %vm9177_vm2, %v2888_v22, %v2892_v7  ;;  %v2922_v35 = vshll.u32 %v7385_v27, 16  ;;  %v2928_v13 = vshll.u32 %v9939_v41, 16  ;;  %v9981_v27 = vld [vmem:[%s9133_s15 + $0x7c] sm:$0xf] }
  0xb8   : > { %v7417_v45 = vcombine.low %v2883_v32, %v2893_v20  ;;  %v2902_v57 = vrot.slane %v2901_v4, 4  ;;  %v2911_v46 = vor.u32 %v2910_v30, %v2906_v23  ;;  %v2916_v63 = vrot.slane %v2914_v38, 5  ;;  %8430 = vmatprep.subr.bf16.mxu0 %v8884_v18  ;;  %v9985_v32 = vld [vmem:[%s9133_s15 + $0x80] sm:$0x1] }
  0xb9   : > { %v2921_v52 = vrot.slane %v2919_v43, 4  ;;  %v2924_v36 = vrot.slane %v2922_v35, 5  ;;  %v2932_v56 = vshrl.u32 %v9939_v41, 16  ;;  %v2938_v60 = vshll.u32 %v9942_v58, 16 }
  0xba   : > { %8375 = vmatmul.mubr.bf16.gmra.mxu0 %v8883_v55  ;;  %8410 = vmatprep.mubr.bf16.mxu1 %v7417_v45  ;;  %v2907_v51 = vsel %vm9177_vm2, %v2902_v57, %v2906_v23  ;;  %v2912_v59 = vrot.slane %v2911_v46, 4  ;;  %v2943_v33 = vshrl.u32 %v7388_v53, 16  ;;  %v2930_v48 = vrot.slane %v2928_v13, 5  ;;  %v8889_v55 = vld [vmem:[%s9133_s15 + $0x78] sm:$0xff]   ;;  %v7394_v46 = vld [vmem:[%s9133_s15 + $0x84] sm:$0xf] }
  0xbb   : > { %8431 = vmatpush3.bf16.msra.mxu0 %v8884_v18  ;;  %8378 = vmatprep.mubr.bf16.mxu0 %v8885_v39  ;;  %v2925_v61 = vor.u32 %v2924_v36, %v2921_v52  ;;  %v2934_v0 = vrot.slane %v2932_v56, 4  ;;  %v2946_v1 = vshll.u32 %v7388_v53, 16  ;;  %v2940_v15 = vrot.slane %v2938_v60, 5  ;;  %v8891_v18 = vld [vmem:[%s11397_s1 + $0x200] sm:$0xff]   ;;  %v7391_v39 = vld [vmem:[%s9133_s15 + $0x78] sm:$0xf] }
  0xbc   : > { %v2917_v26 = vsel %vm9177_vm2, %v2912_v59, %v2916_v63  ;;  %8432 = vmatprep.subr.bf16.mxu0 %v8887_v24  ;;  %v2945_v42 = vrot.slane %v2943_v33, 4  ;;  %v2952_v29 = vshll.u32 %v9953_v54, 16  ;;  %v2956_v49 = vshrl.u32 %v9953_v54, 16  ;;  %v9993_v13 = vld [vmem:[%s9133_s15 + $0x88] sm:$0xf] }
  0xbd   : > { %v7418_v5 = vcombine.low %v2907_v51, %v2917_v26  ;;  %v2926_v7 = vrot.slane %v2925_v61, 4  ;;  %v2935_v8 = vor.u32 %v2934_v0, %v2930_v48  ;;  %v2948_v6 = vrot.slane %v2946_v1, 5  ;;  %v9999_v33 = vld [vmem:[%s9133_s15 + $0x8c] sm:$0x1] }
  0xbe   : > { %v2954_v11 = vrot.slane %v2952_v29, 5  ;;  %v2962_v16 = vshll.u32 %v9958_v25, 16  ;;  %v3294_v19 = vrot.slane %v9829_v40, 5  ;;  %v3297_v4 = vrot.slane %v9832_v2, 5  ;;  %v7431_v29 = vld [vmem:[%s9133_s15 + $0x18] sm:$0xe] }
  0xbf   : > { %8411 = vmatmul.mubr.bf16.gmra.mxu1 %v7418_v5  ;;  %v2931_v17 = vsel %vm9177_vm2, %v2926_v7, %v2930_v48  ;;  %v2936_v22 = vrot.slane %v2935_v8, 4  ;;  %v2949_v23 = vor.u32 %v2948_v6, %v2945_v42  ;;  %8433 = vmatpush3.bf16.msra.mxu0 %v8887_v24  ;;  %v2958_v30 = vrot.slane %v2956_v49, 4  ;;  %v8890_v5 = vld [vmem:[%s9133_s15 + $0x84] sm:$0xff]  }
  0xc0   : > { %v2964_v38 = vrot.slane %v2962_v16, 5  ;;  %8434 = vmatprep.subr.bf16.mxu0 %v8888_v3  ;;  %v2967_v20 = vshrl.u32 %v7391_v39, 16  ;;  %v2970_v43 = vshll.u32 %v7391_v39, 16  ;;  %v2976_v24 = vshll.u32 %v9981_v27, 16 }
  0xc1   : > { %v2941_v35 = vsel %vm9177_vm2, %v2936_v22, %v2940_v15  ;;  %v2950_v45 = vrot.slane %v2949_v23, 4  ;;  %v2980_v57 = vshrl.u32 %v9981_v27, 16  ;;  %v2959_v53 = vor.u32 %v2958_v30, %v2954_v11 }
  0xc2   : > { %8379 = vmatmul.mubr.bf16.gmra.mxu0 %v8886_v12  ;;  %v7419_v63 = vcombine.low %v2931_v17, %v2941_v35  ;;  %v2969_v52 = vrot.slane %v2967_v20, 4  ;;  %v2972_v36 = vrot.slane %v2970_v43, 5  ;;  %v2978_v51 = vrot.slane %v2976_v24, 5 }
  0xc3   : > { %v2955_v56 = vsel %vm9177_vm2, %v2950_v45, %v2954_v11  ;;  %8382 = vmatprep.mubr.bf16.mxu0 %v8889_v55  ;;  %8435 = vmatpush3.bf16.msra.mxu0 %v8888_v3  ;;  %v2982_v59 = vrot.slane %v2980_v57, 4  ;;  %v2986_v60 = vshll.u32 %v9985_v32, 16  ;;  %v2960_v61 = vrot.slane %v2959_v53, 4  ;;  %v7432_v55 = vld [vmem:[%s9133_s15 + $0x24] sm:$0xe] }
  0xc4   : > { %8414 = vmatprep.mubr.bf16.mxu1 %v7419_v63  ;;  %v2973_v48 = vor.u32 %v2972_v36, %v2969_v52  ;;  %v2991_v0 = vshrl.u32 %v7394_v46, 16  ;;  %v2994_v1 = vshll.u32 %v7394_v46, 16  ;;  %8436 = vmatprep.subr.bf16.mxu0 %v8891_v18  ;;  %v3000_v15 = vshll.u32 %v9993_v13, 16  ;;  %v7433_v45 = vld [vmem:[%s9133_s15 + $0x30] sm:$0xe] }
  0xc5   : > { %v2983_v26 = vor.u32 %v2982_v59, %v2978_v51  ;;  %v2988_v12 = vrot.slane %v2986_v60, 5  ;;  %v3004_v42 = vshrl.u32 %v9993_v13, 16  ;;  %v2965_v3 = vsel %vm9177_vm2, %v2960_v61, %v2964_v38 }
  0xc6   : > { %v2974_v7 = vrot.slane %v2973_v48, 4  ;;  %v2993_v8 = vrot.slane %v2991_v0, 4  ;;  %v2996_v6 = vrot.slane %v2994_v1, 5  ;;  %v7420_v11 = vcombine.low %v2955_v56, %v2965_v3  ;;  %v7434_v56 = vld [vmem:[%s9133_s15 + $0x3c] sm:$0xe] }
  0xc7   : > { %v2984_v49 = vrot.slane %v2983_v26, 4  ;;  %v3002_v16 = vrot.slane %v3000_v15, 5  ;;  %v3006_v17 = vrot.slane %v3004_v42, 4  ;;  %8437 = vmatpush3.bf16.msra.mxu0 %v8891_v18  ;;  %v3010_v39 = vshll.u32 %v9999_v33, 16 }
  0xc8   : > { %v2979_v22 = vsel %vm9177_vm2, %v2974_v7, %v2978_v51  ;;  %v2997_v23 = vor.u32 %v2996_v6, %v2993_v8  ;;  %v7441_v30 = vrot.slane %v7431_v29, 9  ;;  %8415 = vmatmul.mubr.bf16.gmra.mxu1 %v7420_v11  ;;  %v3296_v43 = vrot.slane %v3294_v19, 4 }
  0xc9   : > { %v2989_v38 = vsel %vm9177_vm2, %v2984_v49, %v2988_v12  ;;  %v3007_v20 = vor.u32 %v3006_v17, %v3002_v16  ;;  %v7442_v35 = vrot.slane %v7432_v55, 9  ;;  %v3012_v57 = vrot.slane %v3010_v39, 5  ;;  %v7437_v49 = vld [vmem:[%s9133_s15 + $0x60] sm:$0xe] }
  0xca   : > { %8383 = vmatmul.mubr.bf16.gmra.mxu0 %v8890_v5  ;;  %v7421_v18 = vcombine.low %v2979_v22, %v2989_v38  ;;  %v2998_v24 = vrot.slane %v2997_v23, 4  ;;  %v3295_v46 = vsel %vm9404_vm5, %v7441_v30, %v3294_v19  ;;  %v3298_v53 = vsel %vm9404_vm5, %v3296_v43, %v3297_v4  ;;  %v7435_v19 = vld [vmem:[%s9133_s15 + $0x48] sm:$0xe] }
  0xcb   : > { %v3008_v63 = vrot.slane %v3007_v20, 4  ;;  %v3301_v52 = vrot.slane %v9842_v62, 5  ;;  %v3304_v36 = vrot.slane %v9857_v44, 5  ;;  %v7467_v59 = vcombine.low %v3295_v46, %v3298_v53 }
  0xcc   : > { %8418 = vmatprep.mubr.bf16.mxu1 %v7421_v18  ;;  %v3003_v51 = vsel %vm9177_vm2, %v2998_v24, %v3002_v16  ;;  %v7443_v40 = vrot.slane %v7433_v45, 9  ;;  %v3308_v60 = vrot.slane %v9864_v10, 5  ;;  %v3311_v62 = vrot.slane %v9868_v21, 5  ;;  %v7438_v45 = vld [vmem:[%s9133_s15 + $0x6c] sm:$0xe] }
  0xcd   : > { %v3013_v2 = vsel %vm9177_vm2, %v3008_v63, %v3012_v57  ;;  %v3302_v4 = vsel %vm9404_vm5, %v7442_v35, %v3301_v52  ;;  %v3303_v61 = vrot.slane %v3301_v52, 4  ;;  %8438 = vmatprep.mubr.bf16.mxu0 %v7467_v59  ;;  %v7444_v1 = vrot.slane %v7434_v56, 9 }
  0xce   : > { %v7422_v44 = vcombine.low %v3003_v51, %v3013_v2  ;;  %v3309_v48 = vsel %vm9404_vm5, %v7443_v40, %v3308_v60  ;;  %v3310_v0 = vrot.slane %v3308_v60, 4  ;;  %v3315_v26 = vrot.slane %v9876_v14, 5  ;;  %v7440_v40 = vld [vmem:[%s9133_s15 + $0x84] sm:$0xe] }
  0xcf   : > { %v3305_v10 = vsel %vm9404_vm5, %v3303_v61, %v3304_v36  ;;  %v3318_v12 = vrot.slane %v9886_v9, 5  ;;  %v7445_v15 = vrot.slane %v7435_v19, 9  ;;  %v3322_v29 = vrot.slane %v9900_v31, 5 }
  0xd0   : > { %v7468_v42 = vcombine.low %v3302_v4, %v3305_v10  ;;  %v3312_v21 = vsel %vm9404_vm5, %v3310_v0, %v3311_v62  ;;  %v3325_v3 = vrot.slane %v9908_v47, 5  ;;  %8419 = vmatmul.mubr.bf16.gmra.mxu1 %v7422_v44  ;;  %v3317_v7 = vrot.slane %v3315_v26, 4  ;;  %v7436_v47 = vld [vmem:[%s9133_s15 + $0x54] sm:$0xe] }
  0xd1   : > { %v7469_v5 = vcombine.low %v3309_v48, %v3312_v21  ;;  %v3324_v8 = vrot.slane %v3322_v29, 4  ;;  %v3316_v14 = vsel %vm9404_vm5, %v7444_v1, %v3315_v26  ;;  %v3329_v6 = vrot.slane %v9919_v50, 5 }
  0xd2   : > { %8439 = vmatmul.mubr.bf16.vlgmr.msra.gmra.mxu0 %v7468_v42  ;;  %v3319_v9 = vsel %vm9404_vm5, %v3317_v7, %v3318_v12  ;;  %v3323_v55 = vsel %vm9404_vm5, %v7445_v15, %v3322_v29  ;;  %v3336_v11 = vrot.slane %v9939_v41, 5  ;;  %v7446_v22 = vrot.slane %v7436_v47, 9 }
  0xd3   : > { %8442 = vmatprep.mubr.bf16.mxu0 %v7469_v5  ;;  %v3326_v31 = vsel %vm9404_vm5, %v3324_v8, %v3325_v3  ;;  %v7470_v16 = vcombine.low %v3316_v14, %v3319_v9  ;;  %v3331_v23 = vrot.slane %v3329_v6, 4  ;;  %v3332_v39 = vrot.slane %v9923_v34, 5 }
  0xd4   : > { %v7471_v17 = vcombine.low %v3323_v55, %v3326_v31  ;;  %v7447_v30 = vrot.slane %v7437_v49, 9  ;;  %v3338_v50 = vrot.slane %v3336_v11, 4  ;;  %v3339_v38 = vrot.slane %v9942_v58, 5  ;;  %v7439_v58 = vld [vmem:[%s9133_s15 + $0x78] sm:$0xe] }
  0xd5   : > { %v3330_v20 = vsel %vm9404_vm5, %v7446_v22, %v3329_v6  ;;  %v3333_v41 = vsel %vm9404_vm5, %v3331_v23, %v3332_v39  ;;  %v3343_v43 = vrot.slane %v9953_v54, 5  ;;  %v3350_v18 = vrot.slane %v9981_v27, 5 }
  0xd6   : > { %v3337_v35 = vsel %vm9404_vm5, %v7447_v30, %v3336_v11  ;;  %v3340_v34 = vsel %vm9404_vm5, %v3338_v50, %v3339_v38  ;;  %v7472_v24 = vcombine.low %v3330_v20, %v3333_v41  ;;  %v7448_v46 = vrot.slane %v7438_v45, 9 }
  0xd7   : > { %v7473_v57 = vcombine.low %v3337_v35, %v3340_v34  ;;  %v3345_v63 = vrot.slane %v3343_v43, 4  ;;  %v3346_v53 = vrot.slane %v9958_v25, 5  ;;  %v7449_v52 = vrot.slane %v7439_v58, 9 }
  0xd8   : > { %v3352_v36 = vrot.slane %v3350_v18, 4  ;;  %v3353_v54 = vrot.slane %v9985_v32, 5  ;;  %v3344_v56 = vsel %vm9404_vm5, %v7448_v46, %v3343_v43  ;;  %v3357_v51 = vrot.slane %v9993_v13, 5 }
  0xd9   : > { %v3347_v27 = vsel %vm9404_vm5, %v3345_v63, %v3346_v53  ;;  %v3351_v59 = vsel %vm9404_vm5, %v7449_v52, %v3350_v18  ;;  %v7450_v32 = vrot.slane %v7440_v40, 9  ;;  %v3360_v4 = vrot.slane %v9999_v33, 5 }
  0xda   : > { %8443 = vmatmul.mubr.bf16.gmra.mxu0 %v7470_v16  ;;  %v3354_v25 = vsel %vm9404_vm5, %v3352_v36, %v3353_v54  ;;  %v7474_v60 = vcombine.low %v3344_v56, %v3347_v27  ;;  %v3359_v2 = vrot.slane %v3357_v51, 4 }
  0xdb   : > { %8446 = vmatprep.mubr.bf16.mxu0 %v7471_v17  ;;  %v7475_v19 = vcombine.low %v3351_v59, %v3354_v25  ;;  %v3358_v13 = vsel %vm9404_vm5, %v7450_v32, %v3357_v51 }
  0xdc   : > { %v3361_v0 = vsel %vm9404_vm5, %v3359_v2, %v3360_v4 }
  0xdd   : > { %v7476_v15 = vcombine.low %v3358_v13, %v3361_v0 }
  0xe2   : > { %8447 = vmatmul.mubr.bf16.gmra.mxu0 %v7472_v24 }
  0xe3   : > { %8450 = vmatprep.mubr.bf16.mxu0 %v7473_v57 }
  0xea   : > { %8451 = vmatmul.mubr.bf16.gmra.mxu0 %v7474_v60 }
  0xeb   : > { %8454 = vmatprep.mubr.bf16.mxu0 %v7475_v19 }
  0xef   : > { %v8152_v61 = vpop.f32.mrf.mxu0 }
  0xf0   : > { %v8188_v62 = vpop.f32.mrf.mxu1 }
  0xf1   : > { %v10085_v44 = vadd.f32 %v8188_v62, %v8152_v61  ;;  %v683_v48 = vpop.f32.mrf.mxu0 }
  0xf2   : > { %v904_v1 = vpop.f32.mrf.mxu1  ;;  %8455 = vmatmul.mubr.bf16.gmra.mxu0 %v7476_v15 }
  0xf3   : > { %v10091_v10 = vadd.f32 %v904_v1, %v683_v48  ;;  %v8153_v26 = vpop.f32.mrf.mxu0 }
  0xf4   : > { %v8189_v12 = vpop.f32.mrf.mxu1 }
  0xf5   : > { %v10093_v33 = vadd.f32 %v8189_v12, %v8153_v26  ;;  %v686_v42 = vpop.f32.mrf.mxu0 }
  0xf6   : > { %v907_v21 = vpop.f32.mrf.mxu1 }
  0xf7   : > { %v10095_v29 = vadd.f32 %v907_v21, %v686_v42  ;;  %v8156_v3 = vpop.f32.mrf.mxu0 }
  0xf8   : > { %v8192_v5 = vpop.f32.mrf.mxu1 }
  0xf9   : > { %v10097_v7 = vadd.f32 %v8192_v5, %v8156_v3  ;;  %v699_v8 = vpop.f32.mrf.mxu0 }
  0xfa   : > { %v920_v14 = vpop.f32.mrf.mxu1 }
  0xfb   : > { %v10099_v9 = vadd.f32 %v920_v14, %v699_v8  ;;  %v8157_v6 = vpop.f32.mrf.mxu0  ;;  %v9028_v14 = vmov 0  }
  0xfc   : > { %v8193_v55 = vpop.f32.mrf.mxu1  ;;  %3660 = vst [vmem:[#allocation2 + $0xc] sm:$0xf] %v9028_v14  ;;  %3657 = vst [vmem:[#allocation2] sm:$0xf] %v9028_v14 }
  0xfd   : > { %v10101_v31 = vadd.f32 %v8193_v55, %v8157_v6  ;;  %v702_v47 = vpop.f32.mrf.mxu0  ;;  %3658 = vst [vmem:[#allocation2 + $0x4] sm:$0xf] %v9028_v14  ;;  %3659 = vst [vmem:[#allocation2 + $0x8] sm:$0x1] %v9028_v14 }
  0xfe   : > { %v923_v11 = vpop.f32.mrf.mxu1  ;;  %3661 = vst [vmem:[#allocation2 + $0x10] sm:$0xf] %v9028_v14  ;;  %3662 = vst [vmem:[#allocation2 + $0x14] sm:$0x1] %v9028_v14 }
  0xff   : > { %v10103_v49 = vadd.f32 %v923_v11, %v702_v47  ;;  %v8160_v17 = vpop.f32.mrf.mxu0  ;;  %3663 = vst [vmem:[#allocation2 + $0x18] sm:$0xf] %v9028_v14  ;;  %3664 = vst [vmem:[#allocation2 + $0x1c] sm:$0xf] %v9028_v14 }
 0x100   : > { %v8196_v16 = vpop.f32.mrf.mxu1  ;;  %3665 = vst [vmem:[#allocation2 + $0x20] sm:$0x1] %v9028_v14  ;;  %3666 = vst [vmem:[#allocation2 + $0x24] sm:$0xf] %v9028_v14 }
 0x101   : > { %v10105_v22 = vadd.f32 %v8196_v16, %v8160_v17  ;;  %v715_v39 = vpop.f32.mrf.mxu0  ;;  %3667 = vst [vmem:[#allocation2 + $0x28] sm:$0xf] %v9028_v14  ;;  %3668 = vst [vmem:[#allocation2 + $0x2c] sm:$0x1] %v9028_v14 }
 0x102   : > { %v936_v23 = vpop.f32.mrf.mxu1  ;;  %3669 = vst [vmem:[#allocation2 + $0x30] sm:$0xf] %v9028_v14  ;;  %3670 = vst [vmem:[#allocation2 + $0x34] sm:$0xf] %v9028_v14 }
 0x103   : > { %v10107_v30 = vadd.f32 %v936_v23, %v715_v39  ;;  %v8161_v38 = vpop.f32.mrf.mxu0  ;;  %3671 = vst [vmem:[#allocation2 + $0x38] sm:$0x1] %v9028_v14  ;;  %3672 = vst [vmem:[#allocation2 + $0x3c] sm:$0xf] %v9028_v14 }
 0x104   : > { %v8197_v50 = vpop.f32.mrf.mxu1  ;;  %3673 = vst [vmem:[#allocation2 + $0x40] sm:$0xf] %v9028_v14  ;;  %3674 = vst [vmem:[#allocation2 + $0x44] sm:$0x1] %v9028_v14 }
 0x105   : > { %v10109_v20 = vadd.f32 %v8197_v50, %v8161_v38  ;;  %v718_v43 = vpop.f32.mrf.mxu0  ;;  %3675 = vst [vmem:[#allocation2 + $0x48] sm:$0xf] %v9028_v14  ;;  %3676 = vst [vmem:[#allocation2 + $0x4c] sm:$0xf] %v9028_v14 }
 0x106   : > { %v939_v41 = vpop.f32.mrf.mxu1  ;;  %3677 = vst [vmem:[#allocation2 + $0x50] sm:$0x1] %v9028_v14  ;;  %3678 = vst [vmem:[#allocation2 + $0x54] sm:$0xf] %v9028_v14 }
 0x107   : > { %v10111_v35 = vadd.f32 %v939_v41, %v718_v43  ;;  %v8164_v45 = vpop.f32.mrf.mxu0  ;;  %3679 = vst [vmem:[#allocation2 + $0x58] sm:$0xf] %v9028_v14  ;;  %3680 = vst [vmem:[#allocation2 + $0x5c] sm:$0x1] %v9028_v14 }
 0x108   : > { %v8200_v34 = vpop.f32.mrf.mxu1  ;;  %3681 = vst [vmem:[#allocation2 + $0x60] sm:$0xf] %v9028_v14  ;;  %3682 = vst [vmem:[#allocation2 + $0x64] sm:$0xf] %v9028_v14 }
 0x109   : > { %v10113_v18 = vadd.f32 %v8200_v34, %v8164_v45  ;;  %v731_v24 = vpop.f32.mrf.mxu0  ;;  %3683 = vst [vmem:[#allocation2 + $0x68] sm:$0x1] %v9028_v14  ;;  %3684 = vst [vmem:[#allocation2 + $0x6c] sm:$0xf] %v9028_v14 }
 0x10a   : > { %v952_v58 = vpop.f32.mrf.mxu1  ;;  %3685 = vst [vmem:[#allocation2 + $0x70] sm:$0xf] %v9028_v14  ;;  %3686 = vst [vmem:[#allocation2 + $0x74] sm:$0x1] %v9028_v14 }
 0x10b   : > { %v10115_v57 = vadd.f32 %v952_v58, %v731_v24  ;;  %v8165_v63 = vpop.f32.mrf.mxu0 }
 0x10c   : > { %v8201_v46 = vpop.f32.mrf.mxu1 }
 0x10d   : > { %v10117_v53 = vadd.f32 %v8201_v46, %v8165_v63  ;;  %v734_v36 = vpop.f32.mrf.mxu0 }
 0x10e   : > { %v955_v52 = vpop.f32.mrf.mxu1 }
 0x10f   : > { %v10119_v54 = vadd.f32 %v955_v52, %v734_v36 }
 0x110   : > { %v8204_v56 = vpop.f32.mrf.mxu1 }
 0x111   : > { %v8168_v51 = vpop.f32.mrf.mxu0 }
 0x112   : > { %v968_v27 = vpop.f32.mrf.mxu1  ;;  %v10121_v59 = vadd.f32 %v8204_v56, %v8168_v51 }
 0x113   : > { %v747_v40 = vpop.f32.mrf.mxu0 }
 0x114   : > { %v8205_v25 = vpop.f32.mrf.mxu1  ;;  %v10123_v60 = vadd.f32 %v968_v27, %v747_v40 }
 0x115   : > { %v8169_v32 = vpop.f32.mrf.mxu0 }
 0x116   : > { %v971_v19 = vpop.f32.mrf.mxu1  ;;  %v10125_v2 = vadd.f32 %v8205_v25, %v8169_v32 }
 0x117   : > { %v750_v61 = vpop.f32.mrf.mxu0 }
 0x118   : > { %v8260_v4 = vpop.f32.mrf.mxu1  ;;  %v10127_v62 = vadd.f32 %v971_v19, %v750_v61 }
 0x11a   : > { %v1507_v48 = vpop.f32.mrf.mxu1  ;;  %v8224_v13 = vpop.f32.mrf.mxu0 }
 0x11b   : > { %v1306_v0 = vadd.f32 %v8224_v13, %v10085_v44 }
 0x11c   : > { %v8261_v1 = vpop.f32.mrf.mxu1  ;;  %v1225_v26 = vpop.f32.mrf.mxu0 }
 0x11d   : > { %v1304_v12 = vadd.f32 %v1225_v26, %v10091_v10  ;;  %v10131_v15 = vadd.f32 %v8260_v4, %v1306_v0 }
 0x11e   : > { %v1510_v42 = vpop.f32.mrf.mxu1  ;;  %v8225_v21 = vpop.f32.mrf.mxu0 }
 0x11f   : > { %v1307_v3 = vadd.f32 %v8225_v21, %v10093_v33  ;;  %v10134_v5 = vadd.f32 %v1507_v48, %v1304_v12 }
 0x120   : > { %v8264_v8 = vpop.f32.mrf.mxu1  ;;  %v1228_v44 = vpop.f32.mrf.mxu0 }
 0x121   : > { %v1305_v10 = vadd.f32 %v1228_v44, %v10095_v29  ;;  %v10137_v33 = vadd.f32 %v8261_v1, %v1307_v3 }
 0x122   : > { %v1523_v6 = vpop.f32.mrf.mxu1  ;;  %v8228_v55 = vpop.f32.mrf.mxu0 }
 0x123   : > { %v1310_v47 = vadd.f32 %v8228_v55, %v10097_v7  ;;  %v10140_v11 = vadd.f32 %v1510_v42, %v1305_v10 }
 0x124   : > { %v8265_v16 = vpop.f32.mrf.mxu1  ;;  %v1241_v17 = vpop.f32.mrf.mxu0 }
 0x125   : > { %v1308_v23 = vadd.f32 %v1241_v17, %v10099_v9  ;;  %v10143_v39 = vadd.f32 %v8264_v8, %v1310_v47 }
 0x126   : > { %v1526_v50 = vpop.f32.mrf.mxu1  ;;  %v8229_v38 = vpop.f32.mrf.mxu0 }
 0x127   : > { %v1311_v41 = vadd.f32 %v8229_v38, %v10101_v31  ;;  %v10146_v43 = vadd.f32 %v1523_v6, %v1308_v23 }
 0x128   : > { %v8268_v29 = vpop.f32.mrf.mxu1  ;;  %v1244_v34 = vpop.f32.mrf.mxu0 }
 0x129   : > { %v1309_v45 = vadd.f32 %v1244_v34, %v10103_v49  ;;  %v10149_v58 = vadd.f32 %v8265_v16, %v1311_v41 }
 0x12a   : > { %v1539_v7 = vpop.f32.mrf.mxu1  ;;  %v8232_v24 = vpop.f32.mrf.mxu0 }
 0x12b   : > { %v1314_v46 = vadd.f32 %v8232_v24, %v10105_v22  ;;  %v10152_v63 = vadd.f32 %v1526_v50, %v1309_v45 }
 0x12c   : > { %v8269_v9 = vpop.f32.mrf.mxu1  ;;  %v1257_v52 = vpop.f32.mrf.mxu0 }
 0x12d   : > { %v1312_v36 = vadd.f32 %v1257_v52, %v10107_v30  ;;  %v10155_v56 = vadd.f32 %v8268_v29, %v1314_v46 }
 0x12e   : > { %v1542_v31 = vpop.f32.mrf.mxu1  ;;  %v8233_v27 = vpop.f32.mrf.mxu0 }
 0x12f   : > { %v1315_v51 = vadd.f32 %v8233_v27, %v10109_v20  ;;  %v10158_v25 = vadd.f32 %v1539_v7, %v1312_v36 }
 0x130   : > { %v8272_v49 = vpop.f32.mrf.mxu1  ;;  %v1260_v40 = vpop.f32.mrf.mxu0 }
 0x131   : > { %v1313_v19 = vadd.f32 %v1260_v40, %v10111_v35  ;;  %v10161_v32 = vadd.f32 %v8269_v9, %v1315_v51 }
 0x132   : > { %v1555_v22 = vpop.f32.mrf.mxu1  ;;  %v8236_v4 = vpop.f32.mrf.mxu0 }
 0x133   : > { %v1318_v61 = vadd.f32 %v8236_v4, %v10113_v18  ;;  %v10164_v48 = vadd.f32 %v1542_v31, %v1313_v19 }
 0x134   : > { %v8273_v30 = vpop.f32.mrf.mxu1  ;;  %v1273_v13 = vpop.f32.mrf.mxu0 }
 0x135   : > { %v1316_v0 = vadd.f32 %v1273_v13, %v10115_v57  ;;  %v1600_v1 = vadd.f32 %v8272_v49, %v1318_v61 }
 0x136   : > { %v1558_v20 = vpop.f32.mrf.mxu1  ;;  %v8237_v26 = vpop.f32.mrf.mxu0 }
 0x137   : > { %v1319_v12 = vadd.f32 %v8237_v26, %v10117_v53  ;;  %v1598_v42 = vadd.f32 %v1555_v22, %v1316_v0 }
 0x138   : > { %v8276_v21 = vpop.f32.mrf.mxu1  ;;  %v1276_v35 = vpop.f32.mrf.mxu0 }
 0x139   : > { %v1317_v3 = vadd.f32 %v1276_v35, %v10119_v54  ;;  %v1601_v8 = vadd.f32 %v8273_v30, %v1319_v12 }
 0x13a   : > { %v1571_v14 = vpop.f32.mrf.mxu1  ;;  %v8240_v44 = vpop.f32.mrf.mxu0 }
 0x13b   : > { %v1322_v18 = vadd.f32 %v8240_v44, %v10121_v59  ;;  %v1599_v10 = vadd.f32 %v1558_v20, %v1317_v3 }
 0x13c   : > { %v8277_v6 = vpop.f32.mrf.mxu1  ;;  %v1289_v55 = vpop.f32.mrf.mxu0 }
 0x13d   : > { %v1320_v57 = vadd.f32 %v1289_v55, %v10123_v60  ;;  %v1604_v47 = vadd.f32 %v8276_v21, %v1322_v18 }
 0x13e   : > { %v1574_v16 = vpop.f32.mrf.mxu1  ;;  %v8241_v17 = vpop.f32.mrf.mxu0 }
 0x13f   : > { %v1323_v53 = vadd.f32 %v8241_v17, %v10125_v2  ;;  %v1602_v23 = vadd.f32 %v1571_v14, %v1320_v57 }
 0x140   : > { %v10172_v50 = vpop.f32.mrf.mxu1  ;;  %v1292_v38 = vpop.f32.mrf.mxu0 }
 0x141   : > { %v1321_v54 = vadd.f32 %v1292_v38, %v10127_v62  ;;  %v1605_v41 = vadd.f32 %v8277_v6, %v1323_v53 }
 0x142   : > { %v10175_v29 = vpop.f32.mrf.mxu1  ;;  %v8296_v59 = vpop.f32.mrf.mxu0 }
 0x143   : > { %v1603_v34 = vadd.f32 %v1574_v16, %v1321_v54  ;;  %v10178_v45 = vadd.f32 %v8296_v59, %v10131_v15 }
 0x144   : > { %v10180_v60 = vpop.f32.mrf.mxu1  ;;  %v2015_v7 = vpop.f32.mrf.mxu0 }
 0x145   : > { %v10183_v24 = vadd.f32 %v2015_v7, %v10134_v5 }
 0x146   : > { %v10185_v2 = vpop.f32.mrf.mxu1  ;;  %v8297_v46 = vpop.f32.mrf.mxu0 }
 0x147   : > { %v10188_v9 = vadd.f32 %v8297_v46, %v10137_v33 }
 0x148   : > { %v10190_v62 = vpop.f32.mrf.mxu1  ;;  %v2018_v52 = vpop.f32.mrf.mxu0 }
 0x149   : > { %v10193_v36 = vadd.f32 %v2018_v52, %v10140_v11 }
 0x14a   : > { %v10195_v15 = vpop.f32.mrf.mxu1  ;;  %v8300_v31 = vpop.f32.mrf.mxu0 }
 0x14b   : > { %v10198_v27 = vadd.f32 %v8300_v31, %v10143_v39 }
 0x14c   : > { %v10200_v5 = vpop.f32.mrf.mxu1  ;;  %v2031_v51 = vpop.f32.mrf.mxu0 }
 0x14d   : > { %v10203_v49 = vadd.f32 %v2031_v51, %v10146_v43 }
 0x14e   : > { %v10205_v33 = vpop.f32.mrf.mxu1  ;;  %v8301_v40 = vpop.f32.mrf.mxu0 }
 0x14f   : > { %v10208_v19 = vadd.f32 %v8301_v40, %v10149_v58 }
 0x150   : > { %v2034_v11 = vpop.f32.mrf.mxu0  ;;  %v10213_v4 = vpop.f32.mrf.mxu1 }
 0x151   : > { %v10211_v22 = vadd.f32 %v2034_v11, %v10152_v63 }
 0x152   : > { %v8304_v39 = vpop.f32.mrf.mxu0  ;;  %v10218_v30 = vpop.f32.mrf.mxu1 }
 0x153   : > { %v10216_v61 = vadd.f32 %v8304_v39, %v10155_v56 }
 0x154   : > { %v2047_v43 = vpop.f32.mrf.mxu0  ;;  %v10223_v0 = vpop.f32.mrf.mxu1 }
 0x155   : > { %v10221_v13 = vadd.f32 %v2047_v43, %v10158_v25 }
 0x156   : > { %v8305_v58 = vpop.f32.mrf.mxu0  ;;  %v10231_v12 = vpop.f32.mrf.mxu1 }
 0x157   : > { %v10226_v20 = vadd.f32 %v8305_v58, %v10161_v32 }
 0x158   : > { %v2050_v63 = vpop.f32.mrf.mxu0  ;;  %v10235_v35 = vpop.f32.mrf.mxu1 }
 0x159   : > { %v10229_v26 = vadd.f32 %v2050_v63, %v10164_v48 }
 0x15a   : > { %v8308_v56 = vpop.f32.mrf.mxu0  ;;  %v10239_v14 = vpop.f32.mrf.mxu1 }
 0x15b   : > { %v10233_v21 = vadd.f32 %v8308_v56, %v1600_v1 }
 0x15c   : > { %v2063_v3 = vpop.f32.mrf.mxu0  ;;  %v10243_v32 = vpop.f32.mrf.mxu1 }
 0x15d   : > { %v10237_v25 = vadd.f32 %v2063_v3, %v1598_v42 }
 0x15e   : > { %v8309_v44 = vpop.f32.mrf.mxu0  ;;  %v10247_v55 = vpop.f32.mrf.mxu1 }
 0x15f   : > { %v10241_v18 = vadd.f32 %v8309_v44, %v1601_v8 }
 0x160   : > { %v2066_v6 = vpop.f32.mrf.mxu0 }
 0x161   : > { %v10245_v48 = vadd.f32 %v2066_v6, %v1599_v10 }
 0x162   : > { %v8312_v57 = vpop.f32.mrf.mxu0 }
 0x163   : > { %v10249_v1 = vadd.f32 %v8312_v57, %v1604_v47 }
 0x164   : > { %v10251_v16 = vpop.f32.mrf.mxu1  ;;  %v2079_v17 = vpop.f32.mrf.mxu0 }
 0x165   : > { %v10253_v42 = vadd.f32 %v2079_v17, %v1602_v23 }
 0x166   : > { %v10255_v53 = vpop.f32.mrf.mxu1  ;;  %v8313_v38 = vpop.f32.mrf.mxu0 }
 0x167   : > { %v10257_v8 = vadd.f32 %v8313_v38, %v1605_v41 }
 0x168   : > { %v10259_v54 = vpop.f32.mrf.mxu1  ;;  %v2082_v59 = vpop.f32.mrf.mxu0 }
 0x169   : > { %v10261_v10 = vadd.f32 %v2082_v59, %v1603_v34 }
 0x16a   : > { %v10263_v7 = vpop.f32.mrf.mxu1  ;;  %v8368_v46 = vpop.f32.mrf.mxu0 }
 0x16c   : > { %v2645_v47 = vpop.f32.mrf.mxu0 }
 0x16e   : > { %v8404_v52 = vpop.f32.mrf.mxu1  ;;  %v8369_v31 = vpop.f32.mrf.mxu0 }
 0x170   : > { %v10265_v51 = vpop.f32.mrf.mxu1  ;;  %v2648_v23 = vpop.f32.mrf.mxu0 }
 0x171   : > { %11412 = vst [vmem:[#allocation5_spill] sm:$0xff] %v10265_v51 }
 0x172   : > { %v10267_v40 = vpop.f32.mrf.mxu1  ;;  %v8372_v11 = vpop.f32.mrf.mxu0 }
 0x173   : > { %11413 = vst [vmem:[#allocation6_spill] sm:$0xff] %v10267_v40 }
 0x174   : > { %v10269_v39 = vpop.f32.mrf.mxu1  ;;  %v2661_v41 = vpop.f32.mrf.mxu0 }
 0x175   : > { %11414 = vst [vmem:[#allocation7_spill] sm:$0xff] %v10269_v39 }
 0x176   : > { %v8373_v43 = vpop.f32.mrf.mxu0 }
 0x177   : > { %v10271_v58 = vpop.f32.mrf.mxu1 }
 0x178   : > { %11415 = vst [vmem:[#allocation8_spill] sm:$0xff] %v10271_v58  ;;  %v2664_v34 = vpop.f32.mrf.mxu0 }
 0x179   : > { %v3169_v63 = vpop.f32.mrf.mxu1 }
 0x17a   : > { %v8376_v56 = vpop.f32.mrf.mxu0 }
 0x17b   : > { %v10273_v3 = vpop.f32.mrf.mxu1 }
 0x17c   : > { %11416 = vst [vmem:[#allocation9_spill] sm:$0xff] %v10273_v3  ;;  %v2677_v44 = vpop.f32.mrf.mxu0 }
 0x17d   : > { %v10275_v6 = vpop.f32.mrf.mxu1 }
 0x17e   : > { %11417 = vst [vmem:[#allocation10_spill] sm:$0xff] %v10275_v6  ;;  %v8377_v57 = vpop.f32.mrf.mxu0  ;;  %v2444_v6 = vadd.f32 %v10172_v50, %v10178_v45  ;;  %v2449_v50 = vadd.f32 %v10200_v5, %v10208_v19  ;;  %v2452_v45 = vadd.f32 %v10213_v4, %v10216_v61  ;;  %v2457_v5 = vadd.f32 %v10243_v32, %v10241_v18 }
 0x17f   : > { %v10277_v17 = vpop.f32.mrf.mxu1  ;;  %v2459_v32 = vadd.f32 %v10263_v7, %v10261_v10 }
 0x180   : > { %11418 = vst [vmem:[#allocation11_spill] sm:$0xff] %v10277_v17  ;;  %v2680_v38 = vpop.f32.mrf.mxu0  ;;  %v2442_v17 = vadd.f32 %v10175_v29, %v10183_v24  ;;  %v2447_v29 = vadd.f32 %v10205_v33, %v10211_v22  ;;  %v2455_v22 = vadd.f32 %v10247_v55, %v10245_v48  ;;  %v11425_v48 = vld [vmem:[#allocation5_spill] sm:$0xff] }
 0x181   : > { %v10279_v59 = vpop.f32.mrf.mxu1 }
 0x182   : > { %11419 = vst [vmem:[#allocation12_spill] sm:$0xff] %v10279_v59  ;;  %v8380_v28 = vpop.f32.mrf.mxu0 }
 0x183   : > { %v10281_v37 = vpop.f32.mrf.mxu1  ;;  %v11429_v10 = vld [vmem:[#allocation9_spill] sm:$0xff] }
 0x184   : > { %11420 = vst [vmem:[#allocation13_spill] sm:$0xff] %v10281_v37  ;;  %v10283_v39 = vpop.f32.mrf.mxu0  ;;  %v2445_v37 = vadd.f32 %v10180_v60, %v10188_v9  ;;  %v2450_v60 = vadd.f32 %v10218_v30, %v10221_v13  ;;  %v2451_v9 = vadd.f32 %v10231_v12, %v10229_v26  ;;  %v2731_v26 = vadd.f32 %v8373_v43, %v2449_v50 }
 0x185   : > { %v10285_v58 = vpop.f32.mrf.mxu1  ;;  %v2729_v12 = vadd.f32 %v2664_v34, %v2447_v29 }
 0x186   : > { %11421 = vst [vmem:[#allocation14_spill] sm:$0xff] %v10285_v58  ;;  %v10287_v40 = vpop.f32.mrf.mxu0  ;;  %v2443_v58 = vadd.f32 %v10185_v2, %v10193_v36  ;;  %v2453_v2 = vadd.f32 %v10223_v0, %v10226_v20  ;;  %v2726_v36 = vadd.f32 %v8368_v46, %v2444_v6  ;;  %v2727_v33 = vadd.f32 %v8369_v31, %v2445_v37  ;;  %v11426_v46 = vld [vmem:[#allocation6_spill] sm:$0xff] }
 0x187   : > { %11422 = vst [vmem:[#allocation15_spill] sm:$0xff] %v10287_v40  ;;  %v2448_v40 = vadd.f32 %v10190_v62, %v10198_v27  ;;  %v2456_v62 = vadd.f32 %v10235_v35, %v10233_v21  ;;  %v2454_v27 = vadd.f32 %v10239_v14, %v10237_v25  ;;  %v2460_v0 = vadd.f32 %v10251_v16, %v10249_v1  ;;  %v11431_v34 = vld [vmem:[#allocation11_spill] sm:$0xff] }
 0x188   : > { %v10289_v51 = vpop.f32.mrf.mxu0  ;;  %v10291_v3 = vpop.f32.mrf.mxu1  ;;  %v2725_v4 = vadd.f32 %v2648_v23, %v2443_v58  ;;  %v2458_v20 = vadd.f32 %v10255_v53, %v10253_v42  ;;  %v2461_v37 = vadd.f32 %v10259_v54, %v10257_v8  ;;  %v3234_v35 = vadd.f32 %v8404_v52, %v2726_v36  ;;  %v10344_v42 = vld [vmem:[%s11398_s2] ss:$0 sm:$0xff]  ;;  %v11427_v53 = vld [vmem:[#allocation7_spill] sm:$0xff] }
 0x189   : > { %11423 = vst [vmem:[#allocation16_spill] sm:$0xff] %v10289_v51  ;;  %11424 = vst [vmem:[#allocation17_spill] sm:$0xff] %v10291_v3  ;;  %v2446_v3 = vadd.f32 %v10195_v15, %v10203_v49  ;;  %v2724_v49 = vadd.f32 %v2645_v47, %v2442_v17  ;;  %v2730_v61 = vadd.f32 %v8372_v11, %v2448_v40  ;;  %v11428_v54 = vld [vmem:[#allocation8_spill] sm:$0xff]  ;;  %v11430_v40 = vld [vmem:[#allocation10_spill] sm:$0xff] }
 0x18a   : > { %v10297_v59 = vpop.f32.mrf.mxu0  ;;  %v10307_v51 = vpop.f32.mrf.mxu1  ;;  %v2734_v25 = vadd.f32 %v8376_v56, %v2452_v45  ;;  %v2732_v14 = vadd.f32 %v2677_v44, %v2450_v60  ;;  %v3235_v1 = vadd.f32 %v11426_v46, %v2727_v33  ;;  %v2735_v16 = vadd.f32 %v8377_v57, %v2453_v2 }
 0x18b   : > { %v2728_v30 = vadd.f32 %v2661_v41, %v2446_v3  ;;  %v3232_v55 = vadd.f32 %v11425_v48, %v2724_v49  ;;  %v3233_v8 = vadd.f32 %v11427_v53, %v2725_v4  ;;  %v3238_v52 = vadd.f32 %v11428_v54, %v2730_v61  ;;  %v11432_v3 = vld [vmem:[#allocation12_spill] sm:$0xff]  ;;  %v11433_v17 = vld [vmem:[#allocation13_spill] sm:$0xff] }
 0x18c   : > { %v2709_v24 = vpop.f32.mrf.mxu0  ;;  %v10323_v15 = vpop.f32.mrf.mxu1  ;;  %v10349_v7 = vadd.f32 %v11429_v10, %v2731_v26  ;;  %v10352_v11 = vadd.f32 %v11430_v40, %v2729_v12  ;;  %v2733_v41 = vadd.f32 %v2680_v38, %v2451_v9  ;;  %v2738_v43 = vadd.f32 %v8380_v28, %v2456_v62 }
 0x18d   : > { %v3236_v31 = vadd.f32 %v3169_v63, %v2728_v30  ;;  %v10355_v56 = vadd.f32 %v11431_v34, %v2734_v25  ;;  %v10358_v44 = vadd.f32 %v11432_v3, %v2732_v14  ;;  %v10362_v50 = vadd.f32 %v11433_v17, %v2735_v16  ;;  %v11436_v33 = vld [vmem:[#allocation14_spill] sm:$0xff]  ;;  %v3943_v34 = vld [vmem:[#allocation2] sm:$0xf] }
 0x18e   : > { %v8385_v19 = vpop.f32.mrf.mxu0  ;;  %v3204_v13 = vpop.f32.mrf.mxu1  ;;  %v2736_v29 = vadd.f32 %v10283_v39, %v2454_v27  ;;  %v11434_v45 = vld [vmem:[#allocation15_spill] sm:$0xff]  ;;  %v2742_v9 = vadd.f32 %v10297_v59, %v2460_v0  ;;  %v10370_v4 = vadd.f32 %v11436_v33, %v2733_v41  ;;  %v2740_v39 = vadd.f32 %v2709_v24, %v2458_v20 }
 0x18f   : > { %v2739_v60 = vadd.f32 %v11434_v45, %v2457_v5  ;;  %v2743_v27 = vadd.f32 %v8385_v19, %v2461_v37 }
 0x190   : > { %v2712_v21 = vpop.f32.mrf.mxu0  ;;  %v8420_v18 = vpop.f32.mrf.mxu1  ;;  %v11435_v38 = vld [vmem:[#allocation16_spill] sm:$0xff]  ;;  %v11437_v61 = vld [vmem:[#allocation17_spill] sm:$0xff]  ;;  %v10377_v0 = vadd.f32 %v10307_v51, %v2736_v29 }
 0x191   : > { %v2737_v28 = vadd.f32 %v11435_v38, %v2455_v22  ;;  %v10373_v30 = vadd.f32 %v11437_v61, %v2738_v43  ;;  %v10380_v25 = vadd.f32 %v10323_v15, %v2739_v60  ;;  %v10384_v48 = vadd.f32 %v2712_v21, %v2459_v32 }
 0x192   : > { %v8440_v47 = vpop.f32.mrf.mxu0  ;;  %v3217_v6 = vpop.f32.mrf.mxu1  ;;  %v10386_v24 = vadd.f32 %v8420_v18, %v2742_v9  ;;  %v3952_v18 = vld [vmem:[#allocation2 + $0xc] sm:$0xf] }
 0x193   : > { %v3582_v23 = vadd.f32 %v8440_v47, %v3234_v35  ;;  %v10382_v14 = vadd.f32 %v3204_v13, %v2737_v28  ;;  %v10388_v46 = vadd.f32 %v3217_v6, %v2740_v39 }
 0x194   : > { %v3501_v58 = vpop.f32.mrf.mxu0  ;;  %v8421_v22 = vpop.f32.mrf.mxu1 }
 0x195   : > { %v3609_v63 = vadd.f32 %v10344_v42, %v3582_v23  ;;  %v3580_v57 = vadd.f32 %v3501_v58, %v3232_v55 }
 0x196   : > { %v8441_v2 = vpop.f32.mrf.mxu0 }
 0x197   : > { %v3629_v62 = vmax.f32 %v3609_v63, 0.0  ;;  %v3607_v36 = vadd.f32 %v10344_v42, %v3580_v57  ;;  %v3583_v49 = vadd.f32 %v8441_v2, %v3235_v1  ;;  %v10390_v1 = vadd.f32 %v8421_v22, %v2743_v27  ;;  %v3956_v2 = vld [vmem:[#allocation2 + $0x14] sm:$0x1] }
 0x198   : > { %v3504_v5 = vpop.f32.mrf.mxu0 }
 0x199   : > { %v7810_v26 = vpack.c.bf16 %v3629_v62, %v3629_v62  ;;  %v3627_v12 = vmax.f32 %v3607_v36, 0.0  ;;  %v3610_v35 = vadd.f32 %v10344_v42, %v3583_v49  ;;  %v3581_v59 = vadd.f32 %v3504_v5, %v3233_v8 }
 0x19a   : > { %v8444_v55 = vpop.f32.mrf.mxu0 }
 0x19b   : > { %v3758_v19 = vshrl.u32 %v7810_v26, 16  ;;  %v7808_v20 = vpack.c.bf16 %v3627_v12, %v3627_v12  ;;  %v3630_v37 = vmax.f32 %v3610_v35, 0.0  ;;  %v3608_v51 = vadd.f32 %v10344_v42, %v3581_v59 }
 0x19c   : > { %v3586_v16 = vadd.f32 %v8444_v55, %v3238_v52  ;;  %v3517_v47 = vpop.f32.mrf.mxu0  ;;  %v3761_v53 = vshll.u32 %v7810_v26, 16 }
 0x19d   : > { %v3760_v15 = vrot.slane %v3758_v19, 7  ;;  %v3741_v13 = vshrl.u32 %v7808_v20, 16  ;;  %v7811_v8 = vpack.c.bf16 %v3630_v37, %v3630_v37  ;;  %v3744_v32 = vshll.u32 %v7808_v20, 16  ;;  %v3949_v20 = vld [vmem:[#allocation2 + $0x8] sm:$0x1] }
 0x19e   : > { %v3628_v54 = vmax.f32 %v3608_v51, 0.0  ;;  %v3613_v23 = vadd.f32 %v10344_v42, %v3586_v16  ;;  %v3584_v10 = vadd.f32 %v3517_v47, %v3236_v31  ;;  %v8445_v40 = vpop.f32.mrf.mxu0 }
 0x19f   : > { %v3763_v41 = vor.u32 %v3761_v53, %v3760_v15  ;;  %v3764_v52 = vrot.slane %v3760_v15, 4  ;;  %v3743_v43 = vrot.slane %v3741_v13, 7  ;;  %v3766_v58 = vshrl.u32 %v7811_v8, 16  ;;  %v3966_v13 = vld [vmem:[#allocation2 + $0x24] sm:$0xf] }
 0x1a0   : > { %v3769_v3 = vshll.u32 %v7811_v8, 16  ;;  %v7809_v6 = vpack.c.bf16 %v3628_v54, %v3628_v54  ;;  %v3633_v63 = vmax.f32 %v3613_v23, 0.0  ;;  %v3611_v57 = vadd.f32 %v10344_v42, %v3584_v10  ;;  %v3520_v17 = vpop.f32.mrf.mxu0 }
 0x1a1   : > { %v3953_v29 = vsel %vm10395_vm11, %v3763_v41, %v3952_v18  ;;  %v3746_v45 = vor.u32 %v3744_v32, %v3743_v43  ;;  %v3747_v60 = vrot.slane %v3743_v43, 4  ;;  %v3768_v38 = vrot.slane %v3766_v58, 7 }
 0x1a2   : > { %3954 = vst [vmem:[#allocation2 + $0xc] sm:$0xf] %v3953_v29  ;;  %v3749_v9 = vshrl.u32 %v7809_v6, 16  ;;  %v3752_v62 = vshll.u32 %v7809_v6, 16  ;;  %v7814_v36 = vpack.c.bf16 %v3633_v63, %v3633_v63  ;;  %v3631_v49 = vmax.f32 %v3611_v57, 0.0  ;;  %v8448_v33 = vpop.f32.mrf.mxu0 }
 0x1a3   : > { %v3944_v61 = vsel %vm10395_vm11, %v3746_v45, %v3943_v34  ;;  %v3771_v39 = vor.u32 %v3769_v3, %v3768_v38  ;;  %v3773_v27 = vrot.slane %v3768_v38, 4  ;;  %v3587_v5 = vadd.f32 %v8445_v40, %v10349_v7 }
 0x1a4   : > { %3945 = vst [vmem:[#allocation2] sm:$0xf] %v3944_v61  ;;  %v3751_v22 = vrot.slane %v3749_v9, 7  ;;  %v3792_v26 = vshrl.u32 %v7814_v36, 16  ;;  %v3795_v12 = vshll.u32 %v7814_v36, 16  ;;  %v7812_v35 = vpack.c.bf16 %v3631_v49, %v3631_v49  ;;  %v3533_v59 = vpop.f32.mrf.mxu0 }
 0x1a5   : > { %v3772_v55 = vsel %vm10405_vm12, %v3764_v52, %v3771_v39  ;;  %v3957_v19 = vsel %vm10411_vm13, %v3773_v27, %v3956_v2  ;;  %v3614_v37 = vadd.f32 %v10344_v42, %v3587_v5  ;;  %v3585_v51 = vadd.f32 %v3520_v17, %v10352_v11  ;;  %v3970_v61 = vld [vmem:[#allocation2 + $0x2c] sm:$0x1] }
 0x1a6   : > { %3955 = vst [vmem:[#allocation2 + $0x10] sm:$0xf] %v3772_v55  ;;  %3958 = vst [vmem:[#allocation2 + $0x14] sm:$0x1] %v3957_v19  ;;  %v3754_v7 = vor.u32 %v3752_v62, %v3751_v22  ;;  %v3756_v16 = vrot.slane %v3751_v22, 4  ;;  %v3794_v47 = vrot.slane %v3792_v26, 7  ;;  %v8449_v53 = vpop.f32.mrf.mxu0  ;;  %v3590_v54 = vadd.f32 %v8448_v33, %v10355_v56 }
 0x1a7   : > { %v3775_v15 = vshrl.u32 %v7812_v35, 16  ;;  %v3778_v8 = vshll.u32 %v7812_v35, 16  ;;  %v3634_v18 = vmax.f32 %v3614_v37, 0.0  ;;  %v3612_v32 = vadd.f32 %v10344_v42, %v3585_v51  ;;  %v3959_v56 = vld [vmem:[#allocation2 + $0x18] sm:$0xf] }
 0x1a8   : > { %v3755_v23 = vsel %vm10405_vm12, %v3747_v60, %v3754_v7  ;;  %v3950_v11 = vsel %vm10411_vm13, %v3756_v16, %v3949_v20  ;;  %v3797_v10 = vor.u32 %v3795_v12, %v3794_v47  ;;  %v3798_v40 = vrot.slane %v3794_v47, 4  ;;  %v3536_v41 = vpop.f32.mrf.mxu0  ;;  %v3963_v47 = vld [vmem:[#allocation2 + $0x20] sm:$0x1] }
 0x1a9   : > { %3946 = vst [vmem:[#allocation2 + $0x4] sm:$0xf] %v3755_v23  ;;  %3951 = vst [vmem:[#allocation2 + $0x8] sm:$0x1] %v3950_v11  ;;  %v3777_v52 = vrot.slane %v3775_v15, 7  ;;  %v7815_v43 = vpack.c.bf16 %v3634_v18, %v3634_v18  ;;  %v3632_v58 = vmax.f32 %v3612_v32, 0.0  ;;  %v3617_v34 = vadd.f32 %v10344_v42, %v3590_v54 }
 0x1aa   : > { %v3967_v3 = vsel %vm10395_vm11, %v3797_v10, %v3966_v13  ;;  %v3588_v6 = vadd.f32 %v3533_v59, %v10358_v44  ;;  %v3591_v63 = vadd.f32 %v8449_v53, %v10362_v50  ;;  %v3589_v57 = vadd.f32 %v3536_v41, %v10370_v4  ;;  %v8452_v17 = vpop.f32.mrf.mxu0  ;;  %v3980_v23 = vld [vmem:[#allocation2 + $0x3c] sm:$0xf] }
 0x1ab   : > { %3968 = vst [vmem:[#allocation2 + $0x24] sm:$0xf] %v3967_v3  ;;  %v3780_v29 = vor.u32 %v3778_v8, %v3777_v52  ;;  %v3781_v45 = vrot.slane %v3777_v52, 4  ;;  %v3800_v60 = vshrl.u32 %v7815_v43, 16  ;;  %v3803_v38 = vshll.u32 %v7815_v43, 16 }
 0x1ac   : > { %v7813_v2 = vpack.c.bf16 %v3632_v58, %v3632_v58  ;;  %v3637_v9 = vmax.f32 %v3617_v34, 0.0  ;;  %v3615_v62 = vadd.f32 %v10344_v42, %v3588_v6  ;;  %v3618_v36 = vadd.f32 %v10344_v42, %v3591_v63  ;;  %v3549_v49 = vpop.f32.mrf.mxu0 }
 0x1ad   : > { %v3960_v44 = vsel %vm10395_vm11, %v3780_v29, %v3959_v56  ;;  %v3802_v33 = vrot.slane %v3800_v60, 7  ;;  %v3616_v50 = vadd.f32 %v10344_v42, %v3589_v57  ;;  %v3594_v4 = vadd.f32 %v8452_v17, %v10373_v30  ;;  %v3973_v29 = vld [vmem:[#allocation2 + $0x30] sm:$0xf]  ;;  %v3984_v60 = vld [vmem:[#allocation2 + $0x44] sm:$0x1] }
 0x1ae   : > { %3961 = vst [vmem:[#allocation2 + $0x18] sm:$0xf] %v3960_v44  ;;  %v3783_v39 = vshrl.u32 %v7813_v2, 16  ;;  %v3786_v27 = vshll.u32 %v7813_v2, 16  ;;  %v7818_v5 = vpack.c.bf16 %v3637_v9, %v3637_v9  ;;  %v3635_v22 = vmax.f32 %v3615_v62, 0.0  ;;  %v8453_v26 = vpop.f32.mrf.mxu0 }
 0x1af   : > { %v3805_v12 = vor.u32 %v3803_v38, %v3802_v33  ;;  %v3807_v35 = vrot.slane %v3802_v33, 4  ;;  %v3638_v59 = vmax.f32 %v3618_v36, 0.0  ;;  %v3636_v55 = vmax.f32 %v3616_v50, 0.0  ;;  %v3977_v33 = vld [vmem:[#allocation2 + $0x38] sm:$0x1] }
 0x1b0   : > { %v3785_v19 = vrot.slane %v3783_v39, 7  ;;  %v3826_v20 = vshrl.u32 %v7818_v5, 16  ;;  %v3829_v37 = vshll.u32 %v7818_v5, 16  ;;  %v7816_v51 = vpack.c.bf16 %v3635_v22, %v3635_v22  ;;  %v3552_v7 = vpop.f32.mrf.mxu0  ;;  %v3220_v5 = vpop.f32.mrf.mxu1 }
 0x1b1   : > { %v3806_v16 = vsel %vm10405_vm12, %v3798_v40, %v3805_v12  ;;  %v3971_v30 = vsel %vm10411_vm13, %v3807_v35, %v3970_v61  ;;  %v7819_v15 = vpack.c.bf16 %v3638_v59, %v3638_v59  ;;  %v7817_v53 = vpack.c.bf16 %v3636_v55, %v3636_v55 }
 0x1b2   : > { %3969 = vst [vmem:[#allocation2 + $0x28] sm:$0xf] %v3806_v16  ;;  %3972 = vst [vmem:[#allocation2 + $0x2c] sm:$0x1] %v3971_v30  ;;  %v3788_v13 = vor.u32 %v3786_v27, %v3785_v19  ;;  %v3790_v8 = vrot.slane %v3785_v19, 4  ;;  %v3828_v18 = vrot.slane %v3826_v20, 7  ;;  %v8456_v54 = vpop.f32.mrf.mxu0  ;;  %v3621_v38 = vadd.f32 %v10344_v42, %v3594_v4 }
 0x1b3   : > { %v3809_v32 = vshrl.u32 %v7816_v51, 16  ;;  %v3812_v11 = vshll.u32 %v7816_v51, 16  ;;  %v3834_v10 = vshrl.u32 %v7819_v15, 16  ;;  %v3837_v41 = vshll.u32 %v7819_v15, 16 }
 0x1b4   : > { %v3817_v52 = vshrl.u32 %v7817_v53, 16  ;;  %v3789_v40 = vsel %vm10405_vm12, %v3781_v45, %v3788_v13  ;;  %v3964_v43 = vsel %vm10411_vm13, %v3790_v8, %v3963_v47  ;;  %v3831_v58 = vor.u32 %v3829_v37, %v3828_v18  ;;  %v3565_v57 = vpop.f32.mrf.mxu0 }
 0x1b5   : > { %v3832_v34 = vrot.slane %v3828_v18, 4  ;;  %3962 = vst [vmem:[#allocation2 + $0x1c] sm:$0xf] %v3789_v40  ;;  %3965 = vst [vmem:[#allocation2 + $0x20] sm:$0x1] %v3964_v43  ;;  %v3811_v3 = vrot.slane %v3809_v32, 7  ;;  %v3592_v45 = vadd.f32 %v3549_v49, %v10377_v0  ;;  %v3595_v2 = vadd.f32 %v8453_v26, %v10380_v25 }
 0x1b6   : > { %v3836_v56 = vrot.slane %v3834_v10, 7  ;;  %v3819_v6 = vrot.slane %v3817_v52, 7  ;;  %v3820_v63 = vshll.u32 %v7817_v53, 16  ;;  %v3981_v17 = vsel %vm10395_vm11, %v3831_v58, %v3980_v23  ;;  %v8457_v4 = vpop.f32.mrf.mxu0  ;;  %v3987_v40 = vld [vmem:[#allocation2 + $0x48] sm:$0xf] }
 0x1b7   : > { %3982 = vst [vmem:[#allocation2 + $0x3c] sm:$0xf] %v3981_v17  ;;  %v3814_v9 = vor.u32 %v3812_v11, %v3811_v3  ;;  %v3815_v62 = vrot.slane %v3811_v3, 4  ;;  %v3641_v39 = vmax.f32 %v3621_v38, 0.0  ;;  %v3619_v27 = vadd.f32 %v10344_v42, %v3592_v45 }
 0x1b8   : > { %v3839_v36 = vor.u32 %v3837_v41, %v3836_v56  ;;  %v3841_v44 = vrot.slane %v3836_v56, 4  ;;  %v3822_v50 = vor.u32 %v3820_v63, %v3819_v6  ;;  %v3824_v61 = vrot.slane %v3819_v6, 4  ;;  %v3998_v6 = vld [vmem:[#allocation2 + $0x5c] sm:$0x1]  ;;  %v3568_v45 = vpop.f32.mrf.mxu0 }
 0x1b9   : > { %v3974_v22 = vsel %vm10395_vm11, %v3814_v9, %v3973_v29  ;;  %v3622_v49 = vadd.f32 %v10344_v42, %v3595_v2  ;;  %v7822_v35 = vpack.c.bf16 %v3641_v39, %v3641_v39  ;;  %v3639_v59 = vmax.f32 %v3619_v27, 0.0  ;;  %v3991_v39 = vld [vmem:[#allocation2 + $0x50] sm:$0x1] }
 0x1ba   : > { %v3840_v0 = vsel %vm10405_vm12, %v3832_v34, %v3839_v36  ;;  %v3985_v25 = vsel %vm10411_vm13, %v3841_v44, %v3984_v60  ;;  %3975 = vst [vmem:[#allocation2 + $0x30] sm:$0xf] %v3974_v22  ;;  %v3823_v26 = vsel %vm10405_vm12, %v3815_v62, %v3822_v50  ;;  %v3978_v12 = vsel %vm10411_vm13, %v3824_v61, %v3977_v33 }
 0x1bb   : > { %3983 = vst [vmem:[#allocation2 + $0x40] sm:$0xf] %v3840_v0  ;;  %3986 = vst [vmem:[#allocation2 + $0x44] sm:$0x1] %v3985_v25  ;;  %v3642_v55 = vmax.f32 %v3622_v49, 0.0  ;;  %v3593_v19 = vadd.f32 %v3552_v7, %v10382_v14  ;;  %v3598_v20 = vadd.f32 %v8456_v54, %v10386_v24  ;;  %v3596_v37 = vadd.f32 %v3565_v57, %v10388_v46 }
 0x1bc   : > { %3976 = vst [vmem:[#allocation2 + $0x34] sm:$0xf] %v3823_v26  ;;  %3979 = vst [vmem:[#allocation2 + $0x38] sm:$0x1] %v3978_v12  ;;  %v3249_v51 = vadd.f32 %v3220_v5, %v10384_v48  ;;  %v3860_v16 = vshrl.u32 %v7822_v35, 16  ;;  %v7820_v30 = vpack.c.bf16 %v3639_v59, %v3639_v59  ;;  %v3599_v47 = vadd.f32 %v8457_v4, %v10390_v1 }
 0x1bd   : > { %v7823_v15 = vpack.c.bf16 %v3642_v55, %v3642_v55  ;;  %v3620_v53 = vadd.f32 %v10344_v42, %v3593_v19  ;;  %v3625_v13 = vadd.f32 %v10344_v42, %v3598_v20  ;;  %v3623_v8 = vadd.f32 %v10344_v42, %v3596_v37  ;;  %v3994_v7 = vld [vmem:[#allocation2 + $0x54] sm:$0xf]  ;;  %v4008_v26 = vld [vmem:[#allocation2 + $0x6c] sm:$0xf]  ;;  %v4001_v12 = vld [vmem:[#allocation2 + $0x60] sm:$0xf] }
 0x1be   : > { %v3862_v18 = vrot.slane %v3860_v16, 7  ;;  %v3863_v32 = vshll.u32 %v7822_v35, 16  ;;  %v3843_v14 = vshrl.u32 %v7820_v30, 16  ;;  %v3626_v24 = vadd.f32 %v10344_v42, %v3599_v47 }
 0x1bf   : > { %v3846_v46 = vshll.u32 %v7820_v30, 16  ;;  %v3868_v54 = vshrl.u32 %v7823_v15, 16  ;;  %v3640_v48 = vmax.f32 %v3620_v53, 0.0  ;;  %v3645_v23 = vmax.f32 %v3625_v13, 0.0 }
 0x1c0   : > { %v3865_v11 = vor.u32 %v3863_v32, %v3862_v18  ;;  %v3845_v10 = vrot.slane %v3843_v14, 7  ;;  %v3871_v1 = vshll.u32 %v7823_v15, 16  ;;  %v3643_v41 = vmax.f32 %v3623_v8, 0.0  ;;  %v4012_v15 = vld [vmem:[#allocation2 + $0x74] sm:$0x1] }
 0x1c1   : > { %v3866_v52 = vrot.slane %v3862_v18, 4  ;;  %v3870_v43 = vrot.slane %v3868_v54, 7  ;;  %v7821_v58 = vpack.c.bf16 %v3640_v48, %v3640_v48  ;;  %v7826_v34 = vpack.c.bf16 %v3645_v23, %v3645_v23 }
 0x1c2   : > { %v3995_v3 = vsel %vm10395_vm11, %v3865_v11, %v3994_v7  ;;  %v3848_v56 = vor.u32 %v3846_v46, %v3845_v10  ;;  %v7824_v63 = vpack.c.bf16 %v3643_v41, %v3643_v41  ;;  %v3646_v57 = vmax.f32 %v3626_v24, 0.0  ;;  %v4005_v46 = vld [vmem:[#allocation2 + $0x68] sm:$0x1] }
 0x1c3   : > { %3996 = vst [vmem:[#allocation2 + $0x54] sm:$0xf] %v3995_v3  ;;  %v3873_v17 = vor.u32 %v3871_v1, %v3870_v43  ;;  %v3875_v29 = vrot.slane %v3870_v43, 4  ;;  %v3851_v60 = vshrl.u32 %v7821_v58, 16  ;;  %v3854_v38 = vshll.u32 %v7821_v58, 16 }
 0x1c4   : > { %v3988_v2 = vsel %vm10395_vm11, %v3848_v56, %v3987_v40  ;;  %v3894_v9 = vshrl.u32 %v7826_v34, 16  ;;  %v3897_v62 = vshll.u32 %v7826_v34, 16  ;;  %v3877_v36 = vshrl.u32 %v7824_v63, 16 }
 0x1c5   : > { %3989 = vst [vmem:[#allocation2 + $0x48] sm:$0xf] %v3988_v2  ;;  %v3874_v44 = vsel %vm10405_vm12, %v3866_v52, %v3873_v17  ;;  %v3999_v33 = vsel %vm10411_vm13, %v3875_v29, %v3998_v6  ;;  %v3853_v50 = vrot.slane %v3851_v60, 7  ;;  %v3880_v61 = vshll.u32 %v7824_v63, 16 }
 0x1c6   : > { %3997 = vst [vmem:[#allocation2 + $0x58] sm:$0xf] %v3874_v44  ;;  %4000 = vst [vmem:[#allocation2 + $0x5c] sm:$0x1] %v3999_v33  ;;  %v3896_v27 = vrot.slane %v3894_v9, 7  ;;  %v3879_v5 = vrot.slane %v3877_v36, 7  ;;  %v7827_v22 = vpack.c.bf16 %v3646_v57, %v3646_v57  ;;  %v3597_v0 = vadd.f32 %v3568_v45, %v3249_v51 }
 0x1c7   : > { %v3849_v25 = vrot.slane %v3845_v10, 4  ;;  %v3856_v49 = vor.u32 %v3854_v38, %v3853_v50  ;;  %v3858_v4 = vrot.slane %v3853_v50, 4 }
 0x1c8   : > { %v3899_v35 = vor.u32 %v3897_v62, %v3896_v27  ;;  %v3882_v59 = vor.u32 %v3880_v61, %v3879_v5  ;;  %v3902_v20 = vshrl.u32 %v7827_v22, 16  ;;  %v3624_v16 = vadd.f32 %v10344_v42, %v3597_v0 }
 0x1c9   : > { %v3857_v55 = vsel %vm10405_vm12, %v3849_v25, %v3856_v49  ;;  %v3992_v19 = vsel %vm10411_vm13, %v3858_v4, %v3991_v39  ;;  %v3905_v47 = vshll.u32 %v7827_v22, 16  ;;  %v3900_v13 = vrot.slane %v3896_v27, 4 }
 0x1ca   : > { %3990 = vst [vmem:[#allocation2 + $0x4c] sm:$0xf] %v3857_v55  ;;  %3993 = vst [vmem:[#allocation2 + $0x50] sm:$0x1] %v3992_v19  ;;  %v4009_v37 = vsel %vm10395_vm11, %v3899_v35, %v4008_v26  ;;  %v4002_v51 = vsel %vm10395_vm11, %v3882_v59, %v4001_v12  ;;  %v3904_v30 = vrot.slane %v3902_v20, 7  ;;  %v3644_v53 = vmax.f32 %v3624_v16, 0.0 }
 0x1cb   : > { %4010 = vst [vmem:[#allocation2 + $0x6c] sm:$0xf] %v4009_v37  ;;  %4003 = vst [vmem:[#allocation2 + $0x60] sm:$0xf] %v4002_v51  ;;  %v3883_v54 = vrot.slane %v3879_v5, 4 }
 0x1cc   : > { %v3907_v8 = vor.u32 %v3905_v47, %v3904_v30  ;;  %v3909_v18 = vrot.slane %v3904_v30, 4  ;;  %v7825_v32 = vpack.c.bf16 %v3644_v53, %v3644_v53 }
 0x1ce   : > { %v3908_v14 = vsel %vm10405_vm12, %v3900_v13, %v3907_v8  ;;  %v4013_v24 = vsel %vm10411_vm13, %v3909_v18, %v4012_v15  ;;  %v3885_v21 = vshrl.u32 %v7825_v32, 16  ;;  %v3888_v7 = vshll.u32 %v7825_v32, 16 }
 0x1cf   : > { %4011 = vst [vmem:[#allocation2 + $0x70] sm:$0xf] %v3908_v14  ;;  %4014 = vst [vmem:[#allocation2 + $0x74] sm:$0x1] %v4013_v24 }
 0x1d0   : > { %v3887_v42 = vrot.slane %v3885_v21, 7 }
 0x1d1   : > { %4018 = sbr.rel (%p7506_p7) target bundleno = 473 (0x1d9), region = 44 }
 0x1d2   : > { %v3890_v48 = vor.u32 %v3888_v7, %v3887_v42  ;;  %v3892_v23 = vrot.slane %v3887_v42, 4 }
 0x1d4   : > { %v3891_v11 = vsel %vm10405_vm12, %v3883_v54, %v3890_v48  ;;  %v4006_v10 = vsel %vm10411_vm13, %v3892_v23, %v4005_v46 }
 0x1d5   : > { %4004 = vst [vmem:[#allocation2 + $0x64] sm:$0xf] %v3891_v11  ;;  %4007 = vst [vmem:[#allocation2 + $0x68] sm:$0x1] %v4006_v10 }
 0x1d6   : > { %v9029_v1 = vmov 0  }
 0x1d7   : > { %4019 = vst [vmem:[#allocation2] sm:$0xf] %v9029_v1  ;;  %4020 = vst [vmem:[#allocation2 + $0x4] sm:$0xf] %v9029_v1 }
 0x1d8   : > { %4021 = vst [vmem:[#allocation2 + $0x8] sm:$0x1] %v9029_v1 }
 0x1d9 PF: > { %p7507_p8 = scmp.ne.s32.totalorder %s9010_s18, 1 }
 0x1db   : > { %4025 = sbr.rel (%p7507_p8) target bundleno = 483 (0x1e3), region = 48 }
 0x1e0   : > { %v9030_v41 = vmov 0  }
 0x1e1   : > { %4027 = vst [vmem:[#allocation2 + $0x6c] sm:$0xf] %v9030_v41  ;;  %4028 = vst [vmem:[#allocation2 + $0x70] sm:$0xf] %v9030_v41 }
 0x1e2   : > { %4029 = vst [vmem:[#allocation2 + $0x74] sm:$0x1] %v9030_v41 }
 0x1e3 PF: > { %v8892_v31 = vld [vmem:[%s11399_s3 + $0x78] sm:$0xff]   ;;  %v8893_v28 = vld [vmem:[%s11399_s3 + $0x70] sm:$0xff]   ;;  %v8894_v52 = vld [vmem:[%s11399_s3 + $0x68] sm:$0xff]  }
 0x1e4   : > { %8458 = vmatprep.subr.bf16.mxu1 %v8892_v31  ;;  %v8895_v40 = vld [vmem:[%s11399_s3 + $0x60] sm:$0xff]   ;;  %v8900_v43 = vld [vmem:[%s11399_s3 + $0xb8] sm:$0xff]   ;;  %v10522_v3 = vld [vmem:[#allocation2 + $0x8] sm:$0x1] }
 0x1e5   : > { %8459 = vmatpush3.bf16.msra.mxu1 %v8892_v31  ;;  %v10518_v58 = vld [vmem:[#allocation2] sm:$0xf]  ;;  %v10520_v34 = vld [vmem:[#allocation2 + $0x4] sm:$0xf]  ;;  %v8896_v56 = vld [vmem:[%s11399_s3 + $0x58] sm:$0xff]   ;;  %8522 = vmatprep.subr.bf16.mxu0 %v8900_v43  ;;  %v4090_v60 = vshll.u32 %v10522_v3, 16 }
 0x1e6   : > { %8460 = vmatprep.subr.bf16.mxu1 %v8893_v28  ;;  %v4071_v6 = vshrl.u32 %v10518_v58, 16  ;;  %v4074_v63 = vshll.u32 %v10518_v58, 16  ;;  %v4080_v57 = vshll.u32 %v10520_v34, 16  ;;  %v4084_v17 = vshrl.u32 %v10520_v34, 16  ;;  %v10531_v29 = vld [vmem:[#allocation2 + $0xc] sm:$0xf]  ;;  %8523 = vmatpush3.bf16.msra.mxu0 %v8900_v43 }
 0x1e7   : > { %v10534_v38 = vld [vmem:[#allocation2 + $0x10] sm:$0xf]  ;;  %v10536_v45 = vld [vmem:[#allocation2 + $0x14] sm:$0x1]  ;;  %v4095_v2 = vshrl.u32 %v10531_v29, 16  ;;  %v4092_v33 = vrot.slane %v4090_v60, 5 }
 0x1e8   : > { %v4073_v9 = vrot.slane %v4071_v6, 4  ;;  %v4076_v62 = vrot.slane %v4074_v63, 5  ;;  %v4082_v36 = vrot.slane %v4080_v57, 5  ;;  %v4086_v44 = vrot.slane %v4084_v17, 4  ;;  %v8902_v25 = vld [vmem:[%s11399_s3 + $0xb0] sm:$0xff]   ;;  %v8904_v30 = vld [vmem:[%s11399_s3 + $0xa8] sm:$0xff]  }
 0x1e9   : > { %8461 = vmatpush3.bf16.msra.mxu1 %v8893_v28  ;;  %v4097_v50 = vrot.slane %v4095_v2, 4  ;;  %v4098_v61 = vshll.u32 %v10531_v29, 16  ;;  %v4104_v39 = vshll.u32 %v10534_v38, 16  ;;  %v4108_v22 = vshrl.u32 %v10534_v38, 16  ;;  %v8897_v26 = vld [vmem:[%s11399_s3 + $0x50] sm:$0xff]   ;;  %8524 = vmatprep.subr.bf16.mxu0 %v8902_v25  ;;  %v8898_v13 = vld [vmem:[%s11399_s3 + $0x48] sm:$0xff]  }
 0x1ea   : > { %8462 = vmatprep.subr.bf16.mxu1 %v8894_v52  ;;  %v4077_v27 = vor.u32 %v4076_v62, %v4073_v9  ;;  %v4087_v5 = vor.u32 %v4086_v44, %v4082_v36  ;;  %v4114_v0 = vshll.u32 %v10536_v45, 16  ;;  %8525 = vmatpush3.bf16.msra.mxu0 %v8902_v25  ;;  %v10559_v47 = vld [vmem:[#allocation2 + $0x18] sm:$0xf]  ;;  %v10561_v15 = vld [vmem:[#allocation2 + $0x1c] sm:$0xf]  ;;  %v4675_v53 = vrot.slane %v10520_v34, 5 }
 0x1eb   : > { %v4100_v49 = vrot.slane %v4098_v61, 5  ;;  %v10546_v4 = vrot.slane %v4104_v39, 5  ;;  %v4110_v59 = vrot.slane %v4108_v22, 4  ;;  %v10567_v32 = vld [vmem:[#allocation2 + $0x20] sm:$0x1]  ;;  %v4119_v14 = vshrl.u32 %v10559_v47, 16  ;;  %8526 = vmatprep.subr.bf16.mxu0 %v8904_v30 }
 0x1ec   : > { %v4078_v12 = vrot.slane %v4077_v27, 4  ;;  %v4088_v35 = vrot.slane %v4087_v5, 4  ;;  %v4116_v19 = vrot.slane %v4114_v0, 5  ;;  %v4122_v24 = vshll.u32 %v10559_v47, 16  ;;  %v10574_v54 = vld [vmem:[#allocation2 + $0x24] sm:$0xf] }
 0x1ed   : > { %8463 = vmatpush3.bf16.msra.mxu1 %v8894_v52  ;;  %v4101_v55 = vor.u32 %v4100_v49, %v4097_v50  ;;  %v4111_v16 = vor.u32 %v4110_v59, %v10546_v4  ;;  %v4128_v42 = vshll.u32 %v10561_v15, 16  ;;  %v4132_v7 = vshrl.u32 %v10561_v15, 16  ;;  %v10576_v11 = vld [vmem:[#allocation2 + $0x28] sm:$0xf]  ;;  %v10578_v10 = vld [vmem:[#allocation2 + $0x2c] sm:$0x1] }
 0x1ee   : > { %8464 = vmatprep.subr.bf16.mxu1 %v8895_v40  ;;  %v4083_v37 = vsel %vm9177_vm2, %v4078_v12, %v4082_v36  ;;  %v4093_v51 = vsel %vm9177_vm2, %v4088_v35, %v4092_v33  ;;  %v4138_v46 = vshll.u32 %v10567_v32, 16  ;;  %8527 = vmatpush3.bf16.msra.mxu0 %v8904_v30  ;;  %v4121_v48 = vrot.slane %v4119_v14, 4  ;;  %v8906_v52 = vld [vmem:[%s11399_s3 + $0xa0] sm:$0xff]   ;;  %v8908_v44 = vld [vmem:[%s11399_s3 + $0x98] sm:$0xff]   ;;  %v10607_v25 = vld [vmem:[#allocation2 + $0x30] sm:$0xf] }
 0x1ef   : > { %v7524_v8 = vcombine.low %v4083_v37, %v4093_v51  ;;  %v4102_v18 = vrot.slane %v4101_v55, 4  ;;  %v4112_v21 = vrot.slane %v4111_v16, 4  ;;  %v4124_v23 = vrot.slane %v4122_v24, 5  ;;  %v8899_v63 = vld [vmem:[%s11399_s3 + $0x40] sm:$0xff]   ;;  %8528 = vmatprep.subr.bf16.mxu0 %v8906_v52  ;;  %v8901_v33 = vld [vmem:[%s11399_s3 + $0x38] sm:$0xff]   ;;  %v8903_v30 = vld [vmem:[%s11399_s3 + $0x30] sm:$0xff]  }
 0x1f0   : > { %v4130_v41 = vrot.slane %v4128_v42, 5  ;;  %v4134_v31 = vrot.slane %v4132_v7, 4  ;;  %v4140_v28 = vrot.slane %v4138_v46, 5  ;;  %v4146_v6 = vshll.u32 %v10574_v54, 16  ;;  %v10614_v12 = vld [vmem:[#allocation2 + $0x38] sm:$0x1] }
 0x1f1   : > { %8465 = vmatpush3.bf16.msra.mxu1 %v8895_v40  ;;  %8474 = vmatprep.mubr.bf16.mxu1 %v7524_v8  ;;  %v4107_v1 = vsel %vm9177_vm2, %v4102_v18, %v10546_v4  ;;  %v4117_v40 = vsel %vm9177_vm2, %v4112_v21, %v4116_v19  ;;  %v4125_v43 = vor.u32 %v4124_v23, %v4121_v48  ;;  %v4152_v17 = vshll.u32 %v10576_v11, 16  ;;  %v10620_v16 = vld [vmem:[#allocation2 + $0x3c] sm:$0xf]  ;;  %v10626_v24 = vld [vmem:[#allocation2 + $0x40] sm:$0xf]  ;;  %v8910_v23 = vld [vmem:[%s11399_s3 + $0x90] sm:$0xff]  }
 0x1f2   : > { %8466 = vmatprep.subr.bf16.mxu1 %v8896_v56  ;;  %v4135_v57 = vor.u32 %v4134_v31, %v4130_v41  ;;  %v4156_v60 = vshrl.u32 %v10576_v11, 16  ;;  %v4162_v2 = vshll.u32 %v10578_v10, 16  ;;  %v4148_v36 = vrot.slane %v4146_v6, 5  ;;  %8529 = vmatpush3.bf16.msra.mxu0 %v8906_v52  ;;  %v10628_v46 = vld [vmem:[#allocation2 + $0x44] sm:$0x1] }
 0x1f3   : > { %v4126_v9 = vrot.slane %v4125_v43, 4  ;;  %v10602_v61 = vrot.slane %v4152_v17, 5  ;;  %v4678_v27 = vrot.slane %v10522_v3, 5  ;;  %v7525_v5 = vcombine.low %v4107_v1, %v4117_v40  ;;  %8530 = vmatprep.subr.bf16.mxu0 %v8908_v44  ;;  %v8911_v3 = vld [vmem:[%s11399_s3 + $0x10] sm:$0xff]  }
 0x1f4   : > { %v4136_v50 = vrot.slane %v4135_v57, 4  ;;  %v4158_v39 = vrot.slane %v4156_v60, 4  ;;  %v4167_v35 = vshrl.u32 %v10607_v25, 16  ;;  %v4170_v59 = vshll.u32 %v10607_v25, 16  ;;  %v8905_v60 = vld [vmem:[%s11399_s3 + $0x28] sm:$0xff]  }
 0x1f5   : > { %8467 = vmatpush3.bf16.msra.mxu1 %v8896_v56  ;;  %v4143_v56 = vshrl.u32 %v10574_v54, 16  ;;  %v4131_v22 = vsel %vm9177_vm2, %v4126_v9, %v4130_v41  ;;  %v4164_v19 = vrot.slane %v4162_v2, 5  ;;  %v4186_v14 = vshll.u32 %v10614_v12, 16 }
 0x1f6   : > { %8468 = vmatprep.subr.bf16.mxu1 %v8897_v26  ;;  %v4141_v49 = vsel %vm9177_vm2, %v4136_v50, %v4140_v28  ;;  %v4159_v4 = vor.u32 %v4158_v39, %v10602_v61  ;;  %8531 = vmatpush3.bf16.msra.mxu0 %v8908_v44  ;;  %v4169_v8 = vrot.slane %v4167_v35, 4  ;;  %v4172_v18 = vrot.slane %v4170_v59, 5 }
 0x1f7   : > { %v4145_v62 = vrot.slane %v4143_v56, 4  ;;  %v7526_v21 = vcombine.low %v4131_v22, %v4141_v49  ;;  %v4191_v48 = vshrl.u32 %v10620_v16, 16  ;;  %v4188_v31 = vrot.slane %v4186_v14, 5  ;;  %8532 = vmatprep.subr.bf16.mxu0 %v8910_v23  ;;  %v10655_v22 = vld [vmem:[#allocation2 + $0x4c] sm:$0xf]  ;;  %v8907_v14 = vld [vmem:[%s11399_s3 + $0x20] sm:$0xff]  }
 0x1f8   : > { %v4173_v41 = vor.u32 %v4172_v18, %v4169_v8  ;;  %v4194_v28 = vshll.u32 %v10620_v16, 16  ;;  %v4200_v56 = vshll.u32 %v10626_v24, 16  ;;  %v4204_v57 = vshrl.u32 %v10626_v24, 16  ;;  %v10668_v18 = vld [vmem:[#allocation2 + $0x5c] sm:$0x1] }
 0x1f9   : > { %8469 = vmatpush3.bf16.msra.mxu1 %v8897_v26  ;;  %v4149_v0 = vor.u32 %v4148_v36, %v4145_v62  ;;  %v10612_v26 = vld [vmem:[#allocation2 + $0x34] sm:$0xf]  ;;  %v4193_v43 = vrot.slane %v4191_v48, 4  ;;  %v4210_v17 = vshll.u32 %v10628_v46, 16  ;;  %v8912_v62 = vld [vmem:[%s11399_s3 + $0x88] sm:$0xff]  }
 0x1fa   : > { %8470 = vmatprep.subr.bf16.mxu1 %v8898_v13  ;;  %v4176_v37 = vshll.u32 %v10612_v26, 16  ;;  %v4180_v51 = vshrl.u32 %v10612_v26, 16  ;;  %v4174_v6 = vrot.slane %v4173_v41, 4  ;;  %8533 = vmatpush3.bf16.msra.mxu0 %v8910_v23  ;;  %v4202_v9 = vrot.slane %v4200_v56, 5 }
 0x1fb   : > { %v4150_v55 = vrot.slane %v4149_v0, 4  ;;  %v4206_v50 = vrot.slane %v4204_v57, 4  ;;  %8534 = vmatprep.subr.bf16.mxu0 %v8912_v62  ;;  %v10657_v0 = vld [vmem:[#allocation2 + $0x50] sm:$0x1] }
 0x1fc   : > { %v4178_v42 = vrot.slane %v4176_v37, 5  ;;  %v4182_v7 = vrot.slane %v4180_v51, 4  ;;  %v4224_v51 = vshll.u32 %v10655_v22, 16  ;;  %v4234_v8 = vshll.u32 %v10657_v0, 16 }
 0x1fd   : > { %8471 = vmatpush3.bf16.msra.mxu1 %v8898_v13  ;;  %v4160_v13 = vrot.slane %v4159_v4, 4  ;;  %v4155_v1 = vsel %vm9177_vm2, %v4150_v55, %v10602_v61  ;;  %v4212_v61 = vrot.slane %v4210_v17, 5  ;;  %v4207_v35 = vor.u32 %v4206_v50, %v4202_v9  ;;  %v10660_v55 = vld [vmem:[#allocation2 + $0x54] sm:$0xf] }
 0x1fe   : > { %8472 = vmatprep.subr.bf16.mxu1 %v8899_v63  ;;  %v4183_v40 = vor.u32 %v4182_v7, %v4178_v42  ;;  %v4179_v36 = vsel %vm9177_vm2, %v4174_v6, %v4178_v42  ;;  %8535 = vmatpush3.bf16.msra.mxu0 %v8912_v62  ;;  %v4239_v7 = vshrl.u32 %v10660_v55, 16  ;;  %v4226_v23 = vrot.slane %v4224_v51, 5  ;;  %v8909_v6 = vld [vmem:[%s11399_s3 + $0x18] sm:$0xff]  }
 0x1ff   : > { %v4165_v52 = vsel %vm9177_vm2, %v4160_v13, %v4164_v19  ;;  %v10662_v19 = vld [vmem:[#allocation2 + $0x58] sm:$0xf]  ;;  %v4228_v13 = vshrl.u32 %v10655_v22, 16  ;;  %v4208_v42 = vrot.slane %v4207_v35, 4  ;;  %v4236_v41 = vrot.slane %v4234_v8, 5 }
 0x200   : > { %v4184_v2 = vrot.slane %v4183_v40, 4  ;;  %v7527_v39 = vcombine.low %v4155_v1, %v4165_v52  ;;  %v4242_v52 = vshll.u32 %v10660_v55, 16  ;;  %v4248_v40 = vshll.u32 %v10662_v19, 16 }
 0x201   : > { %8473 = vmatpush3.bf16.msra.mxu1 %v8899_v63  ;;  %v4196_v63 = vrot.slane %v4194_v28, 5  ;;  %v4230_v1 = vrot.slane %v4228_v13, 4  ;;  %v4241_v28 = vrot.slane %v4239_v7, 4  ;;  %v4252_v17 = vshrl.u32 %v10662_v19, 16 }
 0x202   : > { %8490 = vmatprep.subr.bf16.mxu1 %v8901_v33  ;;  %v4258_v62 = vshll.u32 %v10668_v18, 16 }
 0x203   : > { %v4197_v44 = vor.u32 %v4196_v63, %v4193_v43  ;;  %v8914_v43 = vld [vmem:[%s11399_s3 + $0x80] sm:$0xff]   ;;  %v4231_v57 = vor.u32 %v4230_v1, %v4226_v23  ;;  %v4254_v50 = vrot.slane %v4252_v17, 4 }
 0x204   : > { %8475 = vmatmul.mubr.bf16.vlgmr.msra.gmra.mxu1 %v7525_v5  ;;  %v10653_v5 = vld [vmem:[#allocation2 + $0x48] sm:$0xf]  ;;  %8536 = vmatprep.subr.bf16.mxu0 %v8914_v43 }
 0x205   : > { %8491 = vmatpush3.bf16.msra.mxu1 %v8901_v33  ;;  %8478 = vmatprep.mubr.bf16.mxu1 %v7526_v21  ;;  %v4189_v33 = vsel %vm9177_vm2, %v4184_v2, %v4188_v31  ;;  %v4198_v4 = vrot.slane %v4197_v44, 4  ;;  %v4215_v59 = vshrl.u32 %v10653_v5, 16  ;;  %v4218_v37 = vshll.u32 %v10653_v5, 16 }
 0x206   : > { %8492 = vmatprep.subr.bf16.mxu1 %v8903_v30  ;;  %v7528_v49 = vcombine.low %v4179_v36, %v4189_v33  ;;  %v4213_v31 = vsel %vm9177_vm2, %v4208_v42, %v4212_v61  ;;  %v4244_v2 = vrot.slane %v4242_v52, 5  ;;  %v4677_v36 = vrot.slane %v4675_v53, 4  ;;  %8537 = vmatpush3.bf16.msra.mxu0 %v8914_v43  ;;  %v4649_v61 = vld [vmem:[#allocation2] sm:$0xe]  ;;  %v8916_v42 = vld [vmem:[%s11399_s3 + $0x138] sm:$0xff]  }
 0x207   : > { %v4203_v21 = vsel %vm9177_vm2, %v4198_v4, %v4202_v9  ;;  %v4220_v48 = vrot.slane %v4218_v37, 5  ;;  %v4250_v9 = vrot.slane %v4248_v40, 5  ;;  %v4232_v44 = vrot.slane %v4231_v57, 4  ;;  %v4650_v37 = vld [vmem:[#allocation2 + $0xc] sm:$0xe]  ;;  %8586 = vmatprep.subr.bf16.mxu0 %v8916_v42 }
 0x208   : > { %v7529_v56 = vcombine.low %v4203_v21, %v4213_v31  ;;  %v4245_v33 = vor.u32 %v4244_v2, %v4241_v28  ;;  %v7556_v4 = vrot.slane %v4649_v61, 9  ;;  %v7557_v21 = vrot.slane %v4650_v37, 9  ;;  %v8913_v31 = vld [vmem:[%s11399_s3 + $0x8] sm:$0xff]   ;;  %v4651_v28 = vld [vmem:[#allocation2 + $0x18] sm:$0xe] }
 0x209   : > { %8493 = vmatpush3.bf16.msra.mxu1 %v8903_v30  ;;  %v4217_v30 = vrot.slane %v4215_v59, 4  ;;  %v4679_v59 = vsel %vm9404_vm5, %v4677_v36, %v4678_v27  ;;  %v4237_v13 = vsel %vm9177_vm2, %v4232_v44, %v4236_v41  ;;  %v4255_v8 = vor.u32 %v4254_v50, %v4250_v9  ;;  %v4652_v57 = vld [vmem:[#allocation2 + $0x24] sm:$0xe] }
 0x20a   : > { %8494 = vmatprep.subr.bf16.mxu1 %v8905_v60  ;;  %v4685_v41 = vrot.slane %v10536_v45, 5  ;;  %v4689_v52 = vrot.slane %v10561_v15, 5  ;;  %v4692_v40 = vrot.slane %v10567_v32, 5  ;;  %v7559_v17 = vrot.slane %v4652_v57, 9  ;;  %v8915_v50 = vld [vmem:[%s11399_s3] sm:$0xff]  }
 0x20b   : > { %v4221_v63 = vor.u32 %v4220_v48, %v4217_v30  ;;  %v4246_v30 = vrot.slane %v4245_v33, 4  ;;  %v4256_v48 = vrot.slane %v4255_v8, 4  ;;  %v8919_v8 = vld [vmem:[%s11399_s3 + $0xf8] sm:$0xff]   ;;  %v7543_v57 = vcombine.low %v10574_v54, %v10576_v11 }
 0x20c   : > { %8479 = vmatmul.mubr.bf16.gmra.mxu1 %v7527_v39  ;;  %v4682_v39 = vrot.slane %v10534_v38, 5  ;;  %v7544_v54 = vcombine.low %v10607_v25, %v10612_v26 }
 0x20d   : > { %8495 = vmatpush3.bf16.msra.mxu1 %v8905_v60  ;;  %8482 = vmatprep.mubr.bf16.mxu1 %v7528_v49  ;;  %v4222_v60 = vrot.slane %v4221_v63, 4  ;;  %v4260_v49 = vrot.slane %v4258_v62, 5  ;;  %v7558_v63 = vrot.slane %v4651_v28, 9  ;;  %v4699_v62 = vrot.slane %v10578_v10, 5  ;;  %v4653_v10 = vld [vmem:[#allocation2 + $0x30] sm:$0xe] }
 0x20e   : > { %8496 = vmatprep.subr.bf16.mxu1 %v8907_v14  ;;  %v4684_v7 = vrot.slane %v4682_v39, 4  ;;  %v4683_v1 = vsel %vm9404_vm5, %v7557_v21, %v4682_v39  ;;  %v4724_v28 = vrot.slane %v10662_v19, 5 }
 0x20f   : > { %v4227_v51 = vsel %vm9177_vm2, %v4222_v60, %v4226_v23  ;;  %v4261_v43 = vsel %vm9177_vm2, %v4256_v48, %v4260_v49  ;;  %v4690_v2 = vsel %vm9404_vm5, %v7558_v63, %v4689_v52  ;;  %v7540_v60 = vcombine.low %v10518_v58, %v10520_v34  ;;  %v8926_v48 = vld [vmem:[%s11399_s3 + $0x120] sm:$0xff]  }
 0x210   : > { %v7530_v27 = vcombine.low %v4227_v51, %v4237_v13  ;;  %v4686_v45 = vsel %vm9404_vm5, %v4684_v7, %v4685_v41  ;;  %v4703_v49 = vrot.slane %v10612_v26, 5  ;;  %v7560_v58 = vrot.slane %v4653_v10, 9  ;;  %v4654_v51 = vld [vmem:[#allocation2 + $0x3c] sm:$0xe]  ;;  %v4655_v7 = vld [vmem:[#allocation2 + $0x48] sm:$0xe] }
 0x211   : > { %8497 = vmatpush3.bf16.msra.mxu1 %v8907_v14  ;;  %v4676_v14 = vsel %vm9404_vm5, %v7556_v4, %v4675_v53  ;;  %v4251_v53 = vsel %vm9177_vm2, %v4246_v30, %v4250_v9  ;;  %v7581_v32 = vcombine.low %v4683_v1, %v4686_v45  ;;  %v4696_v9 = vrot.slane %v10576_v11, 5  ;;  %v8932_v11 = vld [vmem:[%s11399_s3 + $0x110] sm:$0xff]   ;;  %v8927_v10 = vld [vmem:[%s11399_s3 + $0xe0] sm:$0xff]  }
 0x212   : > { %8498 = vmatprep.subr.bf16.mxu1 %v8909_v6  ;;  %v7580_v23 = vcombine.low %v4676_v14, %v4679_v59  ;;  %v7531_v36 = vcombine.low %v4251_v53, %v4261_v43  ;;  %v4706_v34 = vrot.slane %v10614_v12, 5  ;;  %v8922_v59 = vld [vmem:[%s11399_s3 + $0x128] sm:$0xff]   ;;  %v4705_v37 = vrot.slane %v4703_v49, 4 }
 0x213   : > { %v4697_v39 = vsel %vm9404_vm5, %v7559_v17, %v4696_v9  ;;  %v4698_v33 = vrot.slane %v4696_v9, 4  ;;  %v4710_v13 = vrot.slane %v10626_v24, 5  ;;  %v4704_v12 = vsel %vm9404_vm5, %v7560_v58, %v4703_v49  ;;  %v5182_v17 = vld [vmem:[#allocation2 + $0xc] sm:$0xf] }
 0x214   : > { %8483 = vmatmul.mubr.bf16.gmra.mxu1 %v7529_v56  ;;  %v8920_v56 = vld [vmem:[%s11399_s3 + $0x130] sm:$0xff]   ;;  %8538 = vmatprep.mubr.bf16.mxu0 %v7580_v23  ;;  %v7562_v23 = vrot.slane %v4655_v7, 9  ;;  %v4717_v1 = vrot.slane %v10655_v22, 5  ;;  %v7541_v41 = vcombine.low %v10531_v29, %v10534_v38  ;;  %v8928_v38 = vld [vmem:[%s11399_s3 + $0x118] sm:$0xff]   ;;  %v4727_v45 = vrot.slane %v10668_v18, 5 }
 0x215   : > { %8499 = vmatpush3.bf16.msra.mxu1 %v8909_v6  ;;  %8486 = vmatprep.mubr.bf16.mxu1 %v7530_v27  ;;  %v4691_v6 = vrot.slane %v4689_v52, 4  ;;  %v4700_v4 = vsel %vm9404_vm5, %v4698_v33, %v4699_v62  ;;  %v7561_v27 = vrot.slane %v4654_v51, 9  ;;  %v4712_v30 = vrot.slane %v4710_v13, 4  ;;  %v8921_v52 = vld [vmem:[%s11399_s3 + $0xf0] sm:$0xff]   ;;  %v10801_v33 = vld [vmem:[#allocation2 + $0x1c] sm:$0xf] }
 0x216   : > { %8500 = vmatprep.subr.bf16.mxu1 %v8911_v3  ;;  %8539 = vmatmul.mubr.bf16.vlgmr.msra.gmra.mxu0 %v7581_v32  ;;  %v7583_v21 = vcombine.low %v4697_v39, %v4700_v4  ;;  %v4719_v29 = vrot.slane %v4717_v1, 4  ;;  %v4718_v43 = vsel %vm9404_vm5, %v7562_v23, %v4717_v1  ;;  %v8925_v32 = vld [vmem:[%s11399_s3 + $0xe8] sm:$0xff]   ;;  %v10785_v18 = vld [vmem:[#allocation2 + $0x10] sm:$0xf]  ;;  %v5207_v9 = vshrl.u32 %v5182_v17, 16 }
 0x217   : > { %v4693_v44 = vsel %vm9404_vm5, %v4691_v6, %v4692_v40  ;;  %8587 = vmatpush3.bf16.msra.mxu0 %v8916_v42  ;;  %v4713_v42 = vrot.slane %v10628_v46, 5  ;;  %v4720_v46 = vrot.slane %v10657_v0, 5  ;;  %v7542_v40 = vcombine.low %v10559_v47, %v10561_v15  ;;  %v5185_v39 = vld [vmem:[#allocation2 + $0x18] sm:$0xf] }
 0x218   : > { %v7582_v61 = vcombine.low %v4690_v2, %v4693_v44  ;;  %8588 = vmatprep.subr.bf16.mxu0 %v8920_v56  ;;  %v4711_v53 = vsel %vm9404_vm5, %v7561_v27, %v4710_v13  ;;  %v10787_v2 = vld [vmem:[#allocation2 + $0x14] sm:$0x1]  ;;  %v5210_v62 = vshll.u32 %v5182_v17, 16  ;;  %v5209_v25 = vrot.slane %v5207_v9, 4  ;;  %v5191_v17 = vld [vmem:[#allocation2 + $0x30] sm:$0xf] }
 0x219   : > { %8501 = vmatpush3.bf16.msra.mxu1 %v8911_v3  ;;  %v4707_v3 = vsel %vm9404_vm5, %v4705_v37, %v4706_v34  ;;  %v4714_v0 = vsel %vm9404_vm5, %v4712_v30, %v4713_v42  ;;  %v4721_v47 = vsel %vm9404_vm5, %v4719_v29, %v4720_v46  ;;  %v10806_v34 = vld [vmem:[#allocation2 + $0x20] sm:$0x1]  ;;  %v5234_v37 = vshll.u32 %v5185_v39, 16  ;;  %v8934_v42 = vld [vmem:[%s11399_s3 + $0x108] sm:$0xff]   ;;  %v8931_v46 = vld [vmem:[%s11399_s3 + $0xd8] sm:$0xff]  }
 0x21a   : > { %8502 = vmatprep.subr.bf16.mxu1 %v8913_v31  ;;  %8542 = vmatprep.mubr.bf16.mxu0 %v7582_v61  ;;  %v7584_v14 = vcombine.low %v4704_v12, %v4707_v3  ;;  %v7585_v63 = vcombine.low %v4711_v53, %v4714_v0  ;;  %v7586_v6 = vcombine.low %v4718_v43, %v4721_v47  ;;  %v5226_v61 = vshll.u32 %v10787_v2, 16  ;;  %v5188_v29 = vld [vmem:[#allocation2 + $0x24] sm:$0xf]  ;;  %v10828_v47 = vld [vmem:[#allocation2 + $0x28] sm:$0xf] }
 0x21b   : > { %8589 = vmatpush3.bf16.msra.mxu0 %v8920_v56  ;;  %v4726_v56 = vrot.slane %v4724_v28, 4  ;;  %v5212_v26 = vrot.slane %v5210_v62, 5  ;;  %v5240_v51 = vshll.u32 %v10801_v33, 16  ;;  %v5250_v12 = vshll.u32 %v10806_v34, 16  ;;  %v8940_v62 = vld [vmem:[%s11399_s3 + $0x1b8] sm:$0xff]  }
 0x21c   : > { %8487 = vmatmul.mubr.bf16.gmra.mxu1 %v7531_v36  ;;  %8590 = vmatprep.subr.bf16.mxu0 %v8922_v59  ;;  %v5216_v36 = vshll.u32 %v10785_v18, 16  ;;  %v5228_v4 = vrot.slane %v5226_v61, 5  ;;  %v5236_v27 = vrot.slane %v5234_v37, 5  ;;  %v7546_v43 = vcombine.low %v10653_v5, %v10655_v22 }
 0x21d   : > { %8503 = vmatpush3.bf16.msra.mxu1 %v8913_v31  ;;  %8506 = vmatprep.mubr.bf16.mxu1 %v7540_v60  ;;  %v4656_v31 = vld [vmem:[#allocation2 + $0x54] sm:$0xe]  ;;  %v5220_v60 = vshrl.u32 %v10785_v18, 16  ;;  %v5213_v13 = vor.u32 %v5212_v26, %v5209_v25  ;;  %v5242_v30 = vrot.slane %v5240_v51, 5  ;;  %v5268_v5 = vshrl.u32 %v10828_v47, 16 }
 0x21e   : > { %8504 = vmatprep.subr.bf16.mxu1 %v8915_v50  ;;  %8543 = vmatmul.mubr.bf16.gmra.mxu0 %v7583_v21  ;;  %v7563_v15 = vrot.slane %v4656_v31, 9  ;;  %v5218_v49 = vrot.slane %v5216_v36, 5  ;;  %v5244_v21 = vshrl.u32 %v10801_v33, 16  ;;  %v5279_v61 = vshrl.u32 %v5191_v17, 16 }
 0x21f   : > { %8546 = vmatprep.mubr.bf16.mxu0 %v7584_v14  ;;  %8591 = vmatpush3.bf16.msra.mxu0 %v8922_v59  ;;  %v5222_v58 = vrot.slane %v5220_v60, 4  ;;  %v5231_v59 = vshrl.u32 %v5185_v39, 16  ;;  %v5214_v7 = vrot.slane %v5213_v13, 4  ;;  %v5282_v39 = vshll.u32 %v5191_v17, 16  ;;  %v8944_v13 = vld [vmem:[%s11399_s3 + $0x1b0] sm:$0xff]  }
 0x220   : > { %8592 = vmatprep.subr.bf16.mxu0 %v8926_v48  ;;  %v4725_v44 = vsel %vm9404_vm5, %v7563_v15, %v4724_v28  ;;  %v5246_v23 = vrot.slane %v5244_v21, 4  ;;  %v10830_v15 = vld [vmem:[#allocation2 + $0x2c] sm:$0x1] }
 0x221   : > { %8505 = vmatpush3.bf16.msra.mxu1 %v8915_v50  ;;  %v4728_v50 = vsel %vm9404_vm5, %v4726_v56, %v4727_v45  ;;  %v5233_v3 = vrot.slane %v5231_v59, 4  ;;  %v5255_v56 = vshrl.u32 %v5188_v29, 16  ;;  %v5281_v59 = vrot.slane %v5279_v61, 4 }
 0x222   : > { %8554 = vmatprep.subr.bf16.mxu1 %v8919_v8  ;;  %v7587_v14 = vcombine.low %v4725_v44, %v4728_v50  ;;  %v5247_v28 = vor.u32 %v5246_v23, %v5242_v30  ;;  %v10847_v50 = vld [vmem:[#allocation2 + $0x38] sm:$0x1]  ;;  %v5284_v37 = vrot.slane %v5282_v39, 5 }
 0x223   : > { %8593 = vmatpush3.bf16.msra.mxu0 %v8926_v48  ;;  %v5237_v1 = vor.u32 %v5236_v27, %v5233_v3  ;;  %v8939_v3 = vld [vmem:[%s11399_s3 + $0xc0] sm:$0xff]  }
 0x224   : > { %8507 = vmatmul.mubr.bf16.vlgmr.msra.gmra.mxu1 %v7541_v41  ;;  %8594 = vmatprep.subr.bf16.mxu0 %v8928_v38  ;;  %v5219_v41 = vsel %vm9177_vm2, %v5214_v7, %v5218_v49  ;;  %v5248_v45 = vrot.slane %v5247_v28, 4  ;;  %v5285_v27 = vor.u32 %v5284_v37, %v5281_v59  ;;  %v5194_v28 = vld [vmem:[#allocation2 + $0x3c] sm:$0xf] }
 0x225   : > { %8555 = vmatpush3.bf16.msra.mxu1 %v8919_v8  ;;  %8510 = vmatprep.mubr.bf16.mxu1 %v7542_v40  ;;  %v5223_v8 = vor.u32 %v5222_v58, %v5218_v49  ;;  %v8938_v40 = vld [vmem:[%s11399_s3 + $0x100] sm:$0xff]   ;;  %v5238_v0 = vrot.slane %v5237_v1, 4  ;;  %v5298_v58 = vshll.u32 %v10847_v50, 16 }
 0x226   : > { %8556 = vmatprep.subr.bf16.mxu1 %v8921_v52  ;;  %8547 = vmatmul.mubr.bf16.gmra.mxu0 %v7585_v63  ;;  %v8933_v63 = vld [vmem:[%s11399_s3 + $0xd0] sm:$0xff]  }
 0x227   : > { %8550 = vmatprep.mubr.bf16.mxu0 %v7586_v6  ;;  %8595 = vmatpush3.bf16.msra.mxu0 %v8928_v38  ;;  %v5224_v48 = vrot.slane %v5223_v8, 4  ;;  %v7545_v38 = vcombine.low %v10620_v16, %v10626_v24  ;;  %v5258_v16 = vshll.u32 %v5188_v29, 16  ;;  %v5264_v24 = vshll.u32 %v10828_v47, 16 }
 0x228   : > { %8596 = vmatprep.subr.bf16.mxu0 %v8932_v11  ;;  %v5274_v6 = vshll.u32 %v10830_v15, 16  ;;  %v5300_v1 = vrot.slane %v5298_v58, 5  ;;  %v5303_v29 = vshrl.u32 %v5194_v28, 16 }
 0x229   : > { %8557 = vmatpush3.bf16.msra.mxu1 %v8921_v52  ;;  %v5229_v31 = vsel %vm9177_vm2, %v5224_v48, %v5228_v4  ;;  %v5252_v52 = vrot.slane %v5250_v12, 5  ;;  %v5260_v36 = vrot.slane %v5258_v16, 5  ;;  %v5266_v60 = vrot.slane %v5264_v24, 5  ;;  %v8937_v4 = vld [vmem:[%s11399_s3 + $0xc8] sm:$0xff]   ;;  %v8950_v24 = vld [vmem:[%s11399_s3 + $0x1a0] sm:$0xff]  }
 0x22a   : > { %8558 = vmatprep.subr.bf16.mxu1 %v8925_v32  ;;  %v7644_v53 = vcombine.low %v5219_v41, %v5229_v31  ;;  %v5276_v44 = vrot.slane %v5274_v6, 5  ;;  %v8946_v31 = vld [vmem:[%s11399_s3 + $0x1a8] sm:$0xff]  }
 0x22b   : > { %8597 = vmatpush3.bf16.msra.mxu0 %v8932_v11  ;;  %v5253_v22 = vsel %vm9177_vm2, %v5248_v45, %v5252_v52  ;;  %v10845_v11 = vld [vmem:[#allocation2 + $0x34] sm:$0xf]  ;;  %v10872_v52 = vld [vmem:[#allocation2 + $0x40] sm:$0xf]  ;;  %v5197_v6 = vld [vmem:[#allocation2 + $0x48] sm:$0xf] }
 0x22c   : > { %8511 = vmatmul.mubr.bf16.gmra.mxu1 %v7543_v57  ;;  %8598 = vmatprep.subr.bf16.mxu0 %v8934_v42  ;;  %v5243_v57 = vsel %vm9177_vm2, %v5238_v0, %v5242_v30  ;;  %v5292_v49 = vshrl.u32 %v10845_v11, 16  ;;  %v5642_v30 = vrot.slane %v10785_v18, 5  ;;  %v10879_v0 = vld [vmem:[#allocation2 + $0x44] sm:$0x1]  ;;  %v5327_v61 = vshrl.u32 %v5197_v6, 16  ;;  %v8967_v18 = vld [vmem:[%s11399_s3 + $0x1f8] sm:$0xff]  }
 0x22d   : > { %8559 = vmatpush3.bf16.msra.mxu1 %v8925_v32  ;;  %8514 = vmatprep.mubr.bf16.mxu1 %v7544_v54  ;;  %v5257_v32 = vrot.slane %v5255_v56, 4  ;;  %v7645_v9 = vcombine.low %v5243_v57, %v5253_v22  ;;  %v5270_v54 = vrot.slane %v5268_v5, 4  ;;  %v5316_v56 = vshrl.u32 %v10872_v52, 16  ;;  %v8942_v57 = vld [vmem:[#allocation2 + $0x18] sm:$0xff]  }
 0x22e   : > { %8560 = vmatprep.subr.bf16.mxu1 %v8927_v10  ;;  %8551 = vmatmul.mubr.bf16.gmra.mxu0 %v7587_v14  ;;  %v5294_v12 = vrot.slane %v5292_v49, 4  ;;  %v8941_v14 = vld [vmem:[#allocation2 + $0xc] sm:$0xff]   ;;  %v5305_v5 = vrot.slane %v5303_v29, 4  ;;  %v5330_v39 = vshll.u32 %v5197_v6, 16 }
 0x22f   : > { %8602 = vmatprep.mubr.bf16.mxu0 %v7644_v53  ;;  %8599 = vmatpush3.bf16.msra.mxu0 %v8934_v42  ;;  %v5261_v25 = vor.u32 %v5260_v36, %v5257_v32  ;;  %v5271_v26 = vor.u32 %v5270_v54, %v5266_v60  ;;  %v7547_v42 = vcombine.low %v10660_v55, %v10662_v19  ;;  %v5286_v19 = vrot.slane %v5285_v27, 4  ;;  %v10891_v36 = vld [vmem:[#allocation2 + $0x50] sm:$0x1]  ;;  %v8947_v54 = vld [vmem:[#allocation2 + $0x24] sm:$0xff]  }
 0x230   : > { %8600 = vmatprep.subr.bf16.mxu0 %v8938_v40  ;;  %v5318_v17 = vrot.slane %v5316_v56, 4  ;;  %v5346_v49 = vshll.u32 %v10891_v36, 16  ;;  %v5332_v59 = vrot.slane %v5330_v39, 5 }
 0x231   : > { %8561 = vmatpush3.bf16.msra.mxu1 %v8927_v10  ;;  %v5288_v10 = vshll.u32 %v10845_v11, 16  ;;  %v5262_v8 = vrot.slane %v5261_v25, 4  ;;  %v5272_v21 = vrot.slane %v5271_v26, 4 }
 0x232   : > { %8562 = vmatprep.subr.bf16.mxu1 %v8931_v46 }
 0x233   : > { %8601 = vmatpush3.bf16.msra.mxu0 %v8938_v40  ;;  %v5290_v51 = vrot.slane %v5288_v10, 5  ;;  %v5267_v7 = vsel %vm9177_vm2, %v5262_v8, %v5266_v60  ;;  %v5277_v48 = vsel %vm9177_vm2, %v5272_v21, %v5276_v44  ;;  %v8943_v40 = vld [vmem:[%s11399_s3 + $0x178] sm:$0xff]   ;;  %v8945_v60 = vld [vmem:[%s11399_s3 + $0x170] sm:$0xff]   ;;  %v10904_v21 = vrot.slane %v5642_v30, 4 }
 0x234   : > { %8515 = vmatmul.mubr.bf16.gmra.mxu1 %v7545_v38  ;;  %8650 = vmatprep.subr.bf16.mxu0 %v8940_v62  ;;  %v7646_v55 = vcombine.low %v5267_v7, %v5277_v48  ;;  %v5306_v38 = vshll.u32 %v5194_v28, 16  ;;  %v8952_v8 = vld [vmem:[%s11399_s3 + $0x198] sm:$0xff]   ;;  %v5348_v7 = vrot.slane %v5346_v49, 5  ;;  %v8948_v48 = vld [vmem:[#allocation2 + $0x30] sm:$0xff]  }
 0x235   : > { %8563 = vmatpush3.bf16.msra.mxu1 %v8931_v46  ;;  %8518 = vmatprep.mubr.bf16.mxu1 %v7546_v43  ;;  %v5295_v23 = vor.u32 %v5294_v12, %v5290_v51  ;;  %v5645_v46 = vrot.slane %v10787_v2, 5  ;;  %v5291_v53 = vsel %vm9177_vm2, %v5286_v19, %v5290_v51  ;;  %v5312_v43 = vshll.u32 %v10872_v52, 16  ;;  %v5200_v19 = vld [vmem:[#allocation2 + $0x54] sm:$0xf]  ;;  %v10918_v28 = vld [vmem:[#allocation2 + $0x5c] sm:$0x1] }
 0x236   : > { %8564 = vmatprep.subr.bf16.mxu1 %v8933_v63  ;;  %8603 = vmatmul.mubr.bf16.vlgmr.msra.gmra.mxu0 %v7645_v9  ;;  %v5308_v22 = vrot.slane %v5306_v38, 5  ;;  %v8951_v38 = vld [vmem:[%s11399_s3 + $0x160] sm:$0xff]   ;;  %v5370_v56 = vshll.u32 %v10918_v28, 16 }
 0x237   : > { %8651 = vmatpush3.bf16.msra.mxu0 %v8940_v62  ;;  %v5296_v41 = vrot.slane %v5295_v23, 4  ;;  %8606 = vmatprep.mubr.bf16.mxu0 %v7646_v55  ;;  %v5314_v32 = vrot.slane %v5312_v43, 5  ;;  %v10889_v62 = vld [vmem:[#allocation2 + $0x4c] sm:$0xf]  ;;  %v8956_v55 = vld [vmem:[%s11399_s3 + $0x190] sm:$0xff]   ;;  %v8963_v2 = vld [vmem:[%s11399_s3 + $0x140] sm:$0xff]  }
 0x238   : > { %8652 = vmatprep.subr.bf16.mxu0 %v8944_v13  ;;  %v5309_v44 = vor.u32 %v5308_v22, %v5305_v5  ;;  %v5336_v10 = vshll.u32 %v10889_v62, 16  ;;  %v5340_v26 = vshrl.u32 %v10889_v62, 16  ;;  %v5203_v22 = vld [vmem:[#allocation2 + $0x60] sm:$0xf] }
 0x239   : > { %8565 = vmatpush3.bf16.msra.mxu1 %v8933_v63  ;;  %v5301_v45 = vsel %vm9177_vm2, %v5296_v41, %v5300_v1  ;;  %v5322_v63 = vshll.u32 %v10879_v0, 16  ;;  %v5319_v25 = vor.u32 %v5318_v17, %v5314_v32  ;;  %v10916_v41 = vld [vmem:[#allocation2 + $0x58] sm:$0xf]  ;;  %v5372_v17 = vrot.slane %v5370_v56, 5  ;;  %v5608_v56 = vld [vmem:[#allocation2 + $0xc] sm:$0xe] }
 0x23a   : > { %8566 = vmatprep.subr.bf16.mxu1 %v8937_v4  ;;  %v7647_v16 = vcombine.low %v5291_v53, %v5301_v45  ;;  %v5310_v58 = vrot.slane %v5309_v44, 4  ;;  %v5338_v37 = vrot.slane %v5336_v10, 5  ;;  %v5354_v53 = vshll.u32 %v5200_v19, 16  ;;  %v8958_v10 = vld [vmem:[%s11399_s3 + $0x188] sm:$0xff]  }
 0x23b   : > { %8653 = vmatpush3.bf16.msra.mxu0 %v8944_v13  ;;  %v5324_v9 = vrot.slane %v5322_v63, 5  ;;  %v5320_v51 = vrot.slane %v5319_v25, 4  ;;  %v5342_v13 = vrot.slane %v5340_v26, 4  ;;  %v5360_v29 = vshll.u32 %v10916_v41, 16 }
 0x23c   : > { %8519 = vmatmul.mubr.bf16.gmra.mxu1 %v7547_v42  ;;  %8654 = vmatprep.subr.bf16.mxu0 %v8946_v31  ;;  %v5315_v12 = vsel %vm9177_vm2, %v5310_v58, %v5314_v32  ;;  %v5364_v45 = vshrl.u32 %v10916_v41, 16 }
 0x23d   : > { %8567 = vmatpush3.bf16.msra.mxu1 %v8937_v4  ;;  %8570 = vmatprep.mubr.bf16.mxu1 %v8941_v14  ;;  %v5329_v4 = vrot.slane %v5327_v61, 4  ;;  %v5325_v27 = vsel %vm9177_vm2, %v5320_v51, %v5324_v9  ;;  %v5343_v14 = vor.u32 %v5342_v13, %v5338_v37  ;;  %v5362_v5 = vrot.slane %v5360_v29, 5  ;;  %v10930_v9 = vld [vmem:[#allocation2 + $0x64] sm:$0xf]  ;;  %v8954_v51 = vld [vmem:[#allocation2 + $0x48] sm:$0xff]   ;;  %v8955_v13 = vld [vmem:[%s11399_s3 + $0x158] sm:$0xff]  }
 0x23e   : > { %8568 = vmatprep.subr.bf16.mxu1 %v8939_v3  ;;  %8607 = vmatmul.mubr.bf16.gmra.mxu0 %v7647_v16  ;;  %v7648_v23 = vcombine.low %v5315_v12, %v5325_v27  ;;  %v5366_v6 = vrot.slane %v5364_v45, 4  ;;  %v5378_v61 = vshll.u32 %v5203_v22, 16  ;;  %v5384_v39 = vshll.u32 %v10930_v9, 16  ;;  %v8966_v45 = vld [vmem:[%s11399_s3 + $0x238] sm:$0xff]  }
 0x23f   : > { %8655 = vmatpush3.bf16.msra.mxu0 %v8946_v31  ;;  %v5333_v42 = vor.u32 %v5332_v59, %v5329_v4  ;;  %v5344_v31 = vrot.slane %v5343_v14, 4  ;;  %v5388_v26 = vshrl.u32 %v10930_v9, 16 }
 0x240   : > { %8656 = vmatprep.subr.bf16.mxu0 %v8950_v24  ;;  %8610 = vmatprep.mubr.bf16.mxu0 %v7648_v23  ;;  %v5367_v25 = vor.u32 %v5366_v6, %v5362_v5  ;;  %v5380_v59 = vrot.slane %v5378_v61, 5  ;;  %v5652_v6 = vrot.slane %v10806_v34, 5  ;;  %v5663_v34 = vrot.slane %v10845_v11, 5 }
 0x241   : > { %8569 = vmatpush3.bf16.msra.mxu1 %v8939_v3  ;;  %v8949_v3 = vld [vmem:[%s11399_s3 + $0x168] sm:$0xff]   ;;  %v5334_v1 = vrot.slane %v5333_v42, 4  ;;  %v5349_v63 = vsel %vm9177_vm2, %v5344_v31, %v5348_v7  ;;  %v5390_v12 = vrot.slane %v5388_v26, 4 }
 0x242   : > { %8618 = vmatprep.subr.bf16.mxu1 %v8943_v40 }
 0x243   : > { %8657 = vmatpush3.bf16.msra.mxu0 %v8950_v24  ;;  %v5339_v43 = vsel %vm9177_vm2, %v5334_v1, %v5338_v37  ;;  %v5356_v24 = vrot.slane %v5354_v53, 5  ;;  %v5386_v37 = vrot.slane %v5384_v39, 5  ;;  %v5649_v53 = vrot.slane %v10801_v33, 5 }
 0x244   : > { %8571 = vmatmul.mubr.bf16.vlgmr.msra.gmra.mxu1 %v8942_v57  ;;  %8658 = vmatprep.subr.bf16.mxu0 %v8952_v8  ;;  %v8953_v57 = vld [vmem:[#allocation2 + $0x3c] sm:$0xff]   ;;  %v7649_v32 = vcombine.low %v5339_v43, %v5349_v63  ;;  %v5609_v63 = vld [vmem:[#allocation2 + $0x18] sm:$0xe]  ;;  %v7660_v33 = vrot.slane %v5608_v56, 9 }
 0x245   : > { %8619 = vmatpush3.bf16.msra.mxu1 %v8943_v40  ;;  %8574 = vmatprep.mubr.bf16.mxu1 %v8947_v54  ;;  %v5351_v40 = vshrl.u32 %v5200_v19, 16  ;;  %v10932_v54 = vld [vmem:[#allocation2 + $0x68] sm:$0x1]  ;;  %v5391_v14 = vor.u32 %v5390_v12, %v5386_v37  ;;  %v8957_v19 = vld [vmem:[%s11399_s3 + $0x150] sm:$0xff]   ;;  %v5677_v12 = vrot.slane %v10889_v62, 5 }
 0x246   : > { %8620 = vmatprep.subr.bf16.mxu1 %v8945_v60  ;;  %8611 = vmatmul.mubr.bf16.gmra.mxu0 %v7649_v32  ;;  %v5394_v49 = vshll.u32 %v10932_v54, 16  ;;  %v5643_v32 = vsel %vm9404_vm5, %v7660_v33, %v5642_v30  ;;  %v8969_v30 = vld [vmem:[#allocation2 + $0x30] sm:$0xff]   ;;  %v5694_v56 = vrot.slane %v10932_v54, 5 }
 0x247   : > { %v5353_v16 = vrot.slane %v5351_v40, 4  ;;  %8659 = vmatpush3.bf16.msra.mxu0 %v8952_v8  ;;  %v5368_v8 = vrot.slane %v5367_v25, 4  ;;  %v5392_v31 = vrot.slane %v5391_v14, 4  ;;  %v5611_v25 = vld [vmem:[#allocation2 + $0x30] sm:$0xe] }
 0x248   : > { %8660 = vmatprep.subr.bf16.mxu0 %v8956_v55  ;;  %v5396_v7 = vrot.slane %v5394_v49, 5  ;;  %v5666_v49 = vrot.slane %v10847_v50, 5  ;;  %v5613_v14 = vld [vmem:[#allocation2 + $0x48] sm:$0xe]  ;;  %v5614_v33 = vld [vmem:[#allocation2 + $0x54] sm:$0xe] }
 0x249   : > { %8621 = vmatpush3.bf16.msra.mxu1 %v8945_v60  ;;  %v5357_v44 = vor.u32 %v5356_v24, %v5353_v16  ;;  %v5375_v60 = vshrl.u32 %v5203_v22, 16  ;;  %v5646_v16 = vsel %vm9404_vm5, %v10904_v21, %v5645_v46  ;;  %v5651_v24 = vrot.slane %v5649_v53, 4  ;;  %v8960_v22 = vld [vmem:[#allocation2 + $0x60] sm:$0xff]   ;;  %v8980_v54 = vld [vmem:[%s11399_s3 + $0x210] sm:$0xff]  }
 0x24a   : > { %8622 = vmatprep.subr.bf16.mxu1 %v8949_v3  ;;  %v5397_v29 = vsel %vm9177_vm2, %v5392_v31, %v5396_v7  ;;  %v7684_v46 = vcombine.low %v5643_v32, %v5646_v16  ;;  %v7661_v21 = vrot.slane %v5609_v63, 9  ;;  %v8973_v7 = vld [vmem:[%s11399_s3 + $0x1e8] sm:$0xff]   ;;  %v5680_v31 = vrot.slane %v10891_v36, 5  ;;  %v8976_v36 = vld [vmem:[%s11399_s3 + $0x1e0] sm:$0xff]   ;;  %v8977_v63 = vld [vmem:[#allocation2 + $0x54] sm:$0xff]  }
 0x24b   : > { %v5358_v58 = vrot.slane %v5357_v44, 4  ;;  %v5377_v4 = vrot.slane %v5375_v60, 4  ;;  %8661 = vmatpush3.bf16.msra.mxu0 %v8956_v55  ;;  %v8962_v55 = vld [vmem:[%s11399_s3 + $0x180] sm:$0xff]   ;;  %v5653_v39 = vsel %vm9404_vm5, %v5651_v24, %v5652_v6 }
 0x24c   : > { %8575 = vmatmul.mubr.bf16.gmra.mxu1 %v8948_v48  ;;  %8662 = vmatprep.subr.bf16.mxu0 %v8958_v10  ;;  %v8959_v48 = vld [vmem:[#allocation2 + $0x54] sm:$0xff]   ;;  %v5610_v60 = vld [vmem:[#allocation2 + $0x24] sm:$0xe]  ;;  %v5650_v61 = vsel %vm9404_vm5, %v7661_v21, %v5649_v53  ;;  %v5615_v16 = vld [vmem:[#allocation2 + $0x60] sm:$0xe] }
 0x24d   : > { %8623 = vmatpush3.bf16.msra.mxu1 %v8949_v3  ;;  %8578 = vmatprep.mubr.bf16.mxu1 %v8953_v57  ;;  %v5363_v42 = vsel %vm9177_vm2, %v5358_v58, %v5362_v5  ;;  %v5381_v27 = vor.u32 %v5380_v59, %v5377_v4  ;;  %v5373_v3 = vsel %vm9177_vm2, %v5368_v8, %v5372_v17  ;;  %v8961_v57 = vld [vmem:[%s11399_s3 + $0x148] sm:$0xff]   ;;  %v5656_v5 = vrot.slane %v10828_v47, 5  ;;  %v8970_v59 = vld [vmem:[%s11399_s3 + $0x1f0] sm:$0xff]   ;;  %v8981_v32 = vld [vmem:[#allocation2 + $0x60] sm:$0xff]  }
 0x24e   : > { %8624 = vmatprep.subr.bf16.mxu1 %v8951_v38  ;;  %v7650_v23 = vcombine.low %v5363_v42, %v5373_v3  ;;  %v8965_v17 = vld [vmem:[#allocation2 + $0x24] sm:$0xff]   ;;  %v5659_v47 = vrot.slane %v10830_v15, 5  ;;  %v8968_v15 = vld [vmem:[%s11399_s3 + $0x230] sm:$0xff]   ;;  %v5670_v58 = vrot.slane %v10872_v52, 5  ;;  %v7685_v4 = vcombine.low %v5650_v61, %v5653_v39 }
 0x24f   : > { %v5382_v1 = vrot.slane %v5381_v27, 4  ;;  %8663 = vmatpush3.bf16.msra.mxu0 %v8958_v10  ;;  %v5658_v44 = vrot.slane %v5656_v5, 4  ;;  %v7662_v10 = vrot.slane %v5610_v60, 9  ;;  %v7663_v8 = vrot.slane %v5611_v25, 9  ;;  %v8975_v42 = vld [vmem:[#allocation2 + $0x48] sm:$0xff]  }
 0x250   : > { %8614 = vmatprep.mubr.bf16.mxu0 %v7650_v23  ;;  %8664 = vmatprep.subr.bf16.mxu0 %v8962_v55  ;;  %v5673_v52 = vrot.slane %v10879_v0, 5  ;;  %v5612_v27 = vld [vmem:[#allocation2 + $0x3c] sm:$0xe]  ;;  %v5672_v3 = vrot.slane %v5670_v58, 4  ;;  %v5684_v23 = vrot.slane %v10916_v41, 5  ;;  %v7667_v24 = vrot.slane %v5615_v16, 9 }
 0x251   : > { %8625 = vmatpush3.bf16.msra.mxu1 %v8951_v38  ;;  %v5387_v40 = vsel %vm9177_vm2, %v5382_v1, %v5386_v37  ;;  %v8964_v38 = vld [vmem:[#allocation2 + $0x18] sm:$0xff]   ;;  %v5657_v26 = vsel %vm9404_vm5, %v7662_v10, %v5656_v5  ;;  %v5660_v11 = vsel %vm9404_vm5, %v5658_v44, %v5659_v47  ;;  %v5665_v37 = vrot.slane %v5663_v34, 4  ;;  %v8974_v1 = vld [vmem:[%s11399_s3 + $0x220] sm:$0xff]   ;;  %v6153_v39 = vld [vmem:[#allocation2 + $0x28] sm:$0xf] }
 0x252   : > { %8626 = vmatprep.subr.bf16.mxu1 %v8955_v13  ;;  %v7651_v43 = vcombine.low %v5387_v40, %v5397_v29  ;;  %v7686_v50 = vcombine.low %v5657_v26, %v5660_v11  ;;  %v5664_v0 = vsel %vm9404_vm5, %v7663_v8, %v5663_v34  ;;  %v8978_v41 = vld [vmem:[%s11399_s3 + $0x218] sm:$0xff]   ;;  %v5674_v53 = vsel %vm9404_vm5, %v5672_v3, %v5673_v52  ;;  %v6151_v47 = vld [vmem:[#allocation2 + $0x20] sm:$0x1]  ;;  %v6154_v26 = vld [vmem:[#allocation2 + $0x2c] sm:$0x1] }
 0x253   : > { %8665 = vmatpush3.bf16.msra.mxu0 %v8962_v55  ;;  %v5667_v62 = vsel %vm9404_vm5, %v5665_v37, %v5666_v49  ;;  %v5691_v55 = vrot.slane %v10930_v9, 5  ;;  %v5687_v29 = vrot.slane %v10918_v28, 5  ;;  %v7666_v28 = vrot.slane %v5614_v33, 9  ;;  %v6150_v44 = vld [vmem:[#allocation2 + $0x1c] sm:$0xf] }
 0x254   : > { %8579 = vmatmul.mubr.bf16.gmra.mxu1 %v8954_v51  ;;  %8615 = vmatmul.mubr.bf16.gmra.mxu0 %v7651_v43  ;;  %v8971_v51 = vld [vmem:[#allocation2 + $0x3c] sm:$0xff]   ;;  %v7687_v9 = vcombine.low %v5664_v0, %v5667_v62  ;;  %v5686_v43 = vrot.slane %v5684_v23, 4  ;;  %v6575_v60 = vld [vmem:[#allocation2 + $0x18] sm:$0xe]  ;;  %v6609_v34 = vrot.slane %v6150_v44, 5  ;;  %v6612_v61 = vrot.slane %v6151_v47, 5 }
 0x255   : > { %8627 = vmatpush3.bf16.msra.mxu1 %v8955_v13  ;;  %8582 = vmatprep.mubr.bf16.mxu1 %v8959_v48  ;;  %v8972_v13 = vld [vmem:[%s11399_s3 + $0x228] sm:$0xff]   ;;  %v7664_v48 = vrot.slane %v5612_v27, 9  ;;  %v7764_v25 = vrot.slane %v6575_v60, 9  ;;  %v6576_v11 = vld [vmem:[#allocation2 + $0x24] sm:$0xe]  ;;  %v6616_v49 = vrot.slane %v6153_v39, 5 }
 0x256   : > { %8628 = vmatprep.subr.bf16.mxu1 %v8957_v19  ;;  %8714 = vmatprep.subr.bf16.mxu0 %v8966_v45  ;;  %v5688_v6 = vsel %vm9404_vm5, %v5686_v43, %v5687_v29  ;;  %v6149_v37 = vld [vmem:[#allocation2 + $0x18] sm:$0xf]  ;;  %v8983_v27 = vld [vmem:[#allocation2 + $0x6c] sm:$0xff]   ;;  %v6211_v43 = vshrl.u32 %v6153_v39, 16  ;;  %v6217_v33 = vshll.u32 %v6154_v26, 16 }
 0x257   : > { %8666 = vmatprep.mubr.bf16.mxu0 %v8964_v38  ;;  %v5671_v40 = vsel %vm9404_vm5, %v7664_v48, %v5670_v58  ;;  %v7665_v38 = vrot.slane %v5613_v14, 9  ;;  %v6611_v58 = vrot.slane %v6609_v34, 4  ;;  %v6610_v8 = vsel %vm9404_vm5, %v7764_v25, %v6609_v34  ;;  %v8985_v29 = vld [vmem:[%s11399_s3 + $0x1c8] sm:$0xff]   ;;  %v11081_v16 = vld [vmem:[#allocation2 + $0x38] sm:$0x1] }
 0x258   : > { %v6174_v52 = vshrl.u32 %v6149_v37, 16  ;;  %v6187_v48 = vshrl.u32 %v6150_v44, 16  ;;  %v6626_v34 = vrot.slane %v11081_v16, 5 }
 0x259   : > { %8629 = vmatpush3.bf16.msra.mxu1 %v8957_v19  ;;  %v5679_v19 = vrot.slane %v5677_v12, 4  ;;  %v5678_v5 = vsel %vm9404_vm5, %v7665_v38, %v5677_v12  ;;  %v6177_v12 = vshll.u32 %v6149_v37, 16  ;;  %v6613_v3 = vsel %vm9404_vm5, %v6611_v58, %v6612_v61  ;;  %v11092_v61 = vld [vmem:[#allocation2 + $0x44] sm:$0x1] }
 0x25a   : > { %8630 = vmatprep.subr.bf16.mxu1 %v8961_v57  ;;  %v6176_v62 = vrot.slane %v6174_v52, 4  ;;  %v6207_v38 = vshll.u32 %v6153_v39, 16  ;;  %v6155_v39 = vld [vmem:[#allocation2 + $0x30] sm:$0xf]  ;;  %v6158_v52 = vld [vmem:[#allocation2 + $0x3c] sm:$0xf] }
 0x25c   : > { %8583 = vmatmul.mubr.bf16.gmra.mxu1 %v8960_v22  ;;  %8667 = vmatmul.mubr.bf16.vlgmr.msra.gmra.mxu0 %v8965_v17  ;;  %v5681_v22 = vsel %vm9404_vm5, %v5679_v19, %v5680_v31  ;;  %v8979_v17 = vld [vmem:[%s11399_s3 + $0x1d8] sm:$0xff]   ;;  %v6189_v31 = vrot.slane %v6187_v48, 4 }
 0x25d   : > { %8631 = vmatpush3.bf16.msra.mxu1 %v8961_v57  ;;  %8634 = vmatprep.mubr.bf16.mxu1 %v7684_v46  ;;  %v7688_v57 = vcombine.low %v5671_v40, %v5674_v53  ;;  %v11042_v46 = vsel %vm9404_vm5, %v7667_v24, %v5691_v55  ;;  %v11076_v53 = vld [vmem:[#allocation2 + $0x34] sm:$0xf] }
 0x25e   : > { %8632 = vmatprep.subr.bf16.mxu1 %v8963_v2  ;;  %8715 = vmatpush3.bf16.msra.mxu0 %v8966_v45  ;;  %v5693_v45 = vrot.slane %v5691_v55, 4  ;;  %v8986_v55 = vld [vmem:[%s11399_s3 + $0x200] sm:$0xff]   ;;  %v6235_v48 = vshrl.u32 %v11076_v53, 16 }
 0x25f   : > { %8670 = vmatprep.mubr.bf16.mxu0 %v8969_v30  ;;  %8716 = vmatprep.subr.bf16.mxu0 %v8968_v15  ;;  %v8984_v30 = vld [vmem:[%s11399_s3 + $0x208] sm:$0xff]  }
 0x260   : > { %v11046_v21 = vsel %vm9404_vm5, %v5693_v45, %v5694_v56  ;;  %v6577_v45 = vld [vmem:[#allocation2 + $0x30] sm:$0xe] }
 0x261   : > { %8633 = vmatpush3.bf16.msra.mxu1 %v8963_v2  ;;  %v5685_v2 = vsel %vm9404_vm5, %v7666_v28, %v5684_v23  ;;  %v7691_v10 = vcombine.low %v11042_v46, %v11046_v21  ;;  %v7788_v23 = vcombine.low %v6610_v8, %v6613_v3  ;;  %v6225_v8 = vshll.u32 %v6155_v39, 16 }
 0x262   : > { %8682 = vmatprep.subr.bf16.mxu1 %v8967_v18  ;;  %8717 = vmatpush3.bf16.msra.mxu0 %v8968_v15  ;;  %v7690_v15 = vcombine.low %v5685_v2, %v5688_v6  ;;  %v7766_v2 = vrot.slane %v6577_v45, 9 }
 0x263   : > { %8718 = vmatprep.subr.bf16.mxu0 %v8972_v13  ;;  %v6227_v3 = vrot.slane %v6225_v8, 5 }
 0x264   : > { %8635 = vmatmul.mubr.bf16.vlgmr.msra.gmra.mxu1 %v7685_v4  ;;  %8671 = vmatmul.mubr.bf16.gmra.mxu0 %v8971_v51  ;;  %v7765_v4 = vrot.slane %v6576_v11, 9  ;;  %v6183_v51 = vshll.u32 %v6150_v44, 16  ;;  %v11084_v44 = vld [vmem:[#allocation2 + $0x40] sm:$0xf] }
 0x265   : > { %8683 = vmatpush3.bf16.msra.mxu1 %v8967_v18  ;;  %8638 = vmatprep.mubr.bf16.mxu1 %v7686_v50  ;;  %v7689_v18 = vcombine.low %v5678_v5, %v5681_v22  ;;  %v6618_v50 = vrot.slane %v6616_v49, 4  ;;  %v6209_v5 = vrot.slane %v6207_v38, 5  ;;  %v6213_v22 = vrot.slane %v6211_v43, 4 }
 0x266   : > { %8684 = vmatprep.subr.bf16.mxu1 %v8970_v59  ;;  %8719 = vmatpush3.bf16.msra.mxu0 %v8972_v13  ;;  %v8982_v13 = vld [vmem:[%s11399_s3 + $0x1d0] sm:$0xff]   ;;  %v11065_v14 = vsel %vm9404_vm5, %v7765_v4, %v6616_v49 }
 0x267   : > { %8674 = vmatprep.mubr.bf16.mxu0 %v8975_v42  ;;  %8720 = vmatprep.subr.bf16.mxu0 %v8974_v1  ;;  %v6152_v42 = vld [vmem:[#allocation2 + $0x24] sm:$0xf]  ;;  %v6214_v60 = vor.u32 %v6213_v22, %v6209_v5 }
 0x268   : > { %v6198_v40 = vshrl.u32 %v6152_v42, 16 }
 0x269   : > { %8685 = vmatpush3.bf16.msra.mxu1 %v8970_v59  ;;  %v6619_v59 = vrot.slane %v6154_v26, 5  ;;  %v6215_v4 = vrot.slane %v6214_v60, 4 }
 0x26a   : > { %8686 = vmatprep.subr.bf16.mxu1 %v8973_v7  ;;  %8721 = vmatpush3.bf16.msra.mxu0 %v8974_v1  ;;  %v6179_v1 = vrot.slane %v6177_v12, 5 }
 0x26b   : > { %8722 = vmatprep.subr.bf16.mxu0 %v8978_v41  ;;  %v11069_v0 = vsel %vm9404_vm5, %v6618_v50, %v6619_v59  ;;  %v6630_v59 = vrot.slane %v11084_v44, 5 }
 0x26c   : > { %8639 = vmatmul.mubr.bf16.gmra.mxu1 %v7687_v9  ;;  %8675 = vmatmul.mubr.bf16.gmra.mxu0 %v8977_v63  ;;  %v7789_v19 = vcombine.low %v11065_v14, %v11069_v0  ;;  %v6180_v9 = vor.u32 %v6179_v1, %v6176_v62  ;;  %v6246_v1 = vshrl.u32 %v6158_v52, 16 }
 0x26d   : > { %8687 = vmatpush3.bf16.msra.mxu1 %v8973_v7  ;;  %8642 = vmatprep.mubr.bf16.mxu1 %v7688_v57  ;;  %v6185_v7 = vrot.slane %v6183_v51, 5  ;;  %v6200_v57 = vrot.slane %v6198_v40, 4  ;;  %v6633_v51 = vrot.slane %v11092_v61, 5  ;;  %v6632_v50 = vrot.slane %v6630_v59, 4 }
 0x26e   : > { %8688 = vmatprep.subr.bf16.mxu1 %v8976_v36  ;;  %8723 = vmatpush3.bf16.msra.mxu0 %v8978_v41  ;;  %v6193_v41 = vshll.u32 %v6151_v47, 16  ;;  %v6181_v28 = vrot.slane %v6180_v9, 4  ;;  %v8987_v47 = vld [vmem:[%s11399_s3 + $0x1c0] sm:$0xff]   ;;  %v6237_v40 = vrot.slane %v6235_v48, 4  ;;  %v6255_v9 = vshll.u32 %v11084_v44, 16 }
 0x26f   : > { %8678 = vmatprep.mubr.bf16.mxu0 %v8981_v32  ;;  %8724 = vmatprep.subr.bf16.mxu0 %v8980_v54  ;;  %v6190_v56 = vor.u32 %v6189_v31, %v6185_v7  ;;  %v6578_v32 = vld [vmem:[#allocation2 + $0x3c] sm:$0xe]  ;;  %v6634_v14 = vsel %vm9404_vm5, %v6632_v50, %v6633_v51  ;;  %v6579_v31 = vld [vmem:[#allocation2 + $0x48] sm:$0xe]  ;;  %v6248_v43 = vrot.slane %v6246_v1, 4 }
 0x270   : > { %v6195_v63 = vrot.slane %v6193_v41, 5  ;;  %v7767_v11 = vrot.slane %v6578_v32, 9 }
 0x271   : > { %8689 = vmatpush3.bf16.msra.mxu1 %v8976_v36  ;;  %v6201_v36 = vshll.u32 %v6152_v42, 16  ;;  %v6191_v6 = vrot.slane %v6190_v56, 4  ;;  %v6580_v56 = vld [vmem:[#allocation2 + $0x54] sm:$0xe] }
 0x272   : > { %8690 = vmatprep.subr.bf16.mxu1 %v8979_v17  ;;  %8725 = vmatpush3.bf16.msra.mxu0 %v8980_v54  ;;  %v6219_v54 = vrot.slane %v6217_v33, 5  ;;  %v6631_v42 = vsel %vm9404_vm5, %v7767_v11, %v6630_v59  ;;  %v6265_v33 = vshll.u32 %v11092_v61, 16 }
 0x273   : > { %8726 = vmatprep.subr.bf16.mxu0 %v8984_v30  ;;  %v6203_v24 = vrot.slane %v6201_v36, 5  ;;  %v7791_v0 = vcombine.low %v6631_v42, %v6634_v14  ;;  %v6163_v36 = vld [vmem:[#allocation2 + $0x50] sm:$0x1] }
 0x274   : > { %8643 = vmatmul.mubr.bf16.gmra.mxu1 %v7689_v18  ;;  %8679 = vmatmul.mubr.bf16.gmra.mxu0 %v8983_v27  ;;  %v6186_v18 = vsel %vm9177_vm2, %v6181_v28, %v6185_v7  ;;  %v6220_v21 = vsel %vm9177_vm2, %v6215_v4, %v6219_v54  ;;  %v6231_v7 = vshll.u32 %v11076_v53, 16  ;;  %v11119_v28 = vld [vmem:[#allocation2 + $0x58] sm:$0xf]  ;;  %v6161_v54 = vld [vmem:[#allocation2 + $0x48] sm:$0xf] }
 0x275   : > { %8691 = vmatpush3.bf16.msra.mxu1 %v8979_v17  ;;  %8646 = vmatprep.mubr.bf16.mxu1 %v7690_v15  ;;  %v6623_v17 = vrot.slane %v11076_v53, 5  ;;  %v6196_v15 = vsel %vm9177_vm2, %v6191_v6, %v6195_v63  ;;  %v6259_v53 = vshrl.u32 %v11084_v44, 16  ;;  %v6166_v6 = vld [vmem:[#allocation2 + $0x5c] sm:$0x1]  ;;  %v6640_v44 = vrot.slane %v6163_v36, 5 }
 0x276   : > { %8692 = vmatprep.subr.bf16.mxu1 %v8982_v13  ;;  %8727 = vmatpush3.bf16.msra.mxu0 %v8984_v30  ;;  %v6204_v30 = vor.u32 %v6203_v24, %v6200_v57  ;;  %v7748_v49 = vcombine.low %v6186_v18, %v6196_v15  ;;  %v6233_v41 = vrot.slane %v6231_v7, 5  ;;  %v6257_v57 = vrot.slane %v6255_v9, 5  ;;  %v6164_v4 = vld [vmem:[#allocation2 + $0x54] sm:$0xf] }
 0x277   : > { %8730 = vmatprep.mubr.bf16.mxu0 %v7788_v23  ;;  %8728 = vmatprep.subr.bf16.mxu0 %v8986_v55  ;;  %v6624_v25 = vsel %vm9404_vm5, %v7766_v2, %v6623_v17  ;;  %v6625_v26 = vrot.slane %v6623_v17, 4  ;;  %v6241_v23 = vshll.u32 %v11081_v16, 16  ;;  %v7768_v16 = vrot.slane %v6579_v31, 9 }
 0x278   : > { %v6205_v58 = vrot.slane %v6204_v30, 4  ;;  %v6238_v63 = vor.u32 %v6237_v40, %v6233_v41  ;;  %v6261_v22 = vrot.slane %v6259_v53, 4  ;;  %v6267_v17 = vrot.slane %v6265_v33, 5  ;;  %v6171_v33 = vld [vmem:[#allocation2 + $0x70] sm:$0xf] }
 0x279   : > { %8693 = vmatpush3.bf16.msra.mxu1 %v8982_v13  ;;  %v6627_v37 = vsel %vm9404_vm5, %v6625_v26, %v6626_v34  ;;  %v6222_v13 = vshrl.u32 %v6155_v39, 16  ;;  %v6644_v39 = vrot.slane %v11119_v28, 5  ;;  %v6647_v15 = vrot.slane %v6166_v6, 5 }
 0x27a   : > { %8694 = vmatprep.subr.bf16.mxu1 %v8985_v29  ;;  %8729 = vmatpush3.bf16.msra.mxu0 %v8986_v55  ;;  %v6210_v46 = vsel %vm9177_vm2, %v6205_v58, %v6209_v5  ;;  %v6249_v55 = vshll.u32 %v6158_v52, 16  ;;  %v6239_v2 = vrot.slane %v6238_v63, 4  ;;  %v6262_v30 = vor.u32 %v6261_v22, %v6257_v57 }
 0x27b   : > { %v7749_v12 = vcombine.low %v6210_v46, %v6220_v21  ;;  %v6224_v27 = vrot.slane %v6222_v13, 4  ;;  %v6646_v51 = vrot.slane %v6644_v39, 4  ;;  %v6273_v46 = vshll.u32 %v6161_v54, 16 }
 0x27c   : > { %8647 = vmatmul.mubr.bf16.gmra.mxu1 %v7691_v10  ;;  %v7790_v10 = vcombine.low %v6624_v25, %v6627_v37  ;;  %v6251_v45 = vrot.slane %v6249_v55, 5  ;;  %v6270_v25 = vshrl.u32 %v6161_v54, 16  ;;  %v6294_v42 = vshrl.u32 %v6164_v4, 16 }
 0x27d   : > { %8695 = vmatpush3.bf16.msra.mxu1 %v8985_v29  ;;  %8698 = vmatprep.mubr.bf16.mxu1 %v7748_v49  ;;  %v6228_v62 = vor.u32 %v6227_v3, %v6224_v27  ;;  %v6243_v29 = vrot.slane %v6241_v23, 5  ;;  %v6263_v49 = vrot.slane %v6262_v30, 4  ;;  %v6648_v52 = vsel %vm9404_vm5, %v6646_v51, %v6647_v15  ;;  %v6168_v27 = vld [vmem:[#allocation2 + $0x64] sm:$0xf]  ;;  %v6581_v23 = vld [vmem:[#allocation2 + $0x60] sm:$0xe] }
 0x27e   : > { %8696 = vmatprep.subr.bf16.mxu1 %v8987_v47  ;;  %8731 = vmatmul.mubr.bf16.vlgmr.msra.gmra.mxu0 %v7789_v19  ;;  %v6162_v19 = vld [vmem:[#allocation2 + $0x4c] sm:$0xf]  ;;  %v6252_v5 = vor.u32 %v6251_v45, %v6248_v43  ;;  %v6272_v13 = vrot.slane %v6270_v25, 4  ;;  %v6275_v14 = vrot.slane %v6273_v46, 5  ;;  %v6297_v1 = vshll.u32 %v6164_v4, 16 }
 0x27f   : > { %8734 = vmatprep.mubr.bf16.mxu0 %v7790_v10  ;;  %v6229_v38 = vrot.slane %v6228_v62, 4  ;;  %v6637_v32 = vrot.slane %v6162_v19, 5  ;;  %v6244_v61 = vsel %vm9177_vm2, %v6239_v2, %v6243_v29  ;;  %v6268_v8 = vsel %vm9177_vm2, %v6263_v49, %v6267_v17  ;;  %v6169_v29 = vld [vmem:[#allocation2 + $0x68] sm:$0x1]  ;;  %v6582_v45 = vld [vmem:[#allocation2 + $0x6c] sm:$0xe] }
 0x280   : > { %v6253_v18 = vrot.slane %v6252_v5, 4  ;;  %v6279_v21 = vshll.u32 %v6162_v19, 16  ;;  %v6283_v10 = vshrl.u32 %v6162_v19, 16  ;;  %v6296_v62 = vrot.slane %v6294_v42, 4  ;;  %v6170_v49 = vld [vmem:[#allocation2 + $0x6c] sm:$0xf] }
 0x281   : > { %8697 = vmatpush3.bf16.msra.mxu1 %v8987_v47  ;;  %v6234_v24 = vsel %vm9177_vm2, %v6229_v38, %v6233_v41  ;;  %v7769_v47 = vrot.slane %v6580_v56, 9  ;;  %v6638_v60 = vsel %vm9404_vm5, %v7768_v16, %v6637_v32  ;;  %v6639_v34 = vrot.slane %v6637_v32, 4  ;;  %v6172_v32 = vld [vmem:[#allocation2 + $0x74] sm:$0x1] }
 0x282   : > { %v7750_v26 = vcombine.low %v6234_v24, %v6244_v61  ;;  %v6258_v11 = vsel %vm9177_vm2, %v6253_v18, %v6257_v57  ;;  %v6281_v7 = vrot.slane %v6279_v21, 5  ;;  %v6285_v48 = vrot.slane %v6283_v10, 4 }
 0x283   : > { %v6641_v58 = vsel %vm9404_vm5, %v6639_v34, %v6640_v44  ;;  %v6645_v37 = vsel %vm9404_vm5, %v7769_v47, %v6644_v39  ;;  %v7751_v50 = vcombine.low %v6258_v11, %v6268_v8  ;;  %v6303_v55 = vshll.u32 %v11119_v28, 16 }
 0x284   : > { %8699 = vmatmul.mubr.bf16.vlgmr.msra.gmra.mxu1 %v7749_v12  ;;  %v7792_v59 = vcombine.low %v6638_v60, %v6641_v58  ;;  %v6289_v12 = vshll.u32 %v6163_v36, 16  ;;  %v7793_v3 = vcombine.low %v6645_v37, %v6648_v52  ;;  %v6276_v19 = vor.u32 %v6275_v14, %v6272_v13 }
 0x285   : > { %8702 = vmatprep.mubr.bf16.mxu1 %v7750_v26  ;;  %v6286_v31 = vor.u32 %v6285_v48, %v6281_v7  ;;  %v6307_v41 = vshrl.u32 %v11119_v28, 16  ;;  %v6313_v40 = vshll.u32 %v6166_v6, 16  ;;  %v6299_v9 = vrot.slane %v6297_v1, 5  ;;  %v6167_v28 = vld [vmem:[#allocation2 + $0x60] sm:$0xf] }
 0x286   : > { %8735 = vmatmul.mubr.bf16.gmra.mxu0 %v7791_v0  ;;  %v6291_v0 = vrot.slane %v6289_v12, 5  ;;  %v6305_v36 = vrot.slane %v6303_v55, 5  ;;  %v7770_v38 = vrot.slane %v6581_v23, 9  ;;  %v6651_v43 = vrot.slane %v6168_v27, 5 }
 0x287   : > { %8738 = vmatprep.mubr.bf16.mxu0 %v7792_v59  ;;  %v6277_v53 = vrot.slane %v6276_v19, 4  ;;  %v6287_v56 = vrot.slane %v6286_v31, 4  ;;  %v6309_v63 = vrot.slane %v6307_v41, 4  ;;  %v6315_v57 = vrot.slane %v6313_v40, 5 }
 0x288   : > { %v6300_v16 = vor.u32 %v6299_v9, %v6296_v62  ;;  %v6652_v24 = vsel %vm9404_vm5, %v7770_v38, %v6651_v43  ;;  %v6653_v5 = vrot.slane %v6651_v43, 4  ;;  %v6654_v22 = vrot.slane %v6169_v29, 5 }
 0x289   : > { %v6282_v6 = vsel %vm9177_vm2, %v6277_v53, %v6281_v7  ;;  %v6292_v54 = vsel %vm9177_vm2, %v6287_v56, %v6291_v0  ;;  %v6310_v2 = vor.u32 %v6309_v63, %v6305_v36  ;;  %v7771_v17 = vrot.slane %v6582_v45, 9 }
 0x28a   : > { %v7752_v44 = vcombine.low %v6282_v6, %v6292_v54  ;;  %v6301_v47 = vrot.slane %v6300_v16, 4  ;;  %v6655_v18 = vsel %vm9404_vm5, %v6653_v5, %v6654_v22  ;;  %v6658_v30 = vrot.slane %v6171_v33, 5 }
 0x28b   : > { %v6311_v60 = vrot.slane %v6310_v2, 4  ;;  %v7794_v34 = vcombine.low %v6652_v24, %v6655_v18  ;;  %v6661_v61 = vrot.slane %v6172_v32, 5  ;;  %v6318_v39 = vshrl.u32 %v6167_v28, 16 }
 0x28c   : > { %8703 = vmatmul.mubr.bf16.gmra.mxu1 %v7751_v50  ;;  %v6306_v15 = vsel %vm9177_vm2, %v6301_v47, %v6305_v36  ;;  %v6659_v25 = vsel %vm9404_vm5, %v7771_v17, %v6658_v30  ;;  %v6660_v26 = vrot.slane %v6658_v30, 4  ;;  %v6321_v11 = vshll.u32 %v6167_v28, 16 }
 0x28d   : > { %8706 = vmatprep.mubr.bf16.mxu1 %v7752_v44  ;;  %v6316_v58 = vsel %vm9177_vm2, %v6311_v60, %v6315_v57  ;;  %v6320_v4 = vrot.slane %v6318_v39, 4  ;;  %v6327_v59 = vshll.u32 %v6168_v27, 16  ;;  %v6331_v37 = vshrl.u32 %v6168_v27, 16 }
 0x28e   : > { %8739 = vmatmul.mubr.bf16.gmra.mxu0 %v7793_v3  ;;  %v7753_v51 = vcombine.low %v6306_v15, %v6316_v58  ;;  %v6662_v13 = vsel %vm9404_vm5, %v6660_v26, %v6661_v61  ;;  %v6323_v8 = vrot.slane %v6321_v11, 5  ;;  %v6337_v46 = vshll.u32 %v6169_v29, 16 }
 0x28f   : > { %8742 = vmatprep.mubr.bf16.mxu0 %v7794_v34  ;;  %v7795_v21 = vcombine.low %v6659_v25, %v6662_v13  ;;  %v6329_v10 = vrot.slane %v6327_v59, 5  ;;  %v6333_v50 = vrot.slane %v6331_v37, 4  ;;  %v6342_v52 = vshrl.u32 %v6170_v49, 16 }
 0x290   : > { %v6324_v12 = vor.u32 %v6323_v8, %v6320_v4  ;;  %v6339_v42 = vrot.slane %v6337_v46, 5  ;;  %v6345_v3 = vshll.u32 %v6170_v49, 16  ;;  %v6351_v14 = vshll.u32 %v6171_v33, 16 }
 0x291   : > { %v6334_v7 = vor.u32 %v6333_v50, %v6329_v10  ;;  %v6344_v48 = vrot.slane %v6342_v52, 4  ;;  %v6355_v23 = vshrl.u32 %v6171_v33, 16  ;;  %v6361_v27 = vshll.u32 %v6172_v32, 16 }
 0x292   : > { %v6325_v0 = vrot.slane %v6324_v12, 4  ;;  %v6347_v62 = vrot.slane %v6345_v3, 5  ;;  %v6353_v35 = vrot.slane %v6351_v14, 5 }
 0x293   : > { %v6335_v1 = vrot.slane %v6334_v7, 4  ;;  %v6357_v55 = vrot.slane %v6355_v23, 4  ;;  %v6363_v29 = vrot.slane %v6361_v27, 5 }
 0x294   : > { %8707 = vmatmul.mubr.bf16.gmra.mxu1 %v7753_v51  ;;  %v6330_v19 = vsel %vm9177_vm2, %v6325_v0, %v6329_v10  ;;  %v6348_v31 = vor.u32 %v6347_v62, %v6344_v48 }
 0x295   : > { %v6340_v41 = vsel %vm9177_vm2, %v6335_v1, %v6339_v42  ;;  %v6358_v40 = vor.u32 %v6357_v55, %v6353_v35 }
 0x296   : > { %8743 = vmatmul.mubr.bf16.gmra.mxu0 %v7795_v21  ;;  %v7754_v9 = vcombine.low %v6330_v19, %v6340_v41  ;;  %v6349_v36 = vrot.slane %v6348_v31, 4 }
 0x297   : > { %v6359_v38 = vrot.slane %v6358_v40, 4 }
 0x298   : > { %8710 = vmatprep.mubr.bf16.mxu1 %v7754_v9  ;;  %v6354_v43 = vsel %vm9177_vm2, %v6349_v36, %v6353_v35 }
 0x299   : > { %v6364_v45 = vsel %vm9177_vm2, %v6359_v38, %v6363_v29 }
 0x29a   : > { %v7755_v53 = vcombine.low %v6354_v43, %v6364_v45 }
 0x29c   : > { %8711 = vmatmul.mubr.bf16.gmra.mxu1 %v7755_v53 }
 0x2c4   : > { %v8476_v56 = vpop.f32.mrf.mxu1 }
 0x2c6   : > { %v4393_v63 = vpop.f32.mrf.mxu1 }
 0x2c8   : > { %v8477_v57 = vpop.f32.mrf.mxu1 }
 0x2ca   : > { %v4396_v33 = vpop.f32.mrf.mxu1 }
 0x2cc   : > { %v8480_v16 = vpop.f32.mrf.mxu1 }
 0x2ce   : > { %v4409_v24 = vpop.f32.mrf.mxu1 }
 0x2d0   : > { %v8481_v5 = vpop.f32.mrf.mxu1 }
 0x2d2   : > { %v4412_v22 = vpop.f32.mrf.mxu1 }
 0x2d4   : > { %v8484_v32 = vpop.f32.mrf.mxu1 }
 0x2d6   : > { %v4425_v28 = vpop.f32.mrf.mxu1  ;;  %v8540_v54 = vpop.f32.mrf.mxu0 }
 0x2d8   : > { %v8485_v6 = vpop.f32.mrf.mxu1  ;;  %v4860_v17 = vpop.f32.mrf.mxu0 }
 0x2da   : > { %v4428_v2 = vpop.f32.mrf.mxu1  ;;  %v8541_v47 = vpop.f32.mrf.mxu0 }
 0x2dc   : > { %v8488_v44 = vpop.f32.mrf.mxu1  ;;  %v4863_v18 = vpop.f32.mrf.mxu0 }
 0x2de   : > { %v4441_v20 = vpop.f32.mrf.mxu1  ;;  %v8544_v60 = vpop.f32.mrf.mxu0 }
 0x2e0   : > { %v8489_v30 = vpop.f32.mrf.mxu1  ;;  %v4876_v61 = vpop.f32.mrf.mxu0 }
 0x2e2   : > { %v4444_v34 = vpop.f32.mrf.mxu1  ;;  %v8545_v15 = vpop.f32.mrf.mxu0 }
 0x2e4   : > { %v8508_v39 = vpop.f32.mrf.mxu1  ;;  %v4879_v11 = vpop.f32.mrf.mxu0 }
 0x2e5   : > { %v4595_v25 = vadd.f32 %v8508_v39, %v8476_v56 }
 0x2e6   : > { %v4586_v26 = vpop.f32.mrf.mxu1  ;;  %v8548_v59 = vpop.f32.mrf.mxu0 }
 0x2e7   : > { %v4587_v49 = vadd.f32 %v4586_v26, %v4393_v63  ;;  %v11164_v58 = vadd.f32 %v8540_v54, %v4595_v25 }
 0x2e8   : > { %v8509_v4 = vpop.f32.mrf.mxu1  ;;  %v4892_v8 = vpop.f32.mrf.mxu0 }
 0x2e9   : > { %v4598_v37 = vadd.f32 %v8509_v4, %v8477_v57  ;;  %v11166_v51 = vadd.f32 %v4860_v17, %v4587_v49 }
 0x2ea   : > { %v4589_v13 = vpop.f32.mrf.mxu1  ;;  %v8549_v50 = vpop.f32.mrf.mxu0 }
 0x2eb   : > { %v4590_v46 = vadd.f32 %v4589_v13, %v4396_v33  ;;  %v11168_v21 = vadd.f32 %v8541_v47, %v4598_v37 }
 0x2ec   : > { %v8512_v10 = vpop.f32.mrf.mxu1  ;;  %v4895_v3 = vpop.f32.mrf.mxu0 }
 0x2ed   : > { %v4611_v52 = vadd.f32 %v8512_v10, %v8480_v16  ;;  %v11170_v12 = vadd.f32 %v4863_v18, %v4590_v46 }
 0x2ee   : > { %v4602_v42 = vpop.f32.mrf.mxu1  ;;  %v8552_v23 = vpop.f32.mrf.mxu0 }
 0x2ef   : > { %v4603_v14 = vadd.f32 %v4602_v42, %v4409_v24  ;;  %v11172_v7 = vadd.f32 %v8544_v60, %v4611_v52 }
 0x2f0   : > { %v8513_v48 = vpop.f32.mrf.mxu1  ;;  %v4908_v35 = vpop.f32.mrf.mxu0 }
 0x2f1   : > { %v4614_v27 = vadd.f32 %v8513_v48, %v8481_v5  ;;  %v11174_v0 = vadd.f32 %v4876_v61, %v4603_v14 }
 0x2f2   : > { %v4605_v62 = vpop.f32.mrf.mxu1  ;;  %v8553_v31 = vpop.f32.mrf.mxu0 }
 0x2f3   : > { %v4606_v1 = vadd.f32 %v4605_v62, %v4412_v22  ;;  %v11176_v55 = vadd.f32 %v8545_v15, %v4614_v27 }
 0x2f4   : > { %v8516_v19 = vpop.f32.mrf.mxu1  ;;  %v4911_v9 = vpop.f32.mrf.mxu0 }
 0x2f5   : > { %v4627_v41 = vadd.f32 %v8516_v19, %v8484_v32  ;;  %v11178_v40 = vadd.f32 %v4879_v11, %v4606_v1 }
 0x2f6   : > { %v4618_v29 = vpop.f32.mrf.mxu1  ;;  %v11182_v53 = vpop.f32.mrf.mxu0 }
 0x2f7   : > { %v4619_v36 = vadd.f32 %v4618_v29, %v4425_v28  ;;  %v11180_v38 = vadd.f32 %v8548_v59, %v4627_v41 }
 0x2f8   : > { %v8517_v43 = vpop.f32.mrf.mxu1  ;;  %v11186_v33 = vpop.f32.mrf.mxu0 }
 0x2f9   : > { %v4630_v45 = vadd.f32 %v8517_v43, %v8485_v6  ;;  %v11184_v56 = vadd.f32 %v4892_v8, %v4619_v36 }
 0x2fa   : > { %v4621_v63 = vpop.f32.mrf.mxu1  ;;  %v11190_v22 = vpop.f32.mrf.mxu0 }
 0x2fb   : > { %v4622_v57 = vadd.f32 %v4621_v63, %v4428_v2  ;;  %v11188_v16 = vadd.f32 %v8549_v50, %v4630_v45 }
 0x2fc   : > { %v8520_v24 = vpop.f32.mrf.mxu1  ;;  %v11194_v17 = vpop.f32.mrf.mxu0 }
 0x2fd   : > { %v4643_v5 = vadd.f32 %v8520_v24, %v8488_v44  ;;  %v11192_v32 = vadd.f32 %v4895_v3, %v4622_v57 }
 0x2fe   : > { %v4634_v28 = vpop.f32.mrf.mxu1  ;;  %v11196_v60 = vpop.f32.mrf.mxu0 }
 0x2ff   : > { %v4635_v54 = vadd.f32 %v4634_v28, %v4441_v20  ;;  %v4937_v6 = vadd.f32 %v8552_v23, %v4643_v5 }
 0x300   : > { %v8521_v47 = vpop.f32.mrf.mxu1  ;;  %v11198_v15 = vpop.f32.mrf.mxu0 }
 0x301   : > { %v4646_v18 = vadd.f32 %v8521_v47, %v8489_v30  ;;  %v4935_v2 = vadd.f32 %v4908_v35, %v4635_v54 }
 0x302   : > { %v4637_v61 = vpop.f32.mrf.mxu1  ;;  %v11200_v26 = vpop.f32.mrf.mxu0 }
 0x303   : > { %v4638_v39 = vadd.f32 %v4637_v61, %v4444_v34  ;;  %v4938_v25 = vadd.f32 %v8553_v31, %v4646_v18 }
 0x304   : > { %v8572_v44 = vpop.f32.mrf.mxu1  ;;  %v11202_v20 = vpop.f32.mrf.mxu0 }
 0x305   : > { %v4936_v11 = vadd.f32 %v4911_v9, %v4638_v39 }
 0x306   : > { %v5103_v49 = vpop.f32.mrf.mxu1  ;;  %v11208_v30 = vpop.f32.mrf.mxu0 }
 0x308   : > { %v8573_v4 = vpop.f32.mrf.mxu1  ;;  %v11212_v34 = vpop.f32.mrf.mxu0 }
 0x30a   : > { %v11204_v59 = vpop.f32.mrf.mxu1  ;;  %v11216_v46 = vpop.f32.mrf.mxu0 }
 0x30c   : > { %v11206_v37 = vpop.f32.mrf.mxu1  ;;  %v11220_v50 = vpop.f32.mrf.mxu0 }
 0x30d   : > { %11446 = vst [vmem:[#allocation5_spill] sm:$0xff] %v11220_v50 }
 0x30e   : > { %v11210_v13 = vpop.f32.mrf.mxu1 }
 0x310   : > { %v11214_v8 = vpop.f32.mrf.mxu1 }
 0x312   : > { %v11218_v10 = vpop.f32.mrf.mxu1 }
 0x314   : > { %v11222_v52 = vpop.f32.mrf.mxu1  ;;  %v8616_v3 = vpop.f32.mrf.mxu0 }
 0x316   : > { %v11224_v42 = vpop.f32.mrf.mxu1  ;;  %v5577_v48 = vpop.f32.mrf.mxu0 }
 0x318   : > { %v11226_v14 = vpop.f32.mrf.mxu1  ;;  %v8617_v27 = vpop.f32.mrf.mxu0 }
 0x31a   : > { %v11228_v23 = vpop.f32.mrf.mxu1  ;;  %v5580_v1 = vpop.f32.mrf.mxu0 }
 0x31c   : > { %v8584_v62 = vpop.f32.mrf.mxu1  ;;  %v8668_v41 = vpop.f32.mrf.mxu0 }
 0x31d   : > { %v5180_v35 = vadd.f32 %v8584_v62, %v4937_v6 }
 0x31e   : > { %v5151_v19 = vpop.f32.mrf.mxu1  ;;  %v6070_v43 = vpop.f32.mrf.mxu0 }
 0x31f   : > { %v5178_v31 = vadd.f32 %v5151_v19, %v4935_v2  ;;  %v11230_v29 = vadd.f32 %v8616_v3, %v5180_v35 }
 0x320   : > { %v8585_v9 = vpop.f32.mrf.mxu1  ;;  %v8669_v24 = vpop.f32.mrf.mxu0 }
 0x321   : > { %11447 = vst [vmem:[#allocation6_spill] sm:$0xff] %v11230_v29  ;;  %v5181_v36 = vadd.f32 %v8585_v9, %v4938_v25  ;;  %v11232_v45 = vadd.f32 %v5577_v48, %v5178_v31  ;;  %v5166_v29 = vadd.f32 %v5103_v49, %v11166_v51 }
 0x322   : > { %v5154_v63 = vpop.f32.mrf.mxu1  ;;  %v11236_v54 = vpop.f32.mrf.mxu0 }
 0x323   : > { %11448 = vst [vmem:[#allocation7_spill] sm:$0xff] %v11232_v45  ;;  %v5179_v57 = vadd.f32 %v5154_v63, %v4936_v11  ;;  %v11234_v5 = vadd.f32 %v8617_v27, %v5181_v36 }
 0x324   : > { %v8636_v28 = vpop.f32.mrf.mxu1  ;;  %v11240_v18 = vpop.f32.mrf.mxu0 }
 0x325   : > { %11449 = vst [vmem:[#allocation8_spill] sm:$0xff] %v11234_v5  ;;  %v11238_v6 = vadd.f32 %v5580_v1, %v5179_v57 }
 0x326   : > { %v5827_v47 = vpop.f32.mrf.mxu1  ;;  %v11242_v61 = vpop.f32.mrf.mxu0 }
 0x327   : > { %11450 = vst [vmem:[#allocation9_spill] sm:$0xff] %v11238_v6  ;;  %v5168_v6 = vadd.f32 %v8572_v44, %v11164_v58  ;;  %v5167_v58 = vadd.f32 %v11204_v59, %v11170_v12 }
 0x328   : > { %v8637_v2 = vpop.f32.mrf.mxu1  ;;  %v11244_v25 = vpop.f32.mrf.mxu0 }
 0x32a   : > { %v5830_v39 = vpop.f32.mrf.mxu1  ;;  %v11246_v48 = vpop.f32.mrf.mxu0 }
 0x32c   : > { %v8640_v3 = vpop.f32.mrf.mxu1  ;;  %v11248_v27 = vpop.f32.mrf.mxu0 }
 0x32d   : > { %11451 = vst [vmem:[#allocation10_spill] sm:$0xff] %v11248_v27  ;;  %v5594_v27 = vadd.f32 %v11182_v53, %v5168_v6  ;;  %v5593_v6 = vadd.f32 %v11194_v17, %v5167_v58 }
 0x32e   : > { %v5843_v11 = vpop.f32.mrf.mxu1  ;;  %v11252_v35 = vpop.f32.mrf.mxu0 }
 0x32f   : > { %11452 = vst [vmem:[#allocation11_spill] sm:$0xff] %v11252_v35  ;;  %v5892_v44 = vadd.f32 %v8636_v28, %v5594_v27 }
 0x330   : > { %v11250_v62 = vpop.f32.mrf.mxu1  ;;  %v11256_v19 = vpop.f32.mrf.mxu0 }
 0x331   : > { %11453 = vst [vmem:[#allocation12_spill] sm:$0xff] %v11256_v19 }
 0x332   : > { %v11254_v1 = vpop.f32.mrf.mxu1  ;;  %v11260_v9 = vpop.f32.mrf.mxu0 }
 0x333   : > { %11454 = vst [vmem:[#allocation13_spill] sm:$0xff] %v11260_v9  ;;  %v5169_v9 = vadd.f32 %v8573_v4, %v11168_v21  ;;  %v5172_v21 = vadd.f32 %v11206_v37, %v11172_v7  ;;  %v11303_v37 = vld [vmem:[%s11400_s4] ss:$0 sm:$0xff] }
 0x334   : > { %v11258_v31 = vpop.f32.mrf.mxu1  ;;  %v11264_v63 = vpop.f32.mrf.mxu0 }
 0x335   : > { %11455 = vst [vmem:[#allocation15_spill] sm:$0xff] %v11264_v63  ;;  %v5598_v7 = vadd.f32 %v11196_v60, %v5172_v21 }
 0x336   : > { %v11262_v36 = vpop.f32.mrf.mxu1  ;;  %v11269_v5 = vpop.f32.mrf.mxu0 }
 0x337   : > { %11456 = vst [vmem:[#allocation16_spill] sm:$0xff] %v11269_v5  ;;  %v5592_v5 = vadd.f32 %v11186_v33, %v5166_v29  ;;  %v5170_v33 = vadd.f32 %v11210_v13, %v11174_v0  ;;  %v5891_v29 = vadd.f32 %v5830_v39, %v5593_v6  ;;  %v5171_v13 = vadd.f32 %v11218_v10, %v11178_v40 }
 0x338   : > { %v11266_v57 = vpop.f32.mrf.mxu1  ;;  %v11274_v35 = vpop.f32.mrf.mxu0 }
 0x339   : > { %11458 = vst [vmem:[#allocation17_spill] sm:$0xff] %v11274_v35  ;;  %v5890_v49 = vadd.f32 %v5827_v47, %v5592_v5  ;;  %v5595_v35 = vadd.f32 %v11190_v22, %v5169_v9  ;;  %v5173_v22 = vadd.f32 %v11214_v8, %v11176_v55 }
 0x33a   : > { %v11271_v45 = vpop.f32.mrf.mxu1  ;;  %v11280_v50 = vpop.f32.mrf.mxu0 }
 0x33b   : > { %11457 = vst [vmem:[#allocation14_spill] sm:$0xff] %v11271_v45  ;;  %11460 = vst [vmem:[#allocation4_spill] sm:$0xff] %v11280_v50  ;;  %v5893_v4 = vadd.f32 %v8637_v2, %v5595_v35  ;;  %v6135_v50 = vadd.f32 %v8668_v41, %v5892_v44  ;;  %v6133_v5 = vadd.f32 %v6070_v43, %v5890_v49 }
 0x33c   : > { %v11276_v19 = vpop.f32.mrf.mxu1  ;;  %v5596_v43 = vadd.f32 %v11198_v15, %v5170_v33  ;;  %v6134_v35 = vadd.f32 %v11236_v54, %v5891_v29  ;;  %v5174_v29 = vadd.f32 %v11224_v42, %v11184_v56 }
 0x33d   : > { %11459 = vst [vmem:[#allocation3_spill] sm:$0xff] %v11276_v19  ;;  %v6136_v27 = vadd.f32 %v8669_v24, %v5893_v4  ;;  %v5176_v4 = vadd.f32 %v11222_v52, %v11180_v38 }
 0x33e   : > { %v11282_v63 = vpop.f32.mrf.mxu1  ;;  %v8732_v45 = vpop.f32.mrf.mxu0  ;;  %v5894_v58 = vadd.f32 %v5843_v11, %v5596_v43 }
 0x340   : > { %v11287_v51 = vpop.f32.mrf.mxu1  ;;  %v6794_v19 = vpop.f32.mrf.mxu0 }
 0x342   : > { %v11292_v53 = vpop.f32.mrf.mxu1  ;;  %v8733_v12 = vpop.f32.mrf.mxu0 }
 0x344   : > { %v8700_v59 = vpop.f32.mrf.mxu1  ;;  %v6797_v47 = vpop.f32.mrf.mxu0 }
 0x345   : > { %v6561_v28 = vadd.f32 %v8700_v59, %v6135_v50  ;;  %v5896_v50 = vadd.f32 %v8640_v3, %v5598_v7  ;;  %v5597_v3 = vadd.f32 %v11202_v20, %v5171_v13 }
 0x346   : > { %v6496_v17 = vpop.f32.mrf.mxu1  ;;  %v8736_v0 = vpop.f32.mrf.mxu0 }
 0x347   : > { %v6859_v41 = vadd.f32 %v8732_v45, %v6561_v28  ;;  %v6559_v2 = vadd.f32 %v6496_v17, %v6133_v5  ;;  %v5599_v45 = vadd.f32 %v11200_v26, %v5173_v22  ;;  %v6139_v21 = vadd.f32 %v11240_v18, %v5896_v50 }
 0x348   : > { %v8701_v39 = vpop.f32.mrf.mxu1  ;;  %v6810_v9 = vpop.f32.mrf.mxu0  ;;  %v5895_v59 = vadd.f32 %v11254_v1, %v5597_v3  ;;  %v5602_v1 = vadd.f32 %v11208_v30, %v5176_v4 }
 0x349   : > { %v6882_v55 = vadd.f32 %v11303_v37, %v6859_v41  ;;  %v6857_v60 = vadd.f32 %v6794_v19, %v6559_v2  ;;  %v6562_v8 = vadd.f32 %v8701_v39, %v6136_v27  ;;  %v5897_v19 = vadd.f32 %v11250_v62, %v5599_v45  ;;  %v11463_v45 = vld [vmem:[#allocation14_spill] sm:$0xff] }
 0x34a   : > { %v6499_v24 = vpop.f32.mrf.mxu1  ;;  %v8737_v15 = vpop.f32.mrf.mxu0  ;;  %v6138_v42 = vadd.f32 %v11246_v48, %v5895_v59  ;;  %v5175_v2 = vadd.f32 %v11228_v23, %v11192_v32  ;;  %v11468_v59 = vld [vmem:[#allocation3_spill] sm:$0xff] }
 0x34b   : > { %v6898_v44 = vmax.f32 %v6882_v55, 0.0  ;;  %v6880_v49 = vadd.f32 %v11303_v37, %v6857_v60  ;;  %v6860_v40 = vadd.f32 %v8733_v12, %v6562_v8  ;;  %v6560_v10 = vadd.f32 %v6499_v24, %v6134_v35  ;;  %v11462_v35 = vld [vmem:[#allocation10_spill] sm:$0xff] }
 0x34c   : > { %v8704_v6 = vpop.f32.mrf.mxu1  ;;  %v6137_v12 = vadd.f32 %v11242_v61, %v5894_v58  ;;  %v6813_v33 = vpop.f32.mrf.mxu0  ;;  %v6140_v52 = vadd.f32 %v11244_v25, %v5897_v19  ;;  %v5177_v61 = vadd.f32 %v11226_v14, %v11188_v16  ;;  %v5900_v25 = vadd.f32 %v11258_v31, %v5602_v1  ;;  %v11461_v31 = vld [vmem:[#allocation5_spill] sm:$0xff] }
 0x34d   : > { %6914 = vst [vmem:[%s9125_s10 + $0x10] sm:$0xff] %v6898_v44  ;;  %v6896_v54 = vmax.f32 %v6880_v49, 0.0  ;;  %v6883_v11 = vadd.f32 %v11303_v37, %v6860_v40  ;;  %v6858_v26 = vadd.f32 %v6797_v47, %v6560_v10  ;;  %v6565_v62 = vadd.f32 %v8704_v6, %v6139_v21  ;;  %v11464_v49 = vld [vmem:[#allocation11_spill] sm:$0xff]  ;;  %v11466_v6 = vld [vmem:[#allocation13_spill] sm:$0xff] }
 0x34e   : > { %v6512_v28 = vpop.f32.mrf.mxu1  ;;  %v8740_v7 = vpop.f32.mrf.mxu0  ;;  %v5600_v16 = vadd.f32 %v11212_v34, %v5174_v29  ;;  %v5603_v50 = vadd.f32 %v11216_v46, %v5177_v61  ;;  %v5601_v34 = vadd.f32 %v11461_v31, %v5175_v2  ;;  %v6143_v46 = vadd.f32 %v11462_v35, %v5900_v25 }
 0x34f   : > { %6912 = vst [vmem:[%s9125_s10] sm:$0xff] %v6896_v54  ;;  %v6899_v20 = vmax.f32 %v6883_v11, 0.0  ;;  %v6881_v18 = vadd.f32 %v11303_v37, %v6858_v26  ;;  %v6863_v47 = vadd.f32 %v8736_v0, %v6565_v62  ;;  %v6563_v38 = vadd.f32 %v6512_v28, %v6137_v12 }
 0x350   : > { %v8705_v22 = vpop.f32.mrf.mxu1  ;;  %v6826_v43 = vpop.f32.mrf.mxu0  ;;  %v5898_v48 = vadd.f32 %v11262_v36, %v5600_v16  ;;  %v5901_v55 = vadd.f32 %v11266_v57, %v5603_v50  ;;  %v5899_v36 = vadd.f32 %v11463_v45, %v5601_v34  ;;  %v11465_v57 = vld [vmem:[#allocation12_spill] sm:$0xff] }
 0x351   : > { %6915 = vst [vmem:[%s9125_s10 + $0x18] sm:$0xff] %v6899_v20  ;;  %v6897_v5 = vmax.f32 %v6881_v18, 0.0  ;;  %v6886_v17 = vadd.f32 %v11303_v37, %v6863_v47  ;;  %v6861_v41 = vadd.f32 %v6810_v9, %v6563_v38  ;;  %v6566_v56 = vadd.f32 %v8705_v22, %v6140_v52  ;;  %v11469_v38 = vld [vmem:[#allocation7_spill] sm:$0xff] }
 0x352   : > { %v6515_v14 = vpop.f32.mrf.mxu1  ;;  %v8741_v58 = vpop.f32.mrf.mxu0  ;;  %v6141_v40 = vadd.f32 %v11464_v49, %v5898_v48  ;;  %v6144_v21 = vadd.f32 %v11465_v57, %v5901_v55  ;;  %v6142_v12 = vadd.f32 %v11466_v6, %v5899_v36  ;;  %v5902_v52 = vadd.f32 %v11282_v63, %v11469_v38  ;;  %v11474_v48 = vld [vmem:[#allocation17_spill] sm:$0xff]  ;;  %v11475_v55 = vld [vmem:[#allocation4_spill] sm:$0xff] }
 0x353   : > { %6913 = vst [vmem:[%s9125_s10 + $0x8] sm:$0xff] %v6897_v5  ;;  %v6902_v30 = vmax.f32 %v6886_v17, 0.0  ;;  %v6884_v27 = vadd.f32 %v11303_v37, %v6861_v41  ;;  %v6864_v0 = vadd.f32 %v8737_v15, %v6566_v56  ;;  %v6564_v13 = vadd.f32 %v6515_v14, %v6138_v42  ;;  %v11471_v42 = vld [vmem:[#allocation15_spill] sm:$0xff]  ;;  %v11472_v14 = vld [vmem:[#allocation9_spill] sm:$0xff] }
 0x354   : > { %v8708_v9 = vpop.f32.mrf.mxu1  ;;  %v6829_v19 = vpop.f32.mrf.mxu0  ;;  %v5903_v63 = vadd.f32 %v11292_v53, %v11472_v14 }
 0x355   : > { %6918 = vst [vmem:[%s9125_s10 + $0x30] sm:$0xff] %v6902_v30  ;;  %v6900_v39 = vmax.f32 %v6884_v27, 0.0  ;;  %v6887_v32 = vadd.f32 %v11303_v37, %v6864_v0  ;;  %v6862_v23 = vadd.f32 %v6813_v33, %v6564_v13  ;;  %v6569_v44 = vadd.f32 %v8708_v9, %v6143_v46  ;;  %v11467_v33 = vld [vmem:[#allocation6_spill] sm:$0xff]  ;;  %v11473_v0 = vld [vmem:[#allocation16_spill] sm:$0xff] }
 0x356   : > { %v6528_v10 = vpop.f32.mrf.mxu1  ;;  %v5904_v20 = vadd.f32 %v11468_v59, %v11467_v33  ;;  %v8744_v47 = vpop.f32.mrf.mxu0  ;;  %v6145_v13 = vadd.f32 %v11473_v0, %v5902_v52 }
 0x357   : > { %6916 = vst [vmem:[%s9125_s10 + $0x20] sm:$0xff] %v6900_v39  ;;  %v6903_v60 = vmax.f32 %v6887_v32, 0.0  ;;  %v6885_v8 = vadd.f32 %v11303_v37, %v6862_v23  ;;  %v6867_v15 = vadd.f32 %v8740_v7, %v6569_v44  ;;  %v6567_v3 = vadd.f32 %v6528_v10, %v6141_v40  ;;  %v11470_v7 = vld [vmem:[#allocation8_spill] sm:$0xff] }
 0x358   : > { %v8709_v54 = vpop.f32.mrf.mxu1  ;;  %v5905_v17 = vadd.f32 %v11287_v51, %v11470_v7  ;;  %v6147_v2 = vadd.f32 %v11471_v42, %v5904_v20  ;;  %v6842_v25 = vpop.f32.mrf.mxu0 }
 0x359   : > { %6919 = vst [vmem:[%s9125_s10 + $0x38] sm:$0xff] %v6903_v60  ;;  %v6901_v24 = vmax.f32 %v6885_v8, 0.0  ;;  %v6890_v11 = vadd.f32 %v11303_v37, %v6867_v15  ;;  %v6865_v26 = vadd.f32 %v6826_v43, %v6567_v3  ;;  %v6570_v4 = vadd.f32 %v8709_v54, %v6144_v21 }
 0x35a   : > { %v6531_v18 = vpop.f32.mrf.mxu1  ;;  %v6148_v39 = vadd.f32 %v11474_v48, %v5905_v17  ;;  %v8745_v32 = vpop.f32.mrf.mxu0  ;;  %v6146_v60 = vadd.f32 %v11475_v55, %v5903_v63 }
 0x35b   : > { %6917 = vst [vmem:[%s9125_s10 + $0x28] sm:$0xff] %v6901_v24  ;;  %v6906_v62 = vmax.f32 %v6890_v11, 0.0  ;;  %v6888_v29 = vadd.f32 %v11303_v37, %v6865_v26  ;;  %v6868_v28 = vadd.f32 %v8741_v58, %v6570_v4  ;;  %v6568_v5 = vadd.f32 %v6531_v18, %v6142_v12 }
 0x35c   : > { %v8712_v16 = vpop.f32.mrf.mxu1  ;;  %v6845_v45 = vpop.f32.mrf.mxu0 }
 0x35d   : > { %6922 = vst [vmem:[%s9125_s10 + $0x50] sm:$0xff] %v6906_v62  ;;  %v6904_v61 = vmax.f32 %v6888_v29, 0.0  ;;  %v6891_v1 = vadd.f32 %v11303_v37, %v6868_v28  ;;  %v6866_v22 = vadd.f32 %v6829_v19, %v6568_v5  ;;  %v6573_v27 = vadd.f32 %v8712_v16, %v6147_v2 }
 0x35e   : > { %v6544_v50 = vpop.f32.mrf.mxu1 }
 0x35f   : > { %6920 = vst [vmem:[%s9125_s10 + $0x40] sm:$0xff] %v6904_v61  ;;  %v6907_v41 = vmax.f32 %v6891_v1, 0.0  ;;  %v6889_v56 = vadd.f32 %v11303_v37, %v6866_v22  ;;  %v6871_v51 = vadd.f32 %v8744_v47, %v6573_v27  ;;  %v6571_v43 = vadd.f32 %v6544_v50, %v6145_v13 }
 0x360   : > { %v8713_v23 = vpop.f32.mrf.mxu1 }
 0x361   : > { %6923 = vst [vmem:[%s9125_s10 + $0x58] sm:$0xff] %v6907_v41  ;;  %v6905_v30 = vmax.f32 %v6889_v56, 0.0  ;;  %v6894_v31 = vadd.f32 %v11303_v37, %v6871_v51  ;;  %v6869_v34 = vadd.f32 %v6842_v25, %v6571_v43  ;;  %v6574_v53 = vadd.f32 %v8713_v23, %v6148_v39 }
 0x362   : > { %v6547_v8 = vpop.f32.mrf.mxu1 }
 0x363   : > { %6921 = vst [vmem:[%s9125_s10 + $0x48] sm:$0xff] %v6905_v30  ;;  %v6910_v35 = vmax.f32 %v6894_v31, 0.0  ;;  %v6892_v46 = vadd.f32 %v11303_v37, %v6869_v34  ;;  %v6872_v9 = vadd.f32 %v8745_v32, %v6574_v53  ;;  %v6572_v58 = vadd.f32 %v6547_v8, %v6146_v60 }
 0x365   : > { %6926 = vst [vmem:[%s9125_s10 + $0x70] sm:$0xff] %v6910_v35  ;;  %v6908_v36 = vmax.f32 %v6892_v46, 0.0  ;;  %v6895_v24 = vadd.f32 %v11303_v37, %v6872_v9  ;;  %v6870_v44 = vadd.f32 %v6845_v45, %v6572_v58 }
 0x367   : > { %6924 = vst [vmem:[%s9125_s10 + $0x60] sm:$0xff] %v6908_v36  ;;  %v6911_v49 = vmax.f32 %v6895_v24, 0.0  ;;  %v6893_v40 = vadd.f32 %v11303_v37, %v6870_v44 }
 0x369   : > { %6927 = vst [vmem:[%s9125_s10 + $0x78] sm:$0xff] %v6911_v49  ;;  %v6909_v10 = vmax.f32 %v6893_v40, 0.0 }
 0x36b   : > { %6925 = vst [vmem:[%s9125_s10 + $0x68] sm:$0xff] %v6909_v10 }
 0x36c PF: > { %s15_s22 = sadd.s32 1, %s9026_s22   ;;  %s11476_s18 = smov %s9018_s20 }
 0x36d   : > { %p12_p9 = scmp.ge.s32.totalorder %s15_s22, 6   ;;  %s11477_s19 = smov %s9022_s21 }
 0x36e   : > { %s11478_s20 = smov %s11481_s23  ;;  %s11479_s21 = smov %s11485_s24 }
 0x36f   :  { %14 = sbr.rel (!%p12_p9) target bundleno = 3 (0x3), region = 100 }

</bundles_post_ra>
